<compile_context>
chip_gen: v7x
topology: tpu7x:2x2x1
jax: 0.10.0
libtpu: 0.0.40
codegen_flags: <defaults>
</compile_context>

<pallas_src>
import math
from functools import partial

import jax
import jax.numpy as jnp
import numpy as np
from jax.experimental import pallas as pl
from jax.experimental.pallas import tpu as pltpu


def _round_up(v, m):
    return (v + m - 1) // m * m


# ---------------------------------------------------------------------------
# Kernel 1: whole-stack fusion  Conv -> ReLU -> Conv -> ReLU  (single launch)
# ---------------------------------------------------------------------------

def _fused_two_conv_kernel(p1_ref, w1_ref, b1_ref, w2_ref, b2_ref, o_ref,
                           h1_ref, *, n, ho1, wo1p, ho2, wo2, k2):
    """p1:(M1p,K1p)bf16  w1:(K1p,C1p)bf16  b1:(1,C1p)f32
       w2:(k2*k2,C1p,C2p)bf16  b2:(1,C2p)f32  o:(M2,C2p)f32
       h1_ref: f32 VMEM scratch (n, ho1, wo1p, C1p) holding the intermediate."""
    c1p = w1_ref.shape[-1]
    c2p = o_ref.shape[-1]
    m2 = n * ho2 * wo2

    # ---- stage 1: conv1 as one lane-dense MXU GEMM + bias + ReLU epilogue ---
    h1 = jnp.dot(p1_ref[...], w1_ref[...], preferred_element_type=jnp.float32)
    h1 = jnp.maximum(h1 + b1_ref[...], 0.0)
    # Intermediate activation stays in VMEM (NHWC); padded out-channels are
    # exactly zero (0 @ w1 + 0 bias -> relu -> 0), so conv2 padding is exact.
    h1_ref[...] = h1.reshape(n, ho1, wo1p, c1p)

    # ---- stage 2: conv2 as k2*k2 shifted sub-matmuls, f32 accumulation -----
    acc = jnp.zeros((m2, c2p), jnp.float32)
    for t in range(k2 * k2):
        i, j = divmod(t, k2)
        window = h1_ref[:, pl.ds(i, ho2), pl.ds(j, wo2), :]   # (n,ho2,wo2,C1p)
        lhs = window.reshape(m2, c1p).astype(jnp.bfloat16)
        acc = acc + jnp.dot(lhs, w2_ref[t],
                            preferred_element_type=jnp.float32)
    o_ref[...] = jnp.maximum(acc + b2_ref[...], 0.0)


def _fused_conv_relu_x2(x, conv1, conv2):
    """Conv2d+ReLU+Conv2d+ReLU (valid, stride 1) as one Pallas kernel."""
    n, cin, h, w = x.shape
    k1, k2 = conv1.kernel_size, conv2.kernel_size
    c1out, c2out = conv1.out_channels, conv2.out_channels
    ho1, wo1 = h - k1 + 1, w - k1 + 1
    ho2, wo2 = ho1 - k2 + 1, wo1 - k2 + 1

    c1p = _round_up(c1out, 128)          # lane-dense intermediate channels
    c2p = _round_up(c2out, 128)          # lane-dense output channels
    k1dim = k1 * k1 * cin
    k1p = _round_up(k1dim, 128)          # lane-dense reduction dim of GEMM 1
    wo1p = _round_up(wo1, 8)             # sublane-friendly intermediate width
    m1p = n * ho1 * wo1p
    m2 = n * ho2 * wo2

    # Host-side (XLA-fused) im2col of the tiny input for conv1, zero-padded to
    # the lane-dense layout.  Padded width columns / K columns are never read
    # with non-zero weights, so padding is mathematically exact.
    x_nhwc = jnp.transpose(x, (0, 2, 3, 1)).astype(jnp.float32)
    cols = [x_nhwc[:, i:i + ho1, j:j + wo1, :]
            for i in range(k1) for j in range(k1)]
    p1 = jnp.stack(cols, axis=3).reshape(n, ho1, wo1, k1dim)
    p1 = jnp.pad(p1, ((0, 0), (0, 0), (0, wo1p - wo1), (0, k1p - k1dim)))
    p1 = p1.reshape(m1p, k1p).astype(jnp.bfloat16)

    w1p = jnp.zeros((k1p, c1p), jnp.bfloat16).at[:k1dim, :c1out].set(
        conv1.weight.reshape(k1dim, c1out).astype(jnp.bfloat16))
    b1p = jnp.zeros((1, c1p), jnp.float32).at[:, :c1out].set(conv1.bias)
    w2p = jnp.zeros((k2 * k2, c1p, c2p), jnp.bfloat16).at[:, :c1out, :c2out].set(
        conv2.weight.reshape(k2 * k2, c1out, c2out).astype(jnp.bfloat16))
    b2p = jnp.zeros((1, c2p), jnp.float32).at[:, :c2out].set(conv2.bias)

    vmem = pl.BlockSpec(memory_space=pltpu.VMEM)
    out2d = pl.pallas_call(
        partial(_fused_two_conv_kernel, n=n, ho1=ho1, wo1p=wo1p,
                ho2=ho2, wo2=wo2, k2=k2),
        out_shape=jax.ShapeDtypeStruct((m2, c2p), jnp.float32),
        in_specs=[vmem] * 5,
        out_specs=vmem,
        scratch_shapes=[pltpu.VMEM((n, ho1, wo1p, c1p), jnp.float32)],
    )(p1, w1p, b1p, w2p, b2p)

    out = out2d[:, :c2out].reshape(n, ho2, wo2, c2out)
    return jnp.transpose(out, (0, 3, 1, 2))      # back to NCHW at the boundary


# ---------------------------------------------------------------------------
# Kernel 2: generic M-tiled GEMM + bias (+ fused ReLU) for the fallback path
# ---------------------------------------------------------------------------

def _gemm_bias_act_kernel(x_ref, w_ref, b_ref, o_ref, *, apply_relu):
    acc = jnp.dot(x_ref[...], w_ref[...], preferred_element_type=jnp.float32)
    acc = acc + b_ref[...]
    if apply_relu:                         # compile-time flag: fused epilogue
        acc = jnp.maximum(acc, 0.0)
    o_ref[...] = acc


def _matmul_bias_act(x, w, b, *, apply_relu, tm=512):
    """relu?(x @ w + b) with lane-padded N/K, bf16 operands, M-tiled grid."""
    m, k = x.shape
    n_out = w.shape[-1]
    kp = _round_up(k, 128)
    np_ = _round_up(n_out, 128)
    tm = min(tm, _round_up(m, 8))
    mp = _round_up(m, tm)

    xp = jnp.zeros((mp, kp), jnp.bfloat16).at[:m, :k].set(x.astype(jnp.bfloat16))
    wp = jnp.zeros((kp, np_), jnp.bfloat16).at[:k, :n_out].set(
        w.astype(jnp.bfloat16))
    bp = jnp.zeros((1, np_), jnp.float32).at[:, :n_out].set(
        b.astype(jnp.float32))

    out = pl.pallas_call(
        partial(_gemm_bias_act_kernel, apply_relu=apply_relu),
        out_shape=jax.ShapeDtypeStruct((mp, np_), jnp.float32),
        grid=(mp // tm,),
        in_specs=[pl.BlockSpec((tm, kp), lambda i: (i, 0)),
                  pl.BlockSpec((kp, np_), lambda i: (0, 0)),
                  pl.BlockSpec((1, np_), lambda i: (0, 0))],
        out_specs=pl.BlockSpec((tm, np_), lambda i: (i, 0)),
        compiler_params=pltpu.CompilerParams(
            dimension_semantics=("parallel",)),   # shards M across v7x's 2 TCs
    )(xp, wp, bp)
    return out[:m, :n_out]


# ---------------------------------------------------------------------------
# Pallas-backed modules usable inside the Sequential container
# ---------------------------------------------------------------------------

class Conv2dPallas:
    """Valid (no padding), stride-1 Conv2d with a PyTorch-style NCHW interface,
    lowered to one fused Pallas GEMM (im2col @ weight + bias [+ ReLU])."""

    def __init__(self, in_channels, out_channels, kernel_size, *, key):
        self.in_channels = in_channels
        self.out_channels = out_channels
        self.kernel_size = kernel_size
        fan_in = in_channels * kernel_size * kernel_size
        bound = 1.0 / math.sqrt(fan_in)
        wk, bk = jax.random.split(key)
        # stored as (kh, kw, Cin, Cout) == HWIO
        self.weight = jax.random.uniform(
            wk, (kernel_size, kernel_size, in_channels, out_channels),
            dtype=jnp.float32, minval=-bound, maxval=bound)
        self.bias = jax.random.uniform(
            bk, (out_channels,), dtype=jnp.float32, minval=-bound, maxval=bound)

    def __call__(self, x, fuse_relu=False):
        k = self.kernel_size
        x_nhwc = jnp.transpose(x, (0, 2, 3, 1))
        n, h, w, _ = x_nhwc.shape
        ho, wo = h - k + 1, w - k + 1
        cols = [x_nhwc[:, i:i + ho, j:j + wo, :]
                for i in range(k) for j in range(k)]
        patches = jnp.stack(cols, axis=3).reshape(
            n * ho * wo, k * k * self.in_channels)
        w2d = self.weight.reshape(k * k * self.in_channels, self.out_channels)
        out = _matmul_bias_act(patches, w2d, self.bias, apply_relu=fuse_relu)
        out = out.reshape(n, ho, wo, self.out_channels)
        return jnp.transpose(out, (0, 3, 1, 2))


class ReLUPallas:
    """ReLU module.  Per the perf review a standalone Pallas launch for a
    mem-bound elementwise op is pure dispatch overhead: when not fused into the
    preceding conv's GEMM epilogue we emit a plain jnp.maximum for XLA to fuse."""

    def __call__(self, x):
        return jnp.maximum(x, 0.0)


# ---------------------------------------------------------------------------
# The Sequential container (the spec module)
# ---------------------------------------------------------------------------

class SequentialPallas:
    """Pallas/JAX port of the custom `Sequential` container.

    forward(input): apply contained modules in insertion order.  Identical
    math, but as pure optimizations (a) a Conv2dPallas immediately followed by
    a ReLUPallas runs as one fused GEMM launch, and (b) the full
    Conv->ReLU->Conv->ReLU pattern runs as ONE Pallas kernel with the
    intermediate activation held in VMEM scratch.
    """

    def __init__(self, *args, **kwargs):
        self._modules = {}
        if len(args) == 1 and isinstance(args[0], dict):
            for name, module in args[0].items():
                self.add_module(name, module)
        else:
            for idx, module in enumerate(args):
                self.add_module(str(idx), module)
        for name, module in kwargs.items():
            if name in self._modules:
                raise ValueError('name exists.')
            self.add_module(name, module)

    def add_module(self, name, module):
        self._modules[name] = module

    def add(self, module, name=None):
        if name is None:
            name = str(len(self._modules))
            if name in self._modules:
                raise KeyError('name exists')
        self.add_module(name, module)

    def __len__(self):
        return len(self._modules)

    def __getitem__(self, idx):
        if not -len(self) <= idx < len(self):
            raise IndexError('index {} is out of range'.format(idx))
        if idx < 0:
            idx += len(self)
        return list(self._modules.values())[idx]

    @staticmethod
    def _can_fuse_whole_stack(mods, x):
        if len(mods) != 4:
            return False
        c1, r1, c2, r2 = mods
        if not (isinstance(c1, Conv2dPallas) and isinstance(r1, ReLUPallas)
                and isinstance(c2, Conv2dPallas) and isinstance(r2, ReLUPallas)):
            return False
        n, cin, h, w = x.shape
        if cin != c1.in_channels or c2.in_channels != c1.out_channels:
            return False
        k1, k2 = c1.kernel_size, c2.kernel_size
        ho1, wo1 = h - k1 + 1, w - k1 + 1
        ho2, wo2 = ho1 - k2 + 1, wo1 - k2 + 1
        if ho2 < 1 or wo2 < 1:
            return False
        # Rough VMEM footprint guard (operands + f32 intermediate + f32 out).
        c1p = _round_up(c1.out_channels, 128)
        c2p = _round_up(c2.out_channels, 128)
        k1p = _round_up(k1 * k1 * cin, 128)
        wo1p = _round_up(wo1, 8)
        m1p = n * ho1 * wo1p
        m2 = n * ho2 * wo2
        est = (m1p * k1p * 2 + k1p * c1p * 2 + k2 * k2 * c1p * c2p * 2
               + m1p * c1p * 4 + m2 * c2p * 4)
        return est < 24 * 1024 * 1024

    def forward(self, x):
        mods = list(self._modules.values())
        # Whole-stack fusion: the docstring example becomes ONE Pallas kernel.
        if self._can_fuse_whole_stack(mods, x):
            return _fused_conv_relu_x2(x, mods[0], mods[2])
        # Fallback: peephole Conv+ReLU fusion, otherwise module-by-module.
        out = x
        i = 0
        while i < len(mods):
            m = mods[i]
            if (isinstance(m, Conv2dPallas) and i + 1 < len(mods)
                    and isinstance(mods[i + 1], ReLUPallas)):
                out = m(out, fuse_relu=True)
                i += 2
            else:
                out = m(out)
                i += 1
        return out

    __call__ = forward

# TODO(synk): Sequential is a generic container; arbitrary torch submodules
# beyond the Conv2d/ReLU example are not given Pallas implementations here.


if __name__ == "__main__":
    key = jax.random.PRNGKey(0)
    k_in, k_c1, k_c2, k_in2, k_c3 = jax.random.split(key, 5)

    # Docstring example: Sequential(Conv2d(1,20,5), ReLU(), Conv2d(20,64,5), ReLU())
    model = SequentialPallas(
        Conv2dPallas(1, 20, 5, key=k_c1),
        ReLUPallas(),
        Conv2dPallas(20, 64, 5, key=k_c2),
        ReLUPallas(),
    )
    x = jax.random.normal(k_in, (2, 1, 16, 16), dtype=jnp.float32)

    fwd = jax.jit(model.forward)        # one XLA program, ONE fused Pallas launch
    out = jax.block_until_ready(fwd(x))
    assert out.shape == (2, 64, 8, 8), out.shape

    # pure-JAX reference of the same Sequential forward pass
    def _conv_relu_ref(v, conv):
        v = jax.lax.conv_general_dilated(
            v, conv.weight, window_strides=(1, 1), padding='VALID',
            dimension_numbers=('NCHW', 'HWIO', 'NCHW'),
            precision=jax.lax.Precision.HIGHEST)
        return jnp.maximum(v + conv.bias.reshape(1, -1, 1, 1), 0.0)

    ref = jax.block_until_ready(_conv_relu_ref(_conv_relu_ref(x, model[0]), model[2]))
    np.testing.assert_allclose(np.asarray(out), np.asarray(ref),
                               rtol=3e-2, atol=3e-2)

    # Also exercise the generic tiled-GEMM fallback path (peephole Conv+ReLU
    # fusion with an M-grid of 2 tiles and "parallel" dimension semantics).
    model2 = SequentialPallas(Conv2dPallas(4, 32, 3, key=k_c3), ReLUPallas())
    x2 = jax.random.normal(k_in2, (2, 4, 20, 20), dtype=jnp.float32)
    out2 = jax.block_until_ready(jax.jit(model2.forward)(x2))
    ref2 = jax.block_until_ready(_conv_relu_ref(x2, model2[0]))
    assert out2.shape == ref2.shape == (2, 32, 18, 18), out2.shape
    np.testing.assert_allclose(np.asarray(out2), np.asarray(ref2),
                               rtol=3e-2, atol=3e-2)

    print("KERNEL_OK")
</pallas_src>

<mosaic_0001>
module attributes {stable_mosaic.version = 11 : i64} {
  func.func @_fused_two_conv_kernel(%arg0: memref<384x128xbf16, #tpu.memory_space<vmem>>, %arg1: memref<128x128xbf16, #tpu.memory_space<vmem>>, %arg2: memref<1x128xf32, #tpu.memory_space<vmem>>, %arg3: memref<25x128x128xbf16, #tpu.memory_space<vmem>>, %arg4: memref<1x128xf32, #tpu.memory_space<vmem>>, %arg5: memref<128x128xf32, #tpu.memory_space<vmem>>, %arg6: memref<2x12x16x128xf32, #tpu.memory_space<vmem>>) attributes {dimension_semantics = [], scalar_prefetch = 0 : i64, scratch_operands = 1 : i64, tpu.core_type = #tpu.core_type<tc>} {
    %c0 = arith.constant 0 : index
    %c0_0 = arith.constant 0 : index
    %0 = vector.load %arg0[%c0, %c0_0] : memref<384x128xbf16, #tpu.memory_space<vmem>>, vector<384x128xbf16>
    %c0_1 = arith.constant 0 : index
    %c0_2 = arith.constant 0 : index
    %1 = vector.load %arg1[%c0_1, %c0_2] : memref<128x128xbf16, #tpu.memory_space<vmem>>, vector<128x128xbf16>
    %cst = arith.constant dense<0.000000e+00> : vector<384x128xf32>
    %2 = tpu.matmul %0, %1, %cst {dimension_numbers = #tpu.dot_dimension_numbers<[1], [0], [0], [1], [0, 0, 1, 1], [], []>} : vector<384x128xbf16>, vector<128x128xbf16>, vector<384x128xf32> -> vector<384x128xf32>
    %c0_3 = arith.constant 0 : index
    %c0_4 = arith.constant 0 : index
    %3 = vector.load %arg2[%c0_3, %c0_4] : memref<1x128xf32, #tpu.memory_space<vmem>>, vector<1x128xf32>
    %4 = vector.broadcast %3 : vector<1x128xf32> to vector<384x128xf32>
    %5 = arith.addf %2, %4 : vector<384x128xf32>
    %cst_5 = arith.constant 0.000000e+00 : f32
    %6 = vector.broadcast %cst_5 : f32 to vector<384x128xf32>
    %7 = arith.maximumf %5, %6 : vector<384x128xf32>
    %8 = vector.shape_cast %7 : vector<384x128xf32> to vector<2x12x16x128xf32>
    %c0_6 = arith.constant 0 : index
    %c0_7 = arith.constant 0 : index
    %c0_8 = arith.constant 0 : index
    %c0_9 = arith.constant 0 : index
    %9 = vector.load %arg6[%c0_6, %c0_7, %c0_8, %c0_9] : memref<2x12x16x128xf32, #tpu.memory_space<vmem>>, vector<2x12x16x128xf32>
    tpu.vector_store %arg6[%c0_6, %c0_7, %c0_8, %c0_9], %8 {strides = array<i32>} : memref<2x12x16x128xf32, #tpu.memory_space<vmem>>, vector<2x12x16x128xf32>,
    %cst_10 = arith.constant 0.000000e+00 : f32
    %10 = vector.broadcast %cst_10 : f32 to vector<128x128xf32>
    %c0_11 = arith.constant 0 : index
    %c0_12 = arith.constant 0 : index
    %c0_13 = arith.constant 0 : index
    %c0_14 = arith.constant 0 : index
    %11 = vector.load %arg6[%c0_11, %c0_12, %c0_13, %c0_14] : memref<2x12x16x128xf32, #tpu.memory_space<vmem>>, vector<2x8x8x128xf32>
    %12 = vector.shape_cast %11 : vector<2x8x8x128xf32> to vector<128x128xf32>
    %13 = arith.truncf %12 : vector<128x128xf32> to vector<128x128xbf16>
    %c0_15 = arith.constant 0 : index
    %c0_16 = arith.constant 0 : index
    %c0_17 = arith.constant 0 : index
    %14 = vector.load %arg3[%c0_15, %c0_16, %c0_17] : memref<25x128x128xbf16, #tpu.memory_space<vmem>>, vector<1x128x128xbf16>
    %15 = vector.shape_cast %14 : vector<1x128x128xbf16> to vector<128x128xbf16>
    %cst_18 = arith.constant dense<0.000000e+00> : vector<128x128xf32>
    %16 = tpu.matmul %13, %15, %cst_18 {dimension_numbers = #tpu.dot_dimension_numbers<[1], [0], [0], [1], [0, 0, 1, 1], [], []>} : vector<128x128xbf16>, vector<128x128xbf16>, vector<128x128xf32> -> vector<128x128xf32>
    %17 = arith.addf %10, %16 : vector<128x128xf32>
    %c0_19 = arith.constant 0 : index
    %c0_20 = arith.constant 0 : index
    %c1 = arith.constant 1 : index
    %c0_21 = arith.constant 0 : index
    %18 = vector.load %arg6[%c0_19, %c0_20, %c1, %c0_21] : memref<2x12x16x128xf32, #tpu.memory_space<vmem>>, vector<2x8x8x128xf32>
    %19 = vector.shape_cast %18 : vector<2x8x8x128xf32> to vector<128x128xf32>
    %20 = arith.truncf %19 : vector<128x128xf32> to vector<128x128xbf16>
    %c1_22 = arith.constant 1 : index
    %c0_23 = arith.constant 0 : index
    %c0_24 = arith.constant 0 : index
    %21 = vector.load %arg3[%c1_22, %c0_23, %c0_24] : memref<25x128x128xbf16, #tpu.memory_space<vmem>>, vector<1x128x128xbf16>
    %22 = vector.shape_cast %21 : vector<1x128x128xbf16> to vector<128x128xbf16>
    %cst_25 = arith.constant dense<0.000000e+00> : vector<128x128xf32>
    %23 = tpu.matmul %20, %22, %cst_25 {dimension_numbers = #tpu.dot_dimension_numbers<[1], [0], [0], [1], [0, 0, 1, 1], [], []>} : vector<128x128xbf16>, vector<128x128xbf16>, vector<128x128xf32> -> vector<128x128xf32>
    %24 = arith.addf %17, %23 : vector<128x128xf32>
    %c0_26 = arith.constant 0 : index
    %c0_27 = arith.constant 0 : index
    %c2 = arith.constant 2 : index
    %c0_28 = arith.constant 0 : index
    %25 = vector.load %arg6[%c0_26, %c0_27, %c2, %c0_28] : memref<2x12x16x128xf32, #tpu.memory_space<vmem>>, vector<2x8x8x128xf32>
    %26 = vector.shape_cast %25 : vector<2x8x8x128xf32> to vector<128x128xf32>
    %27 = arith.truncf %26 : vector<128x128xf32> to vector<128x128xbf16>
    %c2_29 = arith.constant 2 : index
    %c0_30 = arith.constant 0 : index
    %c0_31 = arith.constant 0 : index
    %28 = vector.load %arg3[%c2_29, %c0_30, %c0_31] : memref<25x128x128xbf16, #tpu.memory_space<vmem>>, vector<1x128x128xbf16>
    %29 = vector.shape_cast %28 : vector<1x128x128xbf16> to vector<128x128xbf16>
    %cst_32 = arith.constant dense<0.000000e+00> : vector<128x128xf32>
    %30 = tpu.matmul %27, %29, %cst_32 {dimension_numbers = #tpu.dot_dimension_numbers<[1], [0], [0], [1], [0, 0, 1, 1], [], []>} : vector<128x128xbf16>, vector<128x128xbf16>, vector<128x128xf32> -> vector<128x128xf32>
    %31 = arith.addf %24, %30 : vector<128x128xf32>
    %c0_33 = arith.constant 0 : index
    %c0_34 = arith.constant 0 : index
    %c3 = arith.constant 3 : index
    %c0_35 = arith.constant 0 : index
    %32 = vector.load %arg6[%c0_33, %c0_34, %c3, %c0_35] : memref<2x12x16x128xf32, #tpu.memory_space<vmem>>, vector<2x8x8x128xf32>
    %33 = vector.shape_cast %32 : vector<2x8x8x128xf32> to vector<128x128xf32>
    %34 = arith.truncf %33 : vector<128x128xf32> to vector<128x128xbf16>
    %c3_36 = arith.constant 3 : index
    %c0_37 = arith.constant 0 : index
    %c0_38 = arith.constant 0 : index
    %35 = vector.load %arg3[%c3_36, %c0_37, %c0_38] : memref<25x128x128xbf16, #tpu.memory_space<vmem>>, vector<1x128x128xbf16>
    %36 = vector.shape_cast %35 : vector<1x128x128xbf16> to vector<128x128xbf16>
    %cst_39 = arith.constant dense<0.000000e+00> : vector<128x128xf32>
    %37 = tpu.matmul %34, %36, %cst_39 {dimension_numbers = #tpu.dot_dimension_numbers<[1], [0], [0], [1], [0, 0, 1, 1], [], []>} : vector<128x128xbf16>, vector<128x128xbf16>, vector<128x128xf32> -> vector<128x128xf32>
    %38 = arith.addf %31, %37 : vector<128x128xf32>
    %c0_40 = arith.constant 0 : index
    %c0_41 = arith.constant 0 : index
    %c4 = arith.constant 4 : index
    %c0_42 = arith.constant 0 : index
    %39 = vector.load %arg6[%c0_40, %c0_41, %c4, %c0_42] : memref<2x12x16x128xf32, #tpu.memory_space<vmem>>, vector<2x8x8x128xf32>
    %40 = vector.shape_cast %39 : vector<2x8x8x128xf32> to vector<128x128xf32>
    %41 = arith.truncf %40 : vector<128x128xf32> to vector<128x128xbf16>
    %c4_43 = arith.constant 4 : index
    %c0_44 = arith.constant 0 : index
    %c0_45 = arith.constant 0 : index
    %42 = vector.load %arg3[%c4_43, %c0_44, %c0_45] : memref<25x128x128xbf16, #tpu.memory_space<vmem>>, vector<1x128x128xbf16>
    %43 = vector.shape_cast %42 : vector<1x128x128xbf16> to vector<128x128xbf16>
    %cst_46 = arith.constant dense<0.000000e+00> : vector<128x128xf32>
    %44 = tpu.matmul %41, %43, %cst_46 {dimension_numbers = #tpu.dot_dimension_numbers<[1], [0], [0], [1], [0, 0, 1, 1], [], []>} : vector<128x128xbf16>, vector<128x128xbf16>, vector<128x128xf32> -> vector<128x128xf32>
    %45 = arith.addf %38, %44 : vector<128x128xf32>
    %c0_47 = arith.constant 0 : index
    %c1_48 = arith.constant 1 : index
    %c0_49 = arith.constant 0 : index
    %c0_50 = arith.constant 0 : index
    %46 = vector.load %arg6[%c0_47, %c1_48, %c0_49, %c0_50] : memref<2x12x16x128xf32, #tpu.memory_space<vmem>>, vector<2x8x8x128xf32>
    %47 = vector.shape_cast %46 : vector<2x8x8x128xf32> to vector<128x128xf32>
    %48 = arith.truncf %47 : vector<128x128xf32> to vector<128x128xbf16>
    %c5 = arith.constant 5 : index
    %c0_51 = arith.constant 0 : index
    %c0_52 = arith.constant 0 : index
    %49 = vector.load %arg3[%c5, %c0_51, %c0_52] : memref<25x128x128xbf16, #tpu.memory_space<vmem>>, vector<1x128x128xbf16>
    %50 = vector.shape_cast %49 : vector<1x128x128xbf16> to vector<128x128xbf16>
    %cst_53 = arith.constant dense<0.000000e+00> : vector<128x128xf32>
    %51 = tpu.matmul %48, %50, %cst_53 {dimension_numbers = #tpu.dot_dimension_numbers<[1], [0], [0], [1], [0, 0, 1, 1], [], []>} : vector<128x128xbf16>, vector<128x128xbf16>, vector<128x128xf32> -> vector<128x128xf32>
    %52 = arith.addf %45, %51 : vector<128x128xf32>
    %c0_54 = arith.constant 0 : index
    %c1_55 = arith.constant 1 : index
    %c1_56 = arith.constant 1 : index
    %c0_57 = arith.constant 0 : index
    %53 = vector.load %arg6[%c0_54, %c1_55, %c1_56, %c0_57] : memref<2x12x16x128xf32, #tpu.memory_space<vmem>>, vector<2x8x8x128xf32>
    %54 = vector.shape_cast %53 : vector<2x8x8x128xf32> to vector<128x128xf32>
    %55 = arith.truncf %54 : vector<128x128xf32> to vector<128x128xbf16>
    %c6 = arith.constant 6 : index
    %c0_58 = arith.constant 0 : index
    %c0_59 = arith.constant 0 : index
    %56 = vector.load %arg3[%c6, %c0_58, %c0_59] : memref<25x128x128xbf16, #tpu.memory_space<vmem>>, vector<1x128x128xbf16>
    %57 = vector.shape_cast %56 : vector<1x128x128xbf16> to vector<128x128xbf16>
    %cst_60 = arith.constant dense<0.000000e+00> : vector<128x128xf32>
    %58 = tpu.matmul %55, %57, %cst_60 {dimension_numbers = #tpu.dot_dimension_numbers<[1], [0], [0], [1], [0, 0, 1, 1], [], []>} : vector<128x128xbf16>, vector<128x128xbf16>, vector<128x128xf32> -> vector<128x128xf32>
    %59 = arith.addf %52, %58 : vector<128x128xf32>
    %c0_61 = arith.constant 0 : index
    %c1_62 = arith.constant 1 : index
    %c2_63 = arith.constant 2 : index
    %c0_64 = arith.constant 0 : index
    %60 = vector.load %arg6[%c0_61, %c1_62, %c2_63, %c0_64] : memref<2x12x16x128xf32, #tpu.memory_space<vmem>>, vector<2x8x8x128xf32>
    %61 = vector.shape_cast %60 : vector<2x8x8x128xf32> to vector<128x128xf32>
    %62 = arith.truncf %61 : vector<128x128xf32> to vector<128x128xbf16>
    %c7 = arith.constant 7 : index
    %c0_65 = arith.constant 0 : index
    %c0_66 = arith.constant 0 : index
    %63 = vector.load %arg3[%c7, %c0_65, %c0_66] : memref<25x128x128xbf16, #tpu.memory_space<vmem>>, vector<1x128x128xbf16>
    %64 = vector.shape_cast %63 : vector<1x128x128xbf16> to vector<128x128xbf16>
    %cst_67 = arith.constant dense<0.000000e+00> : vector<128x128xf32>
    %65 = tpu.matmul %62, %64, %cst_67 {dimension_numbers = #tpu.dot_dimension_numbers<[1], [0], [0], [1], [0, 0, 1, 1], [], []>} : vector<128x128xbf16>, vector<128x128xbf16>, vector<128x128xf32> -> vector<128x128xf32>
    %66 = arith.addf %59, %65 : vector<128x128xf32>
    %c0_68 = arith.constant 0 : index
    %c1_69 = arith.constant 1 : index
    %c3_70 = arith.constant 3 : index
    %c0_71 = arith.constant 0 : index
    %67 = vector.load %arg6[%c0_68, %c1_69, %c3_70, %c0_71] : memref<2x12x16x128xf32, #tpu.memory_space<vmem>>, vector<2x8x8x128xf32>
    %68 = vector.shape_cast %67 : vector<2x8x8x128xf32> to vector<128x128xf32>
    %69 = arith.truncf %68 : vector<128x128xf32> to vector<128x128xbf16>
    %c8 = arith.constant 8 : index
    %c0_72 = arith.constant 0 : index
    %c0_73 = arith.constant 0 : index
    %70 = vector.load %arg3[%c8, %c0_72, %c0_73] : memref<25x128x128xbf16, #tpu.memory_space<vmem>>, vector<1x128x128xbf16>
    %71 = vector.shape_cast %70 : vector<1x128x128xbf16> to vector<128x128xbf16>
    %cst_74 = arith.constant dense<0.000000e+00> : vector<128x128xf32>
    %72 = tpu.matmul %69, %71, %cst_74 {dimension_numbers = #tpu.dot_dimension_numbers<[1], [0], [0], [1], [0, 0, 1, 1], [], []>} : vector<128x128xbf16>, vector<128x128xbf16>, vector<128x128xf32> -> vector<128x128xf32>
    %73 = arith.addf %66, %72 : vector<128x128xf32>
    %c0_75 = arith.constant 0 : index
    %c1_76 = arith.constant 1 : index
    %c4_77 = arith.constant 4 : index
    %c0_78 = arith.constant 0 : index
    %74 = vector.load %arg6[%c0_75, %c1_76, %c4_77, %c0_78] : memref<2x12x16x128xf32, #tpu.memory_space<vmem>>, vector<2x8x8x128xf32>
    %75 = vector.shape_cast %74 : vector<2x8x8x128xf32> to vector<128x128xf32>
    %76 = arith.truncf %75 : vector<128x128xf32> to vector<128x128xbf16>
    %c9 = arith.constant 9 : index
    %c0_79 = arith.constant 0 : index
    %c0_80 = arith.constant 0 : index
    %77 = vector.load %arg3[%c9, %c0_79, %c0_80] : memref<25x128x128xbf16, #tpu.memory_space<vmem>>, vector<1x128x128xbf16>
    %78 = vector.shape_cast %77 : vector<1x128x128xbf16> to vector<128x128xbf16>
    %cst_81 = arith.constant dense<0.000000e+00> : vector<128x128xf32>
    %79 = tpu.matmul %76, %78, %cst_81 {dimension_numbers = #tpu.dot_dimension_numbers<[1], [0], [0], [1], [0, 0, 1, 1], [], []>} : vector<128x128xbf16>, vector<128x128xbf16>, vector<128x128xf32> -> vector<128x128xf32>
    %80 = arith.addf %73, %79 : vector<128x128xf32>
    %c0_82 = arith.constant 0 : index
    %c2_83 = arith.constant 2 : index
    %c0_84 = arith.constant 0 : index
    %c0_85 = arith.constant 0 : index
    %81 = vector.load %arg6[%c0_82, %c2_83, %c0_84, %c0_85] : memref<2x12x16x128xf32, #tpu.memory_space<vmem>>, vector<2x8x8x128xf32>
    %82 = vector.shape_cast %81 : vector<2x8x8x128xf32> to vector<128x128xf32>
    %83 = arith.truncf %82 : vector<128x128xf32> to vector<128x128xbf16>
    %c10 = arith.constant 10 : index
    %c0_86 = arith.constant 0 : index
    %c0_87 = arith.constant 0 : index
    %84 = vector.load %arg3[%c10, %c0_86, %c0_87] : memref<25x128x128xbf16, #tpu.memory_space<vmem>>, vector<1x128x128xbf16>
    %85 = vector.shape_cast %84 : vector<1x128x128xbf16> to vector<128x128xbf16>
    %cst_88 = arith.constant dense<0.000000e+00> : vector<128x128xf32>
    %86 = tpu.matmul %83, %85, %cst_88 {dimension_numbers = #tpu.dot_dimension_numbers<[1], [0], [0], [1], [0, 0, 1, 1], [], []>} : vector<128x128xbf16>, vector<128x128xbf16>, vector<128x128xf32> -> vector<128x128xf32>
    %87 = arith.addf %80, %86 : vector<128x128xf32>
    %c0_89 = arith.constant 0 : index
    %c2_90 = arith.constant 2 : index
    %c1_91 = arith.constant 1 : index
    %c0_92 = arith.constant 0 : index
    %88 = vector.load %arg6[%c0_89, %c2_90, %c1_91, %c0_92] : memref<2x12x16x128xf32, #tpu.memory_space<vmem>>, vector<2x8x8x128xf32>
    %89 = vector.shape_cast %88 : vector<2x8x8x128xf32> to vector<128x128xf32>
    %90 = arith.truncf %89 : vector<128x128xf32> to vector<128x128xbf16>
    %c11 = arith.constant 11 : index
    %c0_93 = arith.constant 0 : index
    %c0_94 = arith.constant 0 : index
    %91 = vector.load %arg3[%c11, %c0_93, %c0_94] : memref<25x128x128xbf16, #tpu.memory_space<vmem>>, vector<1x128x128xbf16>
    %92 = vector.shape_cast %91 : vector<1x128x128xbf16> to vector<128x128xbf16>
    %cst_95 = arith.constant dense<0.000000e+00> : vector<128x128xf32>
    %93 = tpu.matmul %90, %92, %cst_95 {dimension_numbers = #tpu.dot_dimension_numbers<[1], [0], [0], [1], [0, 0, 1, 1], [], []>} : vector<128x128xbf16>, vector<128x128xbf16>, vector<128x128xf32> -> vector<128x128xf32>
    %94 = arith.addf %87, %93 : vector<128x128xf32>
    %c0_96 = arith.constant 0 : index
    %c2_97 = arith.constant 2 : index
    %c2_98 = arith.constant 2 : index
    %c0_99 = arith.constant 0 : index
    %95 = vector.load %arg6[%c0_96, %c2_97, %c2_98, %c0_99] : memref<2x12x16x128xf32, #tpu.memory_space<vmem>>, vector<2x8x8x128xf32>
    %96 = vector.shape_cast %95 : vector<2x8x8x128xf32> to vector<128x128xf32>
    %97 = arith.truncf %96 : vector<128x128xf32> to vector<128x128xbf16>
    %c12 = arith.constant 12 : index
    %c0_100 = arith.constant 0 : index
    %c0_101 = arith.constant 0 : index
    %98 = vector.load %arg3[%c12, %c0_100, %c0_101] : memref<25x128x128xbf16, #tpu.memory_space<vmem>>, vector<1x128x128xbf16>
    %99 = vector.shape_cast %98 : vector<1x128x128xbf16> to vector<128x128xbf16>
    %cst_102 = arith.constant dense<0.000000e+00> : vector<128x128xf32>
    %100 = tpu.matmul %97, %99, %cst_102 {dimension_numbers = #tpu.dot_dimension_numbers<[1], [0], [0], [1], [0, 0, 1, 1], [], []>} : vector<128x128xbf16>, vector<128x128xbf16>, vector<128x128xf32> -> vector<128x128xf32>
    %101 = arith.addf %94, %100 : vector<128x128xf32>
    %c0_103 = arith.constant 0 : index
    %c2_104 = arith.constant 2 : index
    %c3_105 = arith.constant 3 : index
    %c0_106 = arith.constant 0 : index
    %102 = vector.load %arg6[%c0_103, %c2_104, %c3_105, %c0_106] : memref<2x12x16x128xf32, #tpu.memory_space<vmem>>, vector<2x8x8x128xf32>
    %103 = vector.shape_cast %102 : vector<2x8x8x128xf32> to vector<128x128xf32>
    %104 = arith.truncf %103 : vector<128x128xf32> to vector<128x128xbf16>
    %c13 = arith.constant 13 : index
    %c0_107 = arith.constant 0 : index
    %c0_108 = arith.constant 0 : index
    %105 = vector.load %arg3[%c13, %c0_107, %c0_108] : memref<25x128x128xbf16, #tpu.memory_space<vmem>>, vector<1x128x128xbf16>
    %106 = vector.shape_cast %105 : vector<1x128x128xbf16> to vector<128x128xbf16>
    %cst_109 = arith.constant dense<0.000000e+00> : vector<128x128xf32>
    %107 = tpu.matmul %104, %106, %cst_109 {dimension_numbers = #tpu.dot_dimension_numbers<[1], [0], [0], [1], [0, 0, 1, 1], [], []>} : vector<128x128xbf16>, vector<128x128xbf16>, vector<128x128xf32> -> vector<128x128xf32>
    %108 = arith.addf %101, %107 : vector<128x128xf32>
    %c0_110 = arith.constant 0 : index
    %c2_111 = arith.constant 2 : index
    %c4_112 = arith.constant 4 : index
    %c0_113 = arith.constant 0 : index
    %109 = vector.load %arg6[%c0_110, %c2_111, %c4_112, %c0_113] : memref<2x12x16x128xf32, #tpu.memory_space<vmem>>, vector<2x8x8x128xf32>
    %110 = vector.shape_cast %109 : vector<2x8x8x128xf32> to vector<128x128xf32>
    %111 = arith.truncf %110 : vector<128x128xf32> to vector<128x128xbf16>
    %c14 = arith.constant 14 : index
    %c0_114 = arith.constant 0 : index
    %c0_115 = arith.constant 0 : index
    %112 = vector.load %arg3[%c14, %c0_114, %c0_115] : memref<25x128x128xbf16, #tpu.memory_space<vmem>>, vector<1x128x128xbf16>
    %113 = vector.shape_cast %112 : vector<1x128x128xbf16> to vector<128x128xbf16>
    %cst_116 = arith.constant dense<0.000000e+00> : vector<128x128xf32>
    %114 = tpu.matmul %111, %113, %cst_116 {dimension_numbers = #tpu.dot_dimension_numbers<[1], [0], [0], [1], [0, 0, 1, 1], [], []>} : vector<128x128xbf16>, vector<128x128xbf16>, vector<128x128xf32> -> vector<128x128xf32>
    %115 = arith.addf %108, %114 : vector<128x128xf32>
    %c0_117 = arith.constant 0 : index
    %c3_118 = arith.constant 3 : index
    %c0_119 = arith.constant 0 : index
    %c0_120 = arith.constant 0 : index
    %116 = vector.load %arg6[%c0_117, %c3_118, %c0_119, %c0_120] : memref<2x12x16x128xf32, #tpu.memory_space<vmem>>, vector<2x8x8x128xf32>
    %117 = vector.shape_cast %116 : vector<2x8x8x128xf32> to vector<128x128xf32>
    %118 = arith.truncf %117 : vector<128x128xf32> to vector<128x128xbf16>
    %c15 = arith.constant 15 : index
    %c0_121 = arith.constant 0 : index
    %c0_122 = arith.constant 0 : index
    %119 = vector.load %arg3[%c15, %c0_121, %c0_122] : memref<25x128x128xbf16, #tpu.memory_space<vmem>>, vector<1x128x128xbf16>
    %120 = vector.shape_cast %119 : vector<1x128x128xbf16> to vector<128x128xbf16>
    %cst_123 = arith.constant dense<0.000000e+00> : vector<128x128xf32>
    %121 = tpu.matmul %118, %120, %cst_123 {dimension_numbers = #tpu.dot_dimension_numbers<[1], [0], [0], [1], [0, 0, 1, 1], [], []>} : vector<128x128xbf16>, vector<128x128xbf16>, vector<128x128xf32> -> vector<128x128xf32>
    %122 = arith.addf %115, %121 : vector<128x128xf32>
    %c0_124 = arith.constant 0 : index
    %c3_125 = arith.constant 3 : index
    %c1_126 = arith.constant 1 : index
    %c0_127 = arith.constant 0 : index
    %123 = vector.load %arg6[%c0_124, %c3_125, %c1_126, %c0_127] : memref<2x12x16x128xf32, #tpu.memory_space<vmem>>, vector<2x8x8x128xf32>
    %124 = vector.shape_cast %123 : vector<2x8x8x128xf32> to vector<128x128xf32>
    %125 = arith.truncf %124 : vector<128x128xf32> to vector<128x128xbf16>
    %c16 = arith.constant 16 : index
    %c0_128 = arith.constant 0 : index
    %c0_129 = arith.constant 0 : index
    %126 = vector.load %arg3[%c16, %c0_128, %c0_129] : memref<25x128x128xbf16, #tpu.memory_space<vmem>>, vector<1x128x128xbf16>
    %127 = vector.shape_cast %126 : vector<1x128x128xbf16> to vector<128x128xbf16>
    %cst_130 = arith.constant dense<0.000000e+00> : vector<128x128xf32>
    %128 = tpu.matmul %125, %127, %cst_130 {dimension_numbers = #tpu.dot_dimension_numbers<[1], [0], [0], [1], [0, 0, 1, 1], [], []>} : vector<128x128xbf16>, vector<128x128xbf16>, vector<128x128xf32> -> vector<128x128xf32>
    %129 = arith.addf %122, %128 : vector<128x128xf32>
    %c0_131 = arith.constant 0 : index
    %c3_132 = arith.constant 3 : index
    %c2_133 = arith.constant 2 : index
    %c0_134 = arith.constant 0 : index
    %130 = vector.load %arg6[%c0_131, %c3_132, %c2_133, %c0_134] : memref<2x12x16x128xf32, #tpu.memory_space<vmem>>, vector<2x8x8x128xf32>
    %131 = vector.shape_cast %130 : vector<2x8x8x128xf32> to vector<128x128xf32>
    %132 = arith.truncf %131 : vector<128x128xf32> to vector<128x128xbf16>
    %c17 = arith.constant 17 : index
    %c0_135 = arith.constant 0 : index
    %c0_136 = arith.constant 0 : index
    %133 = vector.load %arg3[%c17, %c0_135, %c0_136] : memref<25x128x128xbf16, #tpu.memory_space<vmem>>, vector<1x128x128xbf16>
    %134 = vector.shape_cast %133 : vector<1x128x128xbf16> to vector<128x128xbf16>
    %cst_137 = arith.constant dense<0.000000e+00> : vector<128x128xf32>
    %135 = tpu.matmul %132, %134, %cst_137 {dimension_numbers = #tpu.dot_dimension_numbers<[1], [0], [0], [1], [0, 0, 1, 1], [], []>} : vector<128x128xbf16>, vector<128x128xbf16>, vector<128x128xf32> -> vector<128x128xf32>
    %136 = arith.addf %129, %135 : vector<128x128xf32>
    %c0_138 = arith.constant 0 : index
    %c3_139 = arith.constant 3 : index
    %c3_140 = arith.constant 3 : index
    %c0_141 = arith.constant 0 : index
    %137 = vector.load %arg6[%c0_138, %c3_139, %c3_140, %c0_141] : memref<2x12x16x128xf32, #tpu.memory_space<vmem>>, vector<2x8x8x128xf32>
    %138 = vector.shape_cast %137 : vector<2x8x8x128xf32> to vector<128x128xf32>
    %139 = arith.truncf %138 : vector<128x128xf32> to vector<128x128xbf16>
    %c18 = arith.constant 18 : index
    %c0_142 = arith.constant 0 : index
    %c0_143 = arith.constant 0 : index
    %140 = vector.load %arg3[%c18, %c0_142, %c0_143] : memref<25x128x128xbf16, #tpu.memory_space<vmem>>, vector<1x128x128xbf16>
    %141 = vector.shape_cast %140 : vector<1x128x128xbf16> to vector<128x128xbf16>
    %cst_144 = arith.constant dense<0.000000e+00> : vector<128x128xf32>
    %142 = tpu.matmul %139, %141, %cst_144 {dimension_numbers = #tpu.dot_dimension_numbers<[1], [0], [0], [1], [0, 0, 1, 1], [], []>} : vector<128x128xbf16>, vector<128x128xbf16>, vector<128x128xf32> -> vector<128x128xf32>
    %143 = arith.addf %136, %142 : vector<128x128xf32>
    %c0_145 = arith.constant 0 : index
    %c3_146 = arith.constant 3 : index
    %c4_147 = arith.constant 4 : index
    %c0_148 = arith.constant 0 : index
    %144 = vector.load %arg6[%c0_145, %c3_146, %c4_147, %c0_148] : memref<2x12x16x128xf32, #tpu.memory_space<vmem>>, vector<2x8x8x128xf32>
    %145 = vector.shape_cast %144 : vector<2x8x8x128xf32> to vector<128x128xf32>
    %146 = arith.truncf %145 : vector<128x128xf32> to vector<128x128xbf16>
    %c19 = arith.constant 19 : index
    %c0_149 = arith.constant 0 : index
    %c0_150 = arith.constant 0 : index
    %147 = vector.load %arg3[%c19, %c0_149, %c0_150] : memref<25x128x128xbf16, #tpu.memory_space<vmem>>, vector<1x128x128xbf16>
    %148 = vector.shape_cast %147 : vector<1x128x128xbf16> to vector<128x128xbf16>
    %cst_151 = arith.constant dense<0.000000e+00> : vector<128x128xf32>
    %149 = tpu.matmul %146, %148, %cst_151 {dimension_numbers = #tpu.dot_dimension_numbers<[1], [0], [0], [1], [0, 0, 1, 1], [], []>} : vector<128x128xbf16>, vector<128x128xbf16>, vector<128x128xf32> -> vector<128x128xf32>
    %150 = arith.addf %143, %149 : vector<128x128xf32>
    %c0_152 = arith.constant 0 : index
    %c4_153 = arith.constant 4 : index
    %c0_154 = arith.constant 0 : index
    %c0_155 = arith.constant 0 : index
    %151 = vector.load %arg6[%c0_152, %c4_153, %c0_154, %c0_155] : memref<2x12x16x128xf32, #tpu.memory_space<vmem>>, vector<2x8x8x128xf32>
    %152 = vector.shape_cast %151 : vector<2x8x8x128xf32> to vector<128x128xf32>
    %153 = arith.truncf %152 : vector<128x128xf32> to vector<128x128xbf16>
    %c20 = arith.constant 20 : index
    %c0_156 = arith.constant 0 : index
    %c0_157 = arith.constant 0 : index
    %154 = vector.load %arg3[%c20, %c0_156, %c0_157] : memref<25x128x128xbf16, #tpu.memory_space<vmem>>, vector<1x128x128xbf16>
    %155 = vector.shape_cast %154 : vector<1x128x128xbf16> to vector<128x128xbf16>
    %cst_158 = arith.constant dense<0.000000e+00> : vector<128x128xf32>
    %156 = tpu.matmul %153, %155, %cst_158 {dimension_numbers = #tpu.dot_dimension_numbers<[1], [0], [0], [1], [0, 0, 1, 1], [], []>} : vector<128x128xbf16>, vector<128x128xbf16>, vector<128x128xf32> -> vector<128x128xf32>
    %157 = arith.addf %150, %156 : vector<128x128xf32>
    %c0_159 = arith.constant 0 : index
    %c4_160 = arith.constant 4 : index
    %c1_161 = arith.constant 1 : index
    %c0_162 = arith.constant 0 : index
    %158 = vector.load %arg6[%c0_159, %c4_160, %c1_161, %c0_162] : memref<2x12x16x128xf32, #tpu.memory_space<vmem>>, vector<2x8x8x128xf32>
    %159 = vector.shape_cast %158 : vector<2x8x8x128xf32> to vector<128x128xf32>
    %160 = arith.truncf %159 : vector<128x128xf32> to vector<128x128xbf16>
    %c21 = arith.constant 21 : index
    %c0_163 = arith.constant 0 : index
    %c0_164 = arith.constant 0 : index
    %161 = vector.load %arg3[%c21, %c0_163, %c0_164] : memref<25x128x128xbf16, #tpu.memory_space<vmem>>, vector<1x128x128xbf16>
    %162 = vector.shape_cast %161 : vector<1x128x128xbf16> to vector<128x128xbf16>
    %cst_165 = arith.constant dense<0.000000e+00> : vector<128x128xf32>
    %163 = tpu.matmul %160, %162, %cst_165 {dimension_numbers = #tpu.dot_dimension_numbers<[1], [0], [0], [1], [0, 0, 1, 1], [], []>} : vector<128x128xbf16>, vector<128x128xbf16>, vector<128x128xf32> -> vector<128x128xf32>
    %164 = arith.addf %157, %163 : vector<128x128xf32>
    %c0_166 = arith.constant 0 : index
    %c4_167 = arith.constant 4 : index
    %c2_168 = arith.constant 2 : index
    %c0_169 = arith.constant 0 : index
    %165 = vector.load %arg6[%c0_166, %c4_167, %c2_168, %c0_169] : memref<2x12x16x128xf32, #tpu.memory_space<vmem>>, vector<2x8x8x128xf32>
    %166 = vector.shape_cast %165 : vector<2x8x8x128xf32> to vector<128x128xf32>
    %167 = arith.truncf %166 : vector<128x128xf32> to vector<128x128xbf16>
    %c22 = arith.constant 22 : index
    %c0_170 = arith.constant 0 : index
    %c0_171 = arith.constant 0 : index
    %168 = vector.load %arg3[%c22, %c0_170, %c0_171] : memref<25x128x128xbf16, #tpu.memory_space<vmem>>, vector<1x128x128xbf16>
    %169 = vector.shape_cast %168 : vector<1x128x128xbf16> to vector<128x128xbf16>
    %cst_172 = arith.constant dense<0.000000e+00> : vector<128x128xf32>
    %170 = tpu.matmul %167, %169, %cst_172 {dimension_numbers = #tpu.dot_dimension_numbers<[1], [0], [0], [1], [0, 0, 1, 1], [], []>} : vector<128x128xbf16>, vector<128x128xbf16>, vector<128x128xf32> -> vector<128x128xf32>
    %171 = arith.addf %164, %170 : vector<128x128xf32>
    %c0_173 = arith.constant 0 : index
    %c4_174 = arith.constant 4 : index
    %c3_175 = arith.constant 3 : index
    %c0_176 = arith.constant 0 : index
    %172 = vector.load %arg6[%c0_173, %c4_174, %c3_175, %c0_176] : memref<2x12x16x128xf32, #tpu.memory_space<vmem>>, vector<2x8x8x128xf32>
    %173 = vector.shape_cast %172 : vector<2x8x8x128xf32> to vector<128x128xf32>
    %174 = arith.truncf %173 : vector<128x128xf32> to vector<128x128xbf16>
    %c23 = arith.constant 23 : index
    %c0_177 = arith.constant 0 : index
    %c0_178 = arith.constant 0 : index
    %175 = vector.load %arg3[%c23, %c0_177, %c0_178] : memref<25x128x128xbf16, #tpu.memory_space<vmem>>, vector<1x128x128xbf16>
    %176 = vector.shape_cast %175 : vector<1x128x128xbf16> to vector<128x128xbf16>
    %cst_179 = arith.constant dense<0.000000e+00> : vector<128x128xf32>
    %177 = tpu.matmul %174, %176, %cst_179 {dimension_numbers = #tpu.dot_dimension_numbers<[1], [0], [0], [1], [0, 0, 1, 1], [], []>} : vector<128x128xbf16>, vector<128x128xbf16>, vector<128x128xf32> -> vector<128x128xf32>
    %178 = arith.addf %171, %177 : vector<128x128xf32>
    %c0_180 = arith.constant 0 : index
    %c4_181 = arith.constant 4 : index
    %c4_182 = arith.constant 4 : index
    %c0_183 = arith.constant 0 : index
    %179 = vector.load %arg6[%c0_180, %c4_181, %c4_182, %c0_183] : memref<2x12x16x128xf32, #tpu.memory_space<vmem>>, vector<2x8x8x128xf32>
    %180 = vector.shape_cast %179 : vector<2x8x8x128xf32> to vector<128x128xf32>
    %181 = arith.truncf %180 : vector<128x128xf32> to vector<128x128xbf16>
    %c24 = arith.constant 24 : index
    %c0_184 = arith.constant 0 : index
    %c0_185 = arith.constant 0 : index
    %182 = vector.load %arg3[%c24, %c0_184, %c0_185] : memref<25x128x128xbf16, #tpu.memory_space<vmem>>, vector<1x128x128xbf16>
    %183 = vector.shape_cast %182 : vector<1x128x128xbf16> to vector<128x128xbf16>
    %cst_186 = arith.constant dense<0.000000e+00> : vector<128x128xf32>
    %184 = tpu.matmul %181, %183, %cst_186 {dimension_numbers = #tpu.dot_dimension_numbers<[1], [0], [0], [1], [0, 0, 1, 1], [], []>} : vector<128x128xbf16>, vector<128x128xbf16>, vector<128x128xf32> -> vector<128x128xf32>
    %185 = arith.addf %178, %184 : vector<128x128xf32>
    %c0_187 = arith.constant 0 : index
    %c0_188 = arith.constant 0 : index
    %186 = vector.load %arg4[%c0_187, %c0_188] : memref<1x128xf32, #tpu.memory_space<vmem>>, vector<1x128xf32>
    %187 = vector.broadcast %186 : vector<1x128xf32> to vector<128x128xf32>
    %188 = arith.addf %185, %187 : vector<128x128xf32>
    %cst_189 = arith.constant 0.000000e+00 : f32
    %189 = vector.broadcast %cst_189 : f32 to vector<128x128xf32>
    %190 = arith.maximumf %188, %189 : vector<128x128xf32>
    %c0_190 = arith.constant 0 : index
    %c0_191 = arith.constant 0 : index
    %191 = vector.load %arg5[%c0_190, %c0_191] : memref<128x128xf32, #tpu.memory_space<vmem>>, vector<128x128xf32>
    tpu.vector_store %arg5[%c0_190, %c0_191], %190 {strides = array<i32>} : memref<128x128xf32, #tpu.memory_space<vmem>>, vector<128x128xf32>,
    return
  }
}

</mosaic_0001>

<bundles_post_ra>
// kernel: forward.1
= control target key start
LH: loop header
LB: loop body
LE: loop exit
PB: predicated region body
PF: predicated region fallthrough
CT: control target
= control target key end

     0   :  { %s9409_s0 = inlined_call_operand.vmem [shape: bf16[384,128], index: 0, kind: input, shape index: {}]   ;;  %s9410_s1 = inlined_call_operand.vmem [shape: bf16[128,128], index: 1, kind: input, shape index: {}]   ;;  %s9411_s2 = inlined_call_operand.vmem [shape: f32[1,128], index: 2, kind: input, shape index: {}]   ;;  %s9412_s3 = inlined_call_operand.vmem [shape: bf16[25,128,128], index: 3, kind: input, shape index: {}]   ;;  %s9413_s4 = inlined_call_operand.vmem [shape: f32[1,128], index: 4, kind: input, shape index: {}]   ;;  %s9414_s5 = inlined_call_operand.hbm [shape: f32[128,128], index: 5, kind: output, shape index: {}]  }
   0x1   :  { %v7999_v0 = vld [vmem:[%s9410_s1] sm:$0xff]   ;;  %v8000_v1 = vld [vmem:[%s9410_s1 + $0x8] sm:$0xff]   ;;  %v8001_v2 = vld [vmem:[%s9410_s1 + $0x10] sm:$0xff]  }
   0x2   :  { %6748 = vmatprep.subr.bf16.mxu0 %v7999_v0  ;;  %v8002_v3 = vld [vmem:[%s9410_s1 + $0x18] sm:$0xff]   ;;  %v8007_v4 = vld [vmem:[%s9409_s0] sm:$0xff]   ;;  %v8004_v6 = vld [vmem:[%s9410_s1 + $0x28] sm:$0xff]  }
   0x3   :  { %6749 = vmatpush3.bf16.msra.mxu0 %v7999_v0  ;;  %6764 = vmatprep.mubr.bf16.mxu0 %v8007_v4  ;;  %v8003_v5 = vld [vmem:[%s9410_s1 + $0x20] sm:$0xff]   ;;  %v8005_v7 = vld [vmem:[%s9410_s1 + $0x30] sm:$0xff]   ;;  %v8006_v8 = vld [vmem:[%s9410_s1 + $0x38] sm:$0xff]  }
   0x4   :  { %6750 = vmatprep.subr.bf16.mxu0 %v8000_v1  ;;  %v8008_v9 = vld [vmem:[%s9409_s0 + $0x8] sm:$0xff]   ;;  %v8009_v10 = vld [vmem:[%s9409_s0 + $0x10] sm:$0xff]   ;;  %v8031_v11 = vld [vmem:[%s9412_s3 + $0x40] sm:$0xff]  }
   0x5   :  { %v8032_v12 = vld [vmem:[%s9412_s3 + $0x48] sm:$0xff]   ;;  %v8010_v13 = vld [vmem:[%s9409_s0 + $0x18] sm:$0xff]   ;;  %v8011_v14 = vld [vmem:[%s9409_s0 + $0x20] sm:$0xff]  }
   0x6   :  { %v8012_v15 = vld [vmem:[%s9409_s0 + $0x28] sm:$0xff]   ;;  %v8013_v16 = vld [vmem:[%s9409_s0 + $0x30] sm:$0xff]   ;;  %v8014_v17 = vld [vmem:[%s9409_s0 + $0x38] sm:$0xff]  }
   0x7   :  { %6751 = vmatpush3.bf16.msra.mxu0 %v8000_v1  ;;  %v8015_v18 = vld [vmem:[%s9409_s0 + $0x40] sm:$0xff]   ;;  %v8016_v19 = vld [vmem:[%s9409_s0 + $0x48] sm:$0xff]   ;;  %v8017_v20 = vld [vmem:[%s9409_s0 + $0x50] sm:$0xff]  }
   0x8   :  { %6752 = vmatprep.subr.bf16.mxu0 %v8001_v2  ;;  %v8018_v21 = vld [vmem:[%s9409_s0 + $0x58] sm:$0xff]   ;;  %v8019_v22 = vld [vmem:[%s9409_s0 + $0x60] sm:$0xff]   ;;  %v8020_v23 = vld [vmem:[%s9409_s0 + $0x68] sm:$0xff]  }
   0x9   :  { %v8021_v24 = vld [vmem:[%s9409_s0 + $0x70] sm:$0xff]   ;;  %v8022_v25 = vld [vmem:[%s9409_s0 + $0x78] sm:$0xff]   ;;  %v8023_v26 = vld [vmem:[%s9409_s0 + $0x80] sm:$0xff]  }
   0xa   :  { %v8024_v27 = vld [vmem:[%s9409_s0 + $0x88] sm:$0xff]   ;;  %v8025_v28 = vld [vmem:[%s9409_s0 + $0x90] sm:$0xff]   ;;  %v8026_v29 = vld [vmem:[%s9409_s0 + $0x98] sm:$0xff]  }
   0xb   :  { %6753 = vmatpush3.bf16.msra.mxu0 %v8001_v2  ;;  %v8027_v30 = vld [vmem:[%s9409_s0 + $0xa0] sm:$0xff]   ;;  %v8028_v31 = vld [vmem:[%s9409_s0 + $0xa8] sm:$0xff]   ;;  %v8029_v32 = vld [vmem:[%s9409_s0 + $0xb0] sm:$0xff]  }
   0xc   :  { %6754 = vmatprep.subr.bf16.mxu0 %v8002_v3  ;;  %v8030_v33 = vld [vmem:[%s9409_s0 + $0xb8] sm:$0xff]   ;;  %v8033_v34 = vld [vmem:[%s9412_s3 + $0x50] sm:$0xff]   ;;  %v8034_v35 = vld [vmem:[%s9412_s3 + $0x2c0] sm:$0xff]  }
   0xd   :  { %7164 = vmatprep.subr.bf16.mxu1 %v8034_v35  ;;  %v8035_v36 = vld [vmem:[%s9412_s3 + $0x58] sm:$0xff]   ;;  %v8036_v37 = vld [vmem:[%s9412_s3 + $0x2c8] sm:$0xff]   ;;  %v8037_v38 = vld [vmem:[%s9412_s3 + $0x60] sm:$0xff]  }
   0xe   :  { %7165 = vmatpush3.bf16.msra.mxu1 %v8034_v35  ;;  %v8038_v39 = vld [vmem:[%s9412_s3 + $0x2d0] sm:$0xff]   ;;  %v8039_v40 = vld [vmem:[%s9412_s3 + $0x68] sm:$0xff]   ;;  %v8040_v41 = vld [vmem:[%s9412_s3 + $0x2d8] sm:$0xff]  }
   0xf   :  { %6755 = vmatpush3.bf16.msra.mxu0 %v8002_v3  ;;  %7166 = vmatprep.subr.bf16.mxu1 %v8036_v37  ;;  %v8041_v42 = vld [vmem:[%s9412_s3 + $0x70] sm:$0xff]   ;;  %v8042_v43 = vld [vmem:[%s9412_s3 + $0x2e0] sm:$0xff]   ;;  %v8043_v44 = vld [vmem:[%s9412_s3 + $0x78] sm:$0xff]  }
  0x10   :  { %6756 = vmatprep.subr.bf16.mxu0 %v8003_v5  ;;  %v8044_v45 = vld [vmem:[%s9412_s3 + $0x2e8] sm:$0xff]   ;;  %v8045_v46 = vld [vmem:[%s9412_s3 + $0x2f0] sm:$0xff]   ;;  %v8046_v47 = vld [vmem:[%s9412_s3 + $0x2f8] sm:$0xff]  }
  0x12   :  { %7167 = vmatpush3.bf16.msra.mxu1 %v8036_v37 }
  0x13   :  { %6757 = vmatpush3.bf16.msra.mxu0 %v8003_v5  ;;  %7168 = vmatprep.subr.bf16.mxu1 %v8038_v39 }
  0x14   :  { %6758 = vmatprep.subr.bf16.mxu0 %v8004_v6 }
  0x16   :  { %7169 = vmatpush3.bf16.msra.mxu1 %v8038_v39 }
  0x17   :  { %6759 = vmatpush3.bf16.msra.mxu0 %v8004_v6  ;;  %7170 = vmatprep.subr.bf16.mxu1 %v8040_v41 }
  0x18   :  { %6760 = vmatprep.subr.bf16.mxu0 %v8005_v7 }
  0x1a   :  { %7171 = vmatpush3.bf16.msra.mxu1 %v8040_v41 }
  0x1b   :  { %6761 = vmatpush3.bf16.msra.mxu0 %v8005_v7  ;;  %7172 = vmatprep.subr.bf16.mxu1 %v8042_v43 }
  0x1c   :  { %6762 = vmatprep.subr.bf16.mxu0 %v8006_v8 }
  0x1e   :  { %7173 = vmatpush3.bf16.msra.mxu1 %v8042_v43 }
  0x1f   :  { %6763 = vmatpush3.bf16.msra.mxu0 %v8006_v8  ;;  %7174 = vmatprep.subr.bf16.mxu1 %v8044_v45 }
  0x20   :  { %6812 = vmatprep.subr.bf16.mxu0 %v8031_v11 }
  0x22   :  { %6765 = vmatmul.mubr.bf16.vlgmr.msra.gmra.mrb[0].mxu0 %v8008_v9  ;;  %7175 = vmatpush3.bf16.msra.mxu1 %v8044_v45 }
  0x23   :  { %6768 = vmatprep.mubr.bf16.mxu0 %v8009_v10  ;;  %6813 = vmatpush3.bf16.msra.mxu0 %v8031_v11 }
  0x24   :  { %6814 = vmatprep.subr.bf16.mxu0 %v8032_v12  ;;  %7176 = vmatprep.subr.bf16.mxu1 %v8045_v46 }
  0x26   :  { %7177 = vmatpush3.bf16.msra.mxu1 %v8045_v46 }
  0x27   :  { %6815 = vmatpush3.bf16.msra.mxu0 %v8032_v12  ;;  %7178 = vmatprep.subr.bf16.mxu1 %v8046_v47 }
  0x28   :  { %6816 = vmatprep.subr.bf16.mxu0 %v8033_v34 }
  0x2a   :  { %6769 = vmatmul.mubr.bf16.gmra.mrb[4].mxu0 %v8010_v13  ;;  %7179 = vmatpush3.bf16.msra.mxu1 %v8046_v47 }
  0x2b   :  { %6772 = vmatprep.mubr.bf16.mxu0 %v8011_v14  ;;  %6817 = vmatpush3.bf16.msra.mxu0 %v8033_v34 }
  0x2c   :  { %6818 = vmatprep.subr.bf16.mxu0 %v8035_v36 }
  0x2f   :  { %6819 = vmatpush3.bf16.msra.mxu0 %v8035_v36 }
  0x30   :  { %6820 = vmatprep.subr.bf16.mxu0 %v8037_v38 }
  0x32   :  { %6773 = vmatmul.mubr.bf16.gmra.mrb[8].mxu0 %v8012_v15 }
  0x33   :  { %6776 = vmatprep.mubr.bf16.mxu0 %v8013_v16  ;;  %6821 = vmatpush3.bf16.msra.mxu0 %v8037_v38 }
  0x34   :  { %6822 = vmatprep.subr.bf16.mxu0 %v8039_v40 }
  0x37   :  { %6823 = vmatpush3.bf16.msra.mxu0 %v8039_v40 }
  0x38   :  { %6824 = vmatprep.subr.bf16.mxu0 %v8041_v42 }
  0x3a   :  { %6777 = vmatmul.mubr.bf16.gmra.mrb[12].mxu0 %v8014_v17 }
  0x3b   :  { %6780 = vmatprep.mubr.bf16.mxu0 %v8015_v18  ;;  %6825 = vmatpush3.bf16.msra.mxu0 %v8041_v42 }
  0x3c   :  { %6826 = vmatprep.subr.bf16.mxu0 %v8043_v44 }
  0x3f   :  { %6827 = vmatpush3.bf16.msra.mxu0 %v8043_v44 }
  0x42   :  { %6781 = vmatmul.mubr.bf16.gmra.mrb[16].mxu0 %v8016_v19 }
  0x43   :  { %6784 = vmatprep.mubr.bf16.mxu0 %v8017_v20 }
  0x4a   :  { %6785 = vmatmul.mubr.bf16.gmra.mrb[20].mxu0 %v8018_v21 }
  0x4b   :  { %6788 = vmatprep.mubr.bf16.mxu0 %v8019_v22 }
  0x52   :  { %6789 = vmatmul.mubr.bf16.gmra.mrb[24].mxu0 %v8020_v23 }
  0x53   :  { %6792 = vmatprep.mubr.bf16.mxu0 %v8021_v24 }
  0x5a   :  { %6793 = vmatmul.mubr.bf16.gmra.mrb[28].mxu0 %v8022_v25 }
  0x5b   :  { %6796 = vmatprep.mubr.bf16.mxu0 %v8023_v26 }
  0x62   :  { %6797 = vmatmul.mubr.bf16.gmra.mrb[32].mxu0 %v8024_v27 }
  0x63   :  { %6800 = vmatprep.mubr.bf16.mxu0 %v8025_v28 }
  0x6a   :  { %6801 = vmatmul.mubr.bf16.gmra.mrb[36].mxu0 %v8026_v29 }
  0x6b   :  { %6804 = vmatprep.mubr.bf16.mxu0 %v8027_v30 }
  0x72   :  { %6805 = vmatmul.mubr.bf16.gmra.mrb[40].mxu0 %v8028_v31 }
  0x73   :  { %6808 = vmatprep.mubr.bf16.mxu0 %v8029_v32 }
  0x7a   :  { %6809 = vmatmul.mubr.bf16.gmra.mrb[44].mxu0 %v8030_v33 }
  0x7b   :  { %10 = vsyncpa [#allocation4], 0  ;;  %v8445_v48 = vld [vmem:[%s9412_s3] sm:$0xff]   ;;  %v8048_v33 = vld [vmem:[%s9412_s3 + $0x8] sm:$0xff]  }
  0x7c   :  { %6844 = vmatprep.subr.bf16.mxu0 %v8445_v48  ;;  %v8451_v49 = vld [vmem:[%s9412_s3 + $0x300] sm:$0xff]   ;;  %v8050_v43 = vld [vmem:[%s9412_s3 + $0x10] sm:$0xff]  }
  0x7d   :  { %7196 = vmatprep.subr.bf16.mxu1 %v8451_v49  ;;  %v8457_v50 = vld [vmem:[%s9411_s2] ss:$0 sm:$0xff] }
  0xf5   :  { %v6766_v51 = vpop.f32.mrb[0].mxu0 }
  0xf6   :  { %v328_v52 = vadd.f32 %v6766_v51, %v8457_v50  ;;  %v319_v53 = vpop.f32.mrb[1].mxu0 }
  0xf7   :  { %v320_v54 = vadd.f32 %v8457_v50, %v319_v53  ;;  %v6767_v55 = vpop.f32.mrb[2].mxu0  ;;  %v8051_v53 = vld [vmem:[%s9412_s3 + $0x308] sm:$0xff]  }
  0xf8   :  { %v512_v56 = vmax.f32 %v328_v52, 0.0  ;;  %v331_v57 = vadd.f32 %v6767_v55, %v8457_v50  ;;  %v322_v58 = vpop.f32.mrb[3].mxu0 }
  0xf9   :  { %v510_v59 = vmax.f32 %v320_v54, 0.0  ;;  %v323_v60 = vadd.f32 %v8457_v50, %v322_v58  ;;  %v8052_v54 = vld [vmem:[%s9412_s3 + $0x18] sm:$0xff]  }
  0xfa   :  { %560 = vst [vmem:[#allocation2 + $0x10] sm:$0xff] %v512_v56  ;;  %v513_v61 = vmax.f32 %v331_v57, 0.0 }
  0xfb   :  { %558 = vst [vmem:[#allocation2] sm:$0xff] %v510_v59  ;;  %v511_v62 = vmax.f32 %v323_v60, 0.0  ;;  %v8463_v63 = vpack.c.bf16 %v512_v56, %v510_v59 }
  0xfc   :  { %561 = vst [vmem:[#allocation2 + $0x18] sm:$0xff] %v513_v61 }
  0xfd   :  { %559 = vst [vmem:[#allocation2 + $0x8] sm:$0xff] %v511_v62  ;;  %v6770_v0 = vpop.f32.mrb[4].mxu0 }
  0xfe   :  { %v344_v1 = vadd.f32 %v6770_v0, %v8457_v50  ;;  %v335_v2 = vpop.f32.mrb[5].mxu0 }
  0xff   :  { %v336_v3 = vadd.f32 %v8457_v50, %v335_v2  ;;  %v6771_v4 = vpop.f32.mrb[6].mxu0  ;;  %v8054_v2 = vld [vmem:[%s9412_s3 + $0x20] sm:$0xff]  }
 0x100   :  { %v516_v5 = vmax.f32 %v344_v1, 0.0  ;;  %v347_v6 = vadd.f32 %v6771_v4, %v8457_v50  ;;  %v338_v7 = vpop.f32.mrb[7].mxu0  ;;  %v8053_v1 = vld [vmem:[%s9412_s3 + $0x310] sm:$0xff]  }
 0x101   :  { %v514_v8 = vmax.f32 %v336_v3, 0.0  ;;  %v339_v9 = vadd.f32 %v8457_v50, %v338_v7 }
 0x102   :  { %564 = vst [vmem:[#allocation2 + $0x30] sm:$0xff] %v516_v5  ;;  %v517_v10 = vmax.f32 %v347_v6, 0.0 }
 0x103   :  { %562 = vst [vmem:[#allocation2 + $0x20] sm:$0xff] %v514_v8  ;;  %v515_v11 = vmax.f32 %v339_v9, 0.0  ;;  %v647_v12 = vld [vmem:[#allocation2 + $0x11] sm:$0xff]  ;;  %v8469_v13 = vpack.c.bf16 %v516_v5, %v514_v8  ;;  %v8055_v8 = vld [vmem:[%s9412_s3 + $0x318] sm:$0xff]  }
 0x104   :  { %565 = vst [vmem:[#allocation2 + $0x38] sm:$0xff] %v517_v10  ;;  %v646_v14 = vld [vmem:[#allocation2 + $0x1] sm:$0xff]  ;;  %v8056_v9 = vld [vmem:[%s9412_s3 + $0x28] sm:$0xff]  }
 0x105   :  { %563 = vst [vmem:[#allocation2 + $0x28] sm:$0xff] %v515_v11  ;;  %v6774_v15 = vpop.f32.mrb[8].mxu0  ;;  %v662_v16 = vpack.c.bf16 %v647_v12, %v646_v14 }
 0x106   :  { %v360_v17 = vadd.f32 %v6774_v15, %v8457_v50  ;;  %v351_v18 = vpop.f32.mrb[9].mxu0 }
 0x107   :  { %v352_v19 = vadd.f32 %v8457_v50, %v351_v18  ;;  %v6775_v20 = vpop.f32.mrb[10].mxu0  ;;  %6828 = vmatprep.mubr.bf16.mxu0 %v662_v16 }
 0x108   :  { %v520_v21 = vmax.f32 %v360_v17, 0.0  ;;  %v363_v22 = vadd.f32 %v6775_v20, %v8457_v50  ;;  %v354_v23 = vpop.f32.mrb[11].mxu0 }
 0x109   :  { %v518_v24 = vmax.f32 %v352_v19, 0.0  ;;  %v355_v25 = vadd.f32 %v8457_v50, %v354_v23  ;;  %v8058_v23 = vld [vmem:[%s9412_s3 + $0x30] sm:$0xff]  }
 0x10a   :  { %568 = vst [vmem:[#allocation2 + $0x50] sm:$0xff] %v520_v21  ;;  %v521_v26 = vmax.f32 %v363_v22, 0.0  ;;  %v8057_v22 = vld [vmem:[%s9412_s3 + $0x320] sm:$0xff]  }
 0x10b   :  { %566 = vst [vmem:[#allocation2 + $0x40] sm:$0xff] %v518_v24  ;;  %v519_v27 = vmax.f32 %v355_v25, 0.0  ;;  %v649_v28 = vld [vmem:[#allocation2 + $0x31] sm:$0xff]  ;;  %v8475_v29 = vpack.c.bf16 %v520_v21, %v518_v24 }
 0x10c   :  { %569 = vst [vmem:[#allocation2 + $0x58] sm:$0xff] %v521_v26  ;;  %v648_v30 = vld [vmem:[#allocation2 + $0x21] sm:$0xff] }
 0x10d   :  { %567 = vst [vmem:[#allocation2 + $0x48] sm:$0xff] %v519_v27  ;;  %v6778_v31 = vpop.f32.mrb[12].mxu0  ;;  %v663_v32 = vpack.c.bf16 %v649_v28, %v648_v30 }
 0x10e   :  { %v376_v34 = vadd.f32 %v6778_v31, %v8457_v50  ;;  %v367_v35 = vpop.f32.mrb[13].mxu0 }
 0x10f   :  { %v368_v36 = vadd.f32 %v8457_v50, %v367_v35  ;;  %v6779_v37 = vpop.f32.mrb[14].mxu0  ;;  %6829 = vmatmul.mubr.bf16.vlgmr.msra.gmra.mrb[48].mxu0 %v663_v32  ;;  %7180 = vmatprep.mubr.bf16.mxu1 %v663_v32  ;;  %v8059_v32 = vld [vmem:[%s9412_s3 + $0x328] sm:$0xff]  }
 0x110   :  { %v524_v38 = vmax.f32 %v376_v34, 0.0  ;;  %v379_v39 = vadd.f32 %v6779_v37, %v8457_v50  ;;  %v370_v40 = vpop.f32.mrb[15].mxu0  ;;  %6845 = vmatpush3.bf16.msra.mxu0 %v8445_v48 }
 0x111   :  { %v522_v41 = vmax.f32 %v368_v36, 0.0  ;;  %v371_v42 = vadd.f32 %v8457_v50, %v370_v40  ;;  %6846 = vmatprep.subr.bf16.mxu0 %v8048_v33 }
 0x112   :  { %572 = vst [vmem:[#allocation2 + $0x70] sm:$0xff] %v524_v38  ;;  %v525_v44 = vmax.f32 %v379_v39, 0.0 }
 0x113   :  { %570 = vst [vmem:[#allocation2 + $0x60] sm:$0xff] %v522_v41  ;;  %v523_v45 = vmax.f32 %v371_v42, 0.0  ;;  %v651_v46 = vld [vmem:[#allocation2 + $0x51] sm:$0xff]  ;;  %v8488_v47 = vpack.c.bf16 %v524_v38, %v522_v41 }
 0x114   :  { %573 = vst [vmem:[#allocation2 + $0x78] sm:$0xff] %v525_v44  ;;  %v650_v51 = vld [vmem:[#allocation2 + $0x41] sm:$0xff]  ;;  %6847 = vmatpush3.bf16.msra.mxu0 %v8048_v33 }
 0x115   :  { %571 = vst [vmem:[#allocation2 + $0x68] sm:$0xff] %v523_v45  ;;  %v6782_v48 = vpop.f32.mrb[16].mxu0  ;;  %v664_v52 = vpack.c.bf16 %v651_v46, %v650_v51  ;;  %6848 = vmatprep.subr.bf16.mxu0 %v8050_v43  ;;  %v8060_v33 = vld [vmem:[%s9412_s3 + $0x38] sm:$0xff]   ;;  %v8061_v45 = vld [vmem:[%s9412_s3 + $0x330] sm:$0xff]   ;;  %v8549_v46 = vld [vmem:[%s9412_s3 + $0x80] sm:$0xff]  }
 0x116   :  { %v392_v55 = vadd.f32 %v6782_v48, %v8457_v50  ;;  %v383_v56 = vpop.f32.mrb[17].mxu0 }
 0x117   :  { %v384_v57 = vadd.f32 %v8457_v50, %v383_v56  ;;  %v6783_v58 = vpop.f32.mrb[18].mxu0  ;;  %6832 = vmatprep.mubr.bf16.mxu0 %v664_v52  ;;  %7181 = vmatmul.mubr.bf16.vlgmr.msra.gmra.mrb[0].mxu1 %v664_v52 }
 0x118   :  { %v528_v59 = vmax.f32 %v392_v55, 0.0  ;;  %v395_v60 = vadd.f32 %v6783_v58, %v8457_v50  ;;  %v386_v61 = vpop.f32.mrb[19].mxu0  ;;  %7197 = vmatpush3.bf16.msra.mxu1 %v8451_v49  ;;  %6849 = vmatpush3.bf16.msra.mxu0 %v8050_v43  ;;  %v8063_v55 = vld [vmem:[%s9412_s3 + $0x338] sm:$0xff]  }
 0x119   :  { %v526_v62 = vmax.f32 %v384_v57, 0.0  ;;  %v387_v0 = vadd.f32 %v8457_v50, %v386_v61  ;;  %7198 = vmatprep.subr.bf16.mxu1 %v8051_v53  ;;  %6850 = vmatprep.subr.bf16.mxu0 %v8052_v54 }
 0x11a   :  { %576 = vst [vmem:[#allocation2 + $0x90] sm:$0xff] %v528_v59  ;;  %v529_v3 = vmax.f32 %v395_v60, 0.0 }
 0x11b   :  { %574 = vst [vmem:[#allocation2 + $0x80] sm:$0xff] %v526_v62  ;;  %v527_v4 = vmax.f32 %v387_v0, 0.0  ;;  %v653_v5 = vld [vmem:[#allocation2 + $0x71] sm:$0xff] }
 0x11c   :  { %577 = vst [vmem:[#allocation2 + $0x98] sm:$0xff] %v529_v3  ;;  %v652_v49 = vld [vmem:[#allocation2 + $0x61] sm:$0xff]  ;;  %7199 = vmatpush3.bf16.msra.mxu1 %v8051_v53  ;;  %6851 = vmatpush3.bf16.msra.mxu0 %v8052_v54  ;;  %v8518_v19 = vld [vmem:[#allocation2 + $0x74] sm:$0xff] }
 0x11d   :  { %575 = vst [vmem:[#allocation2 + $0x88] sm:$0xff] %v527_v4  ;;  %v6786_v6 = vpop.f32.mrb[20].mxu0  ;;  %v665_v7 = vpack.c.bf16 %v653_v5, %v652_v49  ;;  %7200 = vmatprep.subr.bf16.mxu1 %v8053_v1  ;;  %6852 = vmatprep.subr.bf16.mxu0 %v8054_v2  ;;  %v8516_v18 = vld [vmem:[#allocation2 + $0x64] sm:$0xff] }
 0x11e   :  { %v408_v10 = vadd.f32 %v6786_v6, %v8457_v50  ;;  %v399_v11 = vpop.f32.mrb[21].mxu0  ;;  %v5442_v24 = vpack.c.bf16 %v8518_v19, %v8516_v18 }
 0x11f   :  { %v400_v12 = vadd.f32 %v8457_v50, %v399_v11  ;;  %v6787_v14 = vpop.f32.mrb[22].mxu0  ;;  %6833 = vmatmul.mubr.bf16.gmra.mrb[52].mxu0 %v665_v7  ;;  %7184 = vmatprep.mubr.bf16.mxu1 %v665_v7 }
 0x120   :  { %v532_v15 = vmax.f32 %v408_v10, 0.0  ;;  %v411_v16 = vadd.f32 %v6787_v14, %v8457_v50  ;;  %v402_v17 = vpop.f32.mrb[23].mxu0  ;;  %7201 = vmatpush3.bf16.msra.mxu1 %v8053_v1  ;;  %6853 = vmatpush3.bf16.msra.mxu0 %v8054_v2  ;;  %v8566_v2 = vld [vmem:[%s9412_s3 + $0x340] sm:$0xff]  }
 0x121   :  { %v530_v20 = vmax.f32 %v400_v12, 0.0  ;;  %v403_v21 = vadd.f32 %v8457_v50, %v402_v17  ;;  %7202 = vmatprep.subr.bf16.mxu1 %v8055_v8  ;;  %6854 = vmatprep.subr.bf16.mxu0 %v8056_v9 }
 0x122   :  { %580 = vst [vmem:[#allocation2 + $0xb0] sm:$0xff] %v532_v15  ;;  %v533_v25 = vmax.f32 %v411_v16, 0.0 }
 0x123   :  { %578 = vst [vmem:[#allocation2 + $0xa0] sm:$0xff] %v530_v20  ;;  %v531_v26 = vmax.f32 %v403_v21, 0.0  ;;  %v2804_v27 = vld [vmem:[#allocation2 + $0x91] sm:$0xff] }
 0x124   :  { %581 = vst [vmem:[#allocation2 + $0xb8] sm:$0xff] %v533_v25  ;;  %v2803_v28 = vld [vmem:[#allocation2 + $0x81] sm:$0xff]  ;;  %7203 = vmatpush3.bf16.msra.mxu1 %v8055_v8  ;;  %6855 = vmatpush3.bf16.msra.mxu0 %v8056_v9  ;;  %v8540_v42 = vld [vmem:[#allocation2 + $0x94] sm:$0xff] }
 0x125   :  { %579 = vst [vmem:[#allocation2 + $0xa8] sm:$0xff] %v531_v26  ;;  %v6790_v30 = vpop.f32.mrb[24].mxu0  ;;  %v2816_v31 = vpack.c.bf16 %v2804_v27, %v2803_v28  ;;  %7204 = vmatprep.subr.bf16.mxu1 %v8057_v22  ;;  %6856 = vmatprep.subr.bf16.mxu0 %v8058_v23  ;;  %v8538_v41 = vld [vmem:[#allocation2 + $0x84] sm:$0xff] }
 0x126   :  { %v424_v34 = vadd.f32 %v6790_v30, %v8457_v50  ;;  %v415_v35 = vpop.f32.mrb[25].mxu0  ;;  %v5443_v51 = vpack.c.bf16 %v8540_v42, %v8538_v41 }
 0x127   :  { %v416_v36 = vadd.f32 %v8457_v50, %v415_v35  ;;  %v6791_v37 = vpop.f32.mrb[26].mxu0  ;;  %7185 = vmatmul.mubr.bf16.gmra.mrb[4].mxu1 %v2816_v31 }
 0x128   :  { %v536_v38 = vmax.f32 %v424_v34, 0.0  ;;  %v427_v39 = vadd.f32 %v6791_v37, %v8457_v50  ;;  %v418_v40 = vpop.f32.mrb[27].mxu0  ;;  %7205 = vmatpush3.bf16.msra.mxu1 %v8057_v22  ;;  %6857 = vmatpush3.bf16.msra.mxu0 %v8058_v23 }
 0x129   :  { %v534_v43 = vmax.f32 %v416_v36, 0.0  ;;  %v419_v44 = vadd.f32 %v8457_v50, %v418_v40  ;;  %7206 = vmatprep.subr.bf16.mxu1 %v8059_v32  ;;  %6858 = vmatprep.subr.bf16.mxu0 %v8060_v33 }
 0x12a   :  { %584 = vst [vmem:[#allocation2 + $0xd0] sm:$0xff] %v536_v38  ;;  %v537_v48 = vmax.f32 %v427_v39, 0.0 }
 0x12b   :  { %582 = vst [vmem:[#allocation2 + $0xc0] sm:$0xff] %v534_v43  ;;  %v535_v52 = vmax.f32 %v419_v44, 0.0  ;;  %v8553_v53 = vpack.c.bf16 %v536_v38, %v534_v43 }
 0x12c   :  { %585 = vst [vmem:[#allocation2 + $0xd8] sm:$0xff] %v537_v48  ;;  %7207 = vmatpush3.bf16.msra.mxu1 %v8059_v32  ;;  %6859 = vmatpush3.bf16.msra.mxu0 %v8060_v33 }
 0x12d   :  { %583 = vst [vmem:[#allocation2 + $0xc8] sm:$0xff] %v535_v52  ;;  %v6794_v54 = vpop.f32.mrb[28].mxu0  ;;  %7208 = vmatprep.subr.bf16.mxu1 %v8061_v45  ;;  %6876 = vmatprep.subr.bf16.mxu0 %v8549_v46 }
 0x12e   :  { %v440_v56 = vadd.f32 %v6794_v54, %v8457_v50  ;;  %v431_v57 = vpop.f32.mrb[29].mxu0 }
 0x12f   :  { %v432_v58 = vadd.f32 %v8457_v50, %v431_v57  ;;  %v6795_v59 = vpop.f32.mrb[30].mxu0 }
 0x130   :  { %v540_v60 = vmax.f32 %v440_v56, 0.0  ;;  %v443_v61 = vadd.f32 %v6795_v59, %v8457_v50  ;;  %v434_v62 = vpop.f32.mrb[31].mxu0  ;;  %7209 = vmatpush3.bf16.msra.mxu1 %v8061_v45 }
 0x131   :  { %v538_v0 = vmax.f32 %v432_v58, 0.0  ;;  %v435_v1 = vadd.f32 %v8457_v50, %v434_v62  ;;  %7210 = vmatprep.subr.bf16.mxu1 %v8063_v55 }
 0x132   :  { %588 = vst [vmem:[#allocation2 + $0xf0] sm:$0xff] %v540_v60  ;;  %v541_v3 = vmax.f32 %v443_v61, 0.0 }
 0x133   :  { %586 = vst [vmem:[#allocation2 + $0xe0] sm:$0xff] %v538_v0  ;;  %v539_v4 = vmax.f32 %v435_v1, 0.0  ;;  %v655_v5 = vld [vmem:[#allocation2 + $0xd1] sm:$0xff]  ;;  %v8568_v49 = vpack.c.bf16 %v540_v60, %v538_v0 }
 0x134   :  { %589 = vst [vmem:[#allocation2 + $0xf8] sm:$0xff] %v541_v3  ;;  %v654_v6 = vld [vmem:[#allocation2 + $0xc1] sm:$0xff]  ;;  %7211 = vmatpush3.bf16.msra.mxu1 %v8063_v55 }
 0x135   :  { %587 = vst [vmem:[#allocation2 + $0xe8] sm:$0xff] %v539_v4  ;;  %v6798_v7 = vpop.f32.mrb[32].mxu0  ;;  %v666_v8 = vpack.c.bf16 %v655_v5, %v654_v6  ;;  %7228 = vmatprep.subr.bf16.mxu1 %v8566_v2 }
 0x136   :  { %v456_v9 = vadd.f32 %v6798_v7, %v8457_v50  ;;  %v447_v10 = vpop.f32.mrb[33].mxu0 }
 0x137   :  { %v448_v11 = vadd.f32 %v8457_v50, %v447_v10  ;;  %v6799_v12 = vpop.f32.mrb[34].mxu0  ;;  %6836 = vmatprep.mubr.bf16.mxu0 %v666_v8 }
 0x138   :  { %v544_v14 = vmax.f32 %v456_v9, 0.0  ;;  %v459_v15 = vadd.f32 %v6799_v12, %v8457_v50  ;;  %v450_v16 = vpop.f32.mrb[35].mxu0 }
 0x139   :  { %v542_v17 = vmax.f32 %v448_v11, 0.0  ;;  %v451_v20 = vadd.f32 %v8457_v50, %v450_v16 }
 0x13a   :  { %592 = vst [vmem:[#allocation2 + $0x110] sm:$0xff] %v544_v14  ;;  %v545_v21 = vmax.f32 %v459_v15, 0.0 }
 0x13b   :  { %590 = vst [vmem:[#allocation2 + $0x100] sm:$0xff] %v542_v17  ;;  %v543_v22 = vmax.f32 %v451_v20, 0.0  ;;  %v657_v23 = vld [vmem:[#allocation2 + $0xf1] sm:$0xff]  ;;  %v8575_v25 = vpack.c.bf16 %v544_v14, %v542_v17 }
 0x13c   :  { %593 = vst [vmem:[#allocation2 + $0x118] sm:$0xff] %v545_v21  ;;  %v656_v26 = vld [vmem:[#allocation2 + $0xe1] sm:$0xff] }
 0x13d   :  { %591 = vst [vmem:[#allocation2 + $0x108] sm:$0xff] %v543_v22  ;;  %v6802_v27 = vpop.f32.mrb[36].mxu0  ;;  %v667_v28 = vpack.c.bf16 %v657_v23, %v656_v26 }
 0x13e   :  { %v472_v30 = vadd.f32 %v6802_v27, %v8457_v50  ;;  %v463_v31 = vpop.f32.mrb[37].mxu0 }
 0x13f   :  { %v464_v32 = vadd.f32 %v8457_v50, %v463_v31  ;;  %v6803_v33 = vpop.f32.mrb[38].mxu0  ;;  %6837 = vmatmul.mubr.bf16.gmra.mrb[56].mxu0 %v667_v28  ;;  %7188 = vmatprep.mubr.bf16.mxu1 %v667_v28 }
 0x140   :  { %v548_v34 = vmax.f32 %v472_v30, 0.0  ;;  %v475_v35 = vadd.f32 %v6803_v33, %v8457_v50  ;;  %v466_v36 = vpop.f32.mrb[39].mxu0  ;;  %v3000_v33 = vld [vmem:[#allocation2 + $0x32] sm:$0xff] }
 0x141   :  { %v546_v37 = vmax.f32 %v464_v32, 0.0  ;;  %v467_v38 = vadd.f32 %v8457_v50, %v466_v36  ;;  %v2999_v32 = vld [vmem:[#allocation2 + $0x22] sm:$0xff] }
 0x142   :  { %596 = vst [vmem:[#allocation2 + $0x130] sm:$0xff] %v548_v34  ;;  %v549_v39 = vmax.f32 %v475_v35, 0.0 }
 0x143   :  { %594 = vst [vmem:[#allocation2 + $0x120] sm:$0xff] %v546_v37  ;;  %v547_v40 = vmax.f32 %v467_v38, 0.0  ;;  %v659_v43 = vld [vmem:[#allocation2 + $0x111] sm:$0xff]  ;;  %v8581_v44 = vpack.c.bf16 %v548_v34, %v546_v37  ;;  %v8066_v37 = vld [vmem:[%s9412_s3 + $0x90] sm:$0xff]  }
 0x144   :  { %597 = vst [vmem:[#allocation2 + $0x138] sm:$0xff] %v549_v39  ;;  %v658_v45 = vld [vmem:[#allocation2 + $0x101] sm:$0xff]  ;;  %v8588_v62 = vld [vmem:[#allocation2 + $0x114] sm:$0xff] }
 0x145   :  { %595 = vst [vmem:[#allocation2 + $0x128] sm:$0xff] %v547_v40  ;;  %v6806_v48 = vpop.f32.mrb[40].mxu0  ;;  %v668_v52 = vpack.c.bf16 %v659_v43, %v658_v45  ;;  %v8586_v61 = vld [vmem:[#allocation2 + $0x104] sm:$0xff]  ;;  %v8064_v34 = vld [vmem:[%s9412_s3 + $0x88] sm:$0xff]  }
 0x146   :  { %v488_v54 = vadd.f32 %v6806_v48, %v8457_v50  ;;  %v479_v55 = vpop.f32.mrb[41].mxu0  ;;  %v5445_v3 = vpack.c.bf16 %v8588_v62, %v8586_v61  ;;  %v3001_v38 = vld [vmem:[#allocation2 + $0x42] sm:$0xff]  ;;  %v3002_v39 = vld [vmem:[#allocation2 + $0x52] sm:$0xff] }
 0x147   :  { %v480_v56 = vadd.f32 %v8457_v50, %v479_v55  ;;  %v6807_v57 = vpop.f32.mrb[42].mxu0  ;;  %6840 = vmatprep.mubr.bf16.mxu0 %v668_v52  ;;  %7189 = vmatmul.mubr.bf16.gmra.mrb[8].mxu1 %v668_v52  ;;  %v3004_v40 = vld [vmem:[#allocation2 + $0x72] sm:$0xff]  ;;  %v8068_v45 = vld [vmem:[%s9412_s3 + $0x98] sm:$0xff]   ;;  %v8069_v52 = vld [vmem:[%s9412_s3 + $0x350] sm:$0xff]  }
 0x148   :  { %v552_v58 = vmax.f32 %v488_v54, 0.0  ;;  %v491_v59 = vadd.f32 %v6807_v57, %v8457_v50  ;;  %v482_v60 = vpop.f32.mrb[43].mxu0  ;;  %v8067_v43 = vld [vmem:[%s9412_s3 + $0x348] sm:$0xff]   ;;  %v3005_v54 = vld [vmem:[#allocation2 + $0x82] sm:$0xff] }
 0x149   :  { %v550_v0 = vmax.f32 %v480_v56, 0.0  ;;  %v483_v1 = vadd.f32 %v8457_v50, %v482_v60  ;;  %v3006_v55 = vld [vmem:[#allocation2 + $0x92] sm:$0xff]  ;;  %v3007_v56 = vld [vmem:[#allocation2 + $0xe2] sm:$0xff] }
 0x14a   :  { %600 = vst [vmem:[#allocation2 + $0x150] sm:$0xff] %v552_v58  ;;  %v553_v4 = vmax.f32 %v491_v59, 0.0  ;;  %v8071_v57 = vld [vmem:[%s9412_s3 + $0x358] sm:$0xff]   ;;  %v8072_v58 = vld [vmem:[%s9412_s3 + $0xa8] sm:$0xff]   ;;  %v8073_v60 = vld [vmem:[%s9412_s3 + $0x360] sm:$0xff]  }
 0x14b   :  { %598 = vst [vmem:[#allocation2 + $0x140] sm:$0xff] %v550_v0  ;;  %v551_v5 = vmax.f32 %v483_v1, 0.0  ;;  %v661_v6 = vld [vmem:[#allocation2 + $0x131] sm:$0xff]  ;;  %v8074_v0 = vld [vmem:[%s9412_s3 + $0xb0] sm:$0xff]  }
 0x14c   :  { %601 = vst [vmem:[#allocation2 + $0x158] sm:$0xff] %v553_v4  ;;  %v660_v7 = vld [vmem:[#allocation2 + $0x121] sm:$0xff]  ;;  %v8599_v21 = vld [vmem:[#allocation2 + $0x134] sm:$0xff] }
 0x14d   :  { %599 = vst [vmem:[#allocation2 + $0x148] sm:$0xff] %v551_v5  ;;  %v6810_v8 = vpop.f32.mrb[44].mxu0  ;;  %v669_v9 = vpack.c.bf16 %v661_v6, %v660_v7  ;;  %v8597_v20 = vld [vmem:[#allocation2 + $0x124] sm:$0xff]  ;;  %v3010_v1 = vld [vmem:[#allocation2 + $0x112] sm:$0xff] }
 0x14e   :  { %v504_v10 = vadd.f32 %v6810_v8, %v8457_v50  ;;  %v495_v11 = vpop.f32.mrb[45].mxu0  ;;  %v5446_v26 = vpack.c.bf16 %v8599_v21, %v8597_v20  ;;  %v977_v4 = vld [vmem:[#allocation2 + $0x2] sm:$0xff]  ;;  %v978_v5 = vld [vmem:[#allocation2 + $0x12] sm:$0xff] }
 0x14f   :  { %v496_v12 = vadd.f32 %v8457_v50, %v495_v11  ;;  %v6811_v14 = vpop.f32.mrb[46].mxu0  ;;  %6841 = vmatmul.mubr.bf16.gmra.mrb[60].mxu0 %v669_v9  ;;  %7192 = vmatprep.mubr.bf16.mxu1 %v669_v9  ;;  %v3011_v6 = vld [vmem:[#allocation2 + $0x122] sm:$0xff]  ;;  %v993_v8 = vpack.c.bf16 %v978_v5, %v977_v4  ;;  %v8075_v9 = vld [vmem:[%s9412_s3 + $0x368] sm:$0xff]  }
 0x150   :  { %v556_v15 = vmax.f32 %v504_v10, 0.0  ;;  %v507_v16 = vadd.f32 %v6811_v14, %v8457_v50  ;;  %v498_v17 = vpop.f32.mrb[47].mxu0  ;;  %6860 = vmatprep.mubr.bf16.mxu0 %v8463_v63  ;;  %v8076_v10 = vld [vmem:[%s9412_s3 + $0xb8] sm:$0xff]   ;;  %v8078_v14 = vld [vmem:[%s9412_s3 + $0xc0] sm:$0xff]  }
 0x151   :  { %v554_v22 = vmax.f32 %v496_v12, 0.0  ;;  %v499_v23 = vadd.f32 %v8457_v50, %v498_v17  ;;  %v8608_v50 = vpack.c.bf16 %v3000_v33, %v2999_v32  ;;  %v8077_v12 = vld [vmem:[%s9412_s3 + $0x370] sm:$0xff]   ;;  %v3204_v33 = vld [vmem:[#allocation2 + $0x53] sm:$0xff] }
 0x152   :  { %604 = vst [vmem:[#allocation2 + $0x170] sm:$0xff] %v556_v15  ;;  %v557_v27 = vmax.f32 %v507_v16, 0.0  ;;  %v3201_v17 = vld [vmem:[#allocation2 + $0x23] sm:$0xff]  ;;  %v3214_v5 = vld [vmem:[#allocation2 + $0x133] sm:$0xff] }
 0x153   :  { %602 = vst [vmem:[#allocation2 + $0x160] sm:$0xff] %v554_v22  ;;  %v555_v28 = vmax.f32 %v499_v23, 0.0  ;;  %v2812_v30 = vld [vmem:[#allocation2 + $0x151] sm:$0xff]  ;;  %v8079_v23 = vld [vmem:[%s9412_s3 + $0x378] sm:$0xff]  }
 0x154   :  { %605 = vst [vmem:[#allocation2 + $0x178] sm:$0xff] %v557_v27  ;;  %v2811_v31 = vld [vmem:[#allocation2 + $0x141] sm:$0xff]  ;;  %v8614_v36 = vld [vmem:[#allocation2 + $0x154] sm:$0xff] }
 0x155   :  { %603 = vst [vmem:[#allocation2 + $0x168] sm:$0xff] %v555_v28  ;;  %v2820_v63 = vpack.c.bf16 %v2812_v30, %v2811_v31  ;;  %v8612_v35 = vld [vmem:[#allocation2 + $0x144] sm:$0xff]  ;;  %v3014_v15 = vld [vmem:[#allocation2 + $0x152] sm:$0xff] }
 0x156   :  { %v3202_v22 = vld [vmem:[#allocation2 + $0x33] sm:$0xff]  ;;  %v8082_v31 = vld [vmem:[%s9412_s3 + $0xd0] sm:$0xff]  }
 0x157   :  { %6861 = vmatmul.mubr.bf16.vlgmr.msra.gmra.mrb[48].mxu0 %v8469_v13  ;;  %7193 = vmatmul.mubr.bf16.gmra.mrb[12].mxu1 %v2820_v63  ;;  %v5447_v13 = vpack.c.bf16 %v8614_v36, %v8612_v35  ;;  %v8080_v27 = vld [vmem:[%s9412_s3 + $0xc8] sm:$0xff]   ;;  %v8686_v28 = vpack.c.bf16 %v3202_v22, %v3201_v17  ;;  %v8081_v30 = vld [vmem:[%s9412_s3 + $0x380] sm:$0xff]   ;;  %v3203_v32 = vld [vmem:[#allocation2 + $0x43] sm:$0xff] }
 0x158   :  { %6864 = vmatprep.mubr.bf16.mxu0 %v8475_v29  ;;  %6877 = vmatpush3.bf16.msra.mxu0 %v8549_v46  ;;  %v3003_v29 = vld [vmem:[#allocation2 + $0x62] sm:$0xff]  ;;  %v8622_v46 = vpack.c.bf16 %v3002_v39, %v3001_v38  ;;  %v3206_v38 = vld [vmem:[#allocation2 + $0x73] sm:$0xff] }
 0x159   :  { %7212 = vmatprep.mubr.bf16.mxu1 %v8608_v50  ;;  %6878 = vmatprep.subr.bf16.mxu0 %v8064_v34  ;;  %v8632_v48 = vpack.c.bf16 %v3004_v40, %v3003_v29  ;;  %v985_v63 = vld [vmem:[#allocation2 + $0xc2] sm:$0xff]  ;;  %v8083_v39 = vld [vmem:[%s9412_s3 + $0x388] sm:$0xff]  }
 0x15a   :  { %v8084_v40 = vld [vmem:[%s9412_s3 + $0xd8] sm:$0xff]   ;;  %v8096_v17 = vld [vmem:[%s9412_s3 + $0x108] sm:$0xff]  }
 0x15b   :  { %v3213_v4 = vld [vmem:[#allocation2 + $0x123] sm:$0xff]  ;;  %v5440_v18 = vld [vmem:[#allocation2 + $0x174] sm:$0xff] }
 0x15c   :  { %6879 = vmatpush3.bf16.msra.mxu0 %v8064_v34  ;;  %v986_v34 = vld [vmem:[#allocation2 + $0xd2] sm:$0xff] }
 0x15d   :  { %6880 = vmatprep.subr.bf16.mxu0 %v8066_v37  ;;  %v997_v29 = vpack.c.bf16 %v986_v34, %v985_v63  ;;  %v3407_v63 = vld [vmem:[#allocation2 + $0x64] sm:$0xff]  ;;  %v3408_v34 = vld [vmem:[#allocation2 + $0x74] sm:$0xff] }
 0x15f   :  { %6865 = vmatmul.mubr.bf16.gmra.mrb[52].mxu0 %v8488_v47  ;;  %7213 = vmatmul.mubr.bf16.vlgmr.msra.gmra.mrb[0].mxu1 %v8622_v46  ;;  %v8070_v47 = vld [vmem:[%s9412_s3 + $0xa0] sm:$0xff]  }
 0x160   :  { %7229 = vmatpush3.bf16.msra.mxu1 %v8566_v2  ;;  %6868 = vmatprep.mubr.bf16.mxu0 %v8553_v53  ;;  %v3008_v2 = vld [vmem:[#allocation2 + $0xf2] sm:$0xff]  ;;  %v3018_v53 = vpack.c.bf16 %v3006_v55, %v3005_v54  ;;  %v3209_v54 = vld [vmem:[#allocation2 + $0xe3] sm:$0xff] }
 0x161   :  { %6881 = vmatpush3.bf16.msra.mxu0 %v8066_v37  ;;  %7216 = vmatprep.mubr.bf16.mxu1 %v8632_v48  ;;  %v8650_v59 = vpack.c.bf16 %v3008_v2, %v3007_v56  ;;  %v3205_v37 = vld [vmem:[#allocation2 + $0x63] sm:$0xff]  ;;  %v3210_v55 = vld [vmem:[#allocation2 + $0xf3] sm:$0xff] }
 0x162   :  { %7230 = vmatprep.subr.bf16.mxu1 %v8067_v43  ;;  %6882 = vmatprep.subr.bf16.mxu0 %v8068_v45  ;;  %v8087_v56 = vld [vmem:[%s9412_s3 + $0x398] sm:$0xff]   ;;  %v8088_v2 = vld [vmem:[%s9412_s3 + $0xe8] sm:$0xff]  }
 0x164   :  { %7231 = vmatpush3.bf16.msra.mxu1 %v8067_v43  ;;  %v8085_v43 = vld [vmem:[%s9412_s3 + $0x390] sm:$0xff]  }
 0x165   :  { %6883 = vmatpush3.bf16.msra.mxu0 %v8068_v45  ;;  %7232 = vmatprep.subr.bf16.mxu1 %v8069_v52  ;;  %v8086_v45 = vld [vmem:[%s9412_s3 + $0xe0] sm:$0xff]  }
 0x166   :  { %6884 = vmatprep.subr.bf16.mxu0 %v8070_v47 }
 0x167   :  { %6869 = vmatmul.mubr.bf16.gmra.mrb[56].mxu0 %v8568_v49  ;;  %7217 = vmatmul.mubr.bf16.gmra.mrb[4].mxu1 %v3018_v53  ;;  %v3009_v49 = vld [vmem:[#allocation2 + $0x102] sm:$0xff]  ;;  %v8722_v53 = vpack.c.bf16 %v3210_v55, %v3209_v54  ;;  %v8104_v54 = vld [vmem:[%s9412_s3 + $0x128] sm:$0xff]  }
 0x168   :  { %7233 = vmatpush3.bf16.msra.mxu1 %v8069_v52  ;;  %6872 = vmatprep.mubr.bf16.mxu0 %v8575_v25  ;;  %v3012_v25 = vld [vmem:[#allocation2 + $0x132] sm:$0xff]  ;;  %v8660_v7 = vpack.c.bf16 %v3010_v1, %v3009_v49  ;;  %v3207_v52 = vld [vmem:[#allocation2 + $0x83] sm:$0xff] }
 0x169   :  { %6885 = vmatpush3.bf16.msra.mxu0 %v8070_v47  ;;  %7220 = vmatprep.mubr.bf16.mxu1 %v8650_v59  ;;  %v8670_v11 = vpack.c.bf16 %v3012_v25, %v3011_v6  ;;  %v3208_v47 = vld [vmem:[#allocation2 + $0x93] sm:$0xff] }
 0x16a   :  { %7234 = vmatprep.subr.bf16.mxu1 %v8071_v57  ;;  %6886 = vmatprep.subr.bf16.mxu0 %v8072_v58  ;;  %v1180_v49 = vld [vmem:[#allocation2 + $0x13] sm:$0xff] }
 0x16b   :  { %v8091_v6 = vld [vmem:[%s9412_s3 + $0x3a8] sm:$0xff]  }
 0x16c   :  { %7235 = vmatpush3.bf16.msra.mxu1 %v8071_v57  ;;  %v8089_v57 = vld [vmem:[%s9412_s3 + $0x3a0] sm:$0xff]  }
 0x16d   :  { %6887 = vmatpush3.bf16.msra.mxu0 %v8072_v58  ;;  %7236 = vmatprep.subr.bf16.mxu1 %v8073_v60  ;;  %v8090_v58 = vld [vmem:[%s9412_s3 + $0xf0] sm:$0xff]  }
 0x16e   :  { %6888 = vmatprep.subr.bf16.mxu0 %v8074_v0 }
 0x16f   :  { %6873 = vmatmul.mubr.bf16.gmra.mrb[60].mxu0 %v8581_v44  ;;  %7221 = vmatmul.mubr.bf16.gmra.mrb[8].mxu1 %v8660_v7  ;;  %v3013_v44 = vld [vmem:[#allocation2 + $0x142] sm:$0xff] }
 0x170   :  { %7237 = vmatpush3.bf16.msra.mxu1 %v8073_v60  ;;  %6892 = vmatprep.mubr.bf16.mxu0 %v993_v8  ;;  %v3022_v16 = vpack.c.bf16 %v3014_v15, %v3013_v44  ;;  %v3211_v60 = vld [vmem:[#allocation2 + $0x103] sm:$0xff]  ;;  %v8742_v8 = vpack.c.bf16 %v3214_v5, %v3213_v4  ;;  %v3404_v15 = vld [vmem:[#allocation2 + $0x34] sm:$0xff] }
 0x171   :  { %6889 = vmatpush3.bf16.msra.mxu0 %v8074_v0  ;;  %7224 = vmatprep.mubr.bf16.mxu1 %v8670_v11  ;;  %v3212_v0 = vld [vmem:[#allocation2 + $0x113] sm:$0xff]  ;;  %v3403_v44 = vld [vmem:[#allocation2 + $0x24] sm:$0xff] }
 0x172   :  { %7238 = vmatprep.subr.bf16.mxu1 %v8075_v9  ;;  %6890 = vmatprep.subr.bf16.mxu0 %v8076_v10  ;;  %v8732_v1 = vpack.c.bf16 %v3212_v0, %v3211_v60  ;;  %v8758_v22 = vpack.c.bf16 %v3404_v15, %v3403_v44  ;;  %v1382_v60 = vld [vmem:[#allocation2 + $0x14] sm:$0xff]  ;;  %v8108_v5 = vld [vmem:[%s9412_s3 + $0x138] sm:$0xff]  }
 0x173   :  { %v8112_v44 = vld [vmem:[%s9412_s3 + $0x148] sm:$0xff]  }
 0x174   :  { %7239 = vmatpush3.bf16.msra.mxu1 %v8075_v9  ;;  %v8093_v9 = vld [vmem:[%s9412_s3 + $0x3b0] sm:$0xff]  }
 0x175   :  { %6891 = vmatpush3.bf16.msra.mxu0 %v8076_v10  ;;  %7240 = vmatprep.subr.bf16.mxu1 %v8077_v12  ;;  %v8094_v10 = vld [vmem:[%s9412_s3 + $0x100] sm:$0xff]  }
 0x176   :  { %6908 = vmatprep.subr.bf16.mxu0 %v8078_v14 }
 0x177   :  { %7225 = vmatmul.mubr.bf16.gmra.mrb[12].mxu1 %v3022_v16  ;;  %v8095_v16 = vld [vmem:[%s9412_s3 + $0x3b8] sm:$0xff]  }
 0x178   :  { %6893 = vmatmul.mubr.bf16.vlgmr.msra.gmra.mrb[48].mxu0 %v8608_v50  ;;  %7241 = vmatpush3.bf16.msra.mxu1 %v8077_v12  ;;  %v8696_v50 = vpack.c.bf16 %v3204_v33, %v3203_v32  ;;  %v3215_v12 = vld [vmem:[#allocation2 + $0x143] sm:$0xff]  ;;  %v1188_v32 = vld [vmem:[#allocation2 + $0xd3] sm:$0xff] }
 0x179   :  { %6896 = vmatprep.mubr.bf16.mxu0 %v8622_v46  ;;  %6909 = vmatpush3.bf16.msra.mxu0 %v8078_v14  ;;  %v8706_v46 = vpack.c.bf16 %v3206_v38, %v3205_v37  ;;  %v3216_v14 = vld [vmem:[#allocation2 + $0x153] sm:$0xff]  ;;  %v8100_v38 = vld [vmem:[%s9412_s3 + $0x118] sm:$0xff]  }
 0x17a   :  { %7244 = vmatprep.mubr.bf16.mxu1 %v8686_v28  ;;  %7242 = vmatprep.subr.bf16.mxu1 %v8079_v23 }
 0x17b   :  { %6910 = vmatprep.subr.bf16.mxu0 %v8080_v27 }
 0x17c   :  { %7243 = vmatpush3.bf16.msra.mxu1 %v8079_v23  ;;  %v8097_v23 = vld [vmem:[%s9412_s3 + $0x3c0] sm:$0xff]  }
 0x17d   :  { %6911 = vmatpush3.bf16.msra.mxu0 %v8080_v27  ;;  %7260 = vmatprep.subr.bf16.mxu1 %v8081_v30  ;;  %v8098_v27 = vld [vmem:[%s9412_s3 + $0x110] sm:$0xff]  }
 0x17e   :  { %6912 = vmatprep.subr.bf16.mxu0 %v8082_v31 }
 0x17f   :  { %7245 = vmatmul.mubr.bf16.vlgmr.msra.gmra.mrb[0].mxu1 %v8696_v50 }
 0x180   :  { %6897 = vmatmul.mubr.bf16.gmra.mrb[52].mxu0 %v8632_v48  ;;  %7261 = vmatpush3.bf16.msra.mxu1 %v8081_v30  ;;  %v3220_v48 = vpack.c.bf16 %v3208_v47, %v3207_v52  ;;  %v3405_v30 = vld [vmem:[#allocation2 + $0x44] sm:$0xff]  ;;  %v3412_v47 = vld [vmem:[#allocation2 + $0xf4] sm:$0xff] }
 0x181   :  { %6900 = vmatprep.mubr.bf16.mxu0 %v997_v29  ;;  %6913 = vmatpush3.bf16.msra.mxu0 %v8082_v31  ;;  %v3406_v31 = vld [vmem:[#allocation2 + $0x54] sm:$0xff]  ;;  %v8101_v29 = vld [vmem:[%s9412_s3 + $0x3d0] sm:$0xff]  }
 0x182   :  { %7248 = vmatprep.mubr.bf16.mxu1 %v8706_v46  ;;  %7262 = vmatprep.subr.bf16.mxu1 %v8083_v39  ;;  %v8768_v33 = vpack.c.bf16 %v3406_v31, %v3405_v30  ;;  %v3411_v52 = vld [vmem:[#allocation2 + $0xe4] sm:$0xff]  ;;  %v1390_v30 = vld [vmem:[#allocation2 + $0xd4] sm:$0xff] }
 0x183   :  { %6914 = vmatprep.subr.bf16.mxu0 %v8084_v40  ;;  %v8794_v55 = vpack.c.bf16 %v3412_v47, %v3411_v52  ;;  %v8120_v52 = vld [vmem:[%s9412_s3 + $0x168] sm:$0xff]  }
 0x184   :  { %7263 = vmatpush3.bf16.msra.mxu1 %v8083_v39  ;;  %v8778_v39 = vpack.c.bf16 %v3408_v34, %v3407_v63  ;;  %v3610_v63 = vld [vmem:[#allocation2 + $0x70] sm:$0xff]  ;;  %v8116_v34 = vld [vmem:[%s9412_s3 + $0x158] sm:$0xff]  }
 0x185   :  { %6915 = vmatpush3.bf16.msra.mxu0 %v8084_v40  ;;  %7264 = vmatprep.subr.bf16.mxu1 %v8085_v43  ;;  %v8102_v40 = vld [vmem:[%s9412_s3 + $0x120] sm:$0xff]  }
 0x186   :  { %6916 = vmatprep.subr.bf16.mxu0 %v8086_v45 }
 0x187   :  { %7249 = vmatmul.mubr.bf16.gmra.mrb[4].mxu1 %v3220_v48  ;;  %v8103_v48 = vld [vmem:[%s9412_s3 + $0x3d8] sm:$0xff]  }
 0x188   :  { %6901 = vmatmul.mubr.bf16.gmra.mrb[56].mxu0 %v8650_v59  ;;  %7265 = vmatpush3.bf16.msra.mxu1 %v8085_v43  ;;  %v1179_v59 = vld [vmem:[#allocation2 + $0x3] sm:$0xff] }
 0x189   :  { %6904 = vmatprep.mubr.bf16.mxu0 %v8660_v7  ;;  %6917 = vmatpush3.bf16.msra.mxu0 %v8086_v45  ;;  %v1195_v25 = vpack.c.bf16 %v1180_v49, %v1179_v59  ;;  %v8092_v7 = vld [vmem:[%s9412_s3 + $0xf8] sm:$0xff]   ;;  %v3410_v45 = vld [vmem:[#allocation2 + $0x94] sm:$0xff] }
 0x18a   :  { %7252 = vmatprep.mubr.bf16.mxu1 %v8722_v53  ;;  %7266 = vmatprep.subr.bf16.mxu1 %v8087_v56  ;;  %v3409_v43 = vld [vmem:[#allocation2 + $0x84] sm:$0xff]  ;;  %v3416_v49 = vld [vmem:[#allocation2 + $0x134] sm:$0xff] }
 0x18b   :  { %6918 = vmatprep.subr.bf16.mxu0 %v8088_v2  ;;  %v3415_v59 = vld [vmem:[#allocation2 + $0x124] sm:$0xff] }
 0x18c   :  { %7267 = vmatpush3.bf16.msra.mxu1 %v8087_v56  ;;  %v8105_v56 = vld [vmem:[%s9412_s3 + $0x3e0] sm:$0xff]  }
 0x18d   :  { %6919 = vmatpush3.bf16.msra.mxu0 %v8088_v2  ;;  %7268 = vmatprep.subr.bf16.mxu1 %v8089_v57  ;;  %v8106_v2 = vld [vmem:[%s9412_s3 + $0x130] sm:$0xff]  }
 0x18e   :  { %6920 = vmatprep.subr.bf16.mxu0 %v8090_v58 }
 0x18f   :  { %7253 = vmatmul.mubr.bf16.gmra.mrb[8].mxu1 %v8732_v1 }
 0x190   :  { %6905 = vmatmul.mubr.bf16.gmra.mrb[60].mxu0 %v8670_v11  ;;  %7269 = vmatpush3.bf16.msra.mxu1 %v8089_v57  ;;  %v3224_v11 = vpack.c.bf16 %v3216_v14, %v3215_v12  ;;  %v3413_v57 = vld [vmem:[#allocation2 + $0x104] sm:$0xff] }
 0x191   :  { %6921 = vmatpush3.bf16.msra.mxu0 %v8090_v58  ;;  %6924 = vmatprep.mubr.bf16.mxu0 %v1195_v25  ;;  %v3414_v58 = vld [vmem:[#allocation2 + $0x114] sm:$0xff]  ;;  %v8109_v25 = vld [vmem:[%s9412_s3 + $0x3f0] sm:$0xff]   ;;  %v8111_v14 = vld [vmem:[%s9412_s3 + $0x3f8] sm:$0xff]  }
 0x192   :  { %7256 = vmatprep.mubr.bf16.mxu1 %v8742_v8  ;;  %7270 = vmatprep.subr.bf16.mxu1 %v8091_v6  ;;  %v8804_v0 = vpack.c.bf16 %v3414_v58, %v3413_v57  ;;  %v3607_v12 = vld [vmem:[#allocation2 + $0x40] sm:$0xff] }
 0x193   :  { %6922 = vmatprep.subr.bf16.mxu0 %v8092_v7  ;;  %v3619_v58 = vld [vmem:[#allocation2 + $0x140] sm:$0xff] }
 0x194   :  { %7271 = vmatpush3.bf16.msra.mxu1 %v8091_v6  ;;  %v8814_v6 = vpack.c.bf16 %v3416_v49, %v3415_v59  ;;  %v3618_v59 = vld [vmem:[#allocation2 + $0x130] sm:$0xff]  ;;  %v8124_v49 = vld [vmem:[%s9412_s3 + $0x178] sm:$0xff]  }
 0x195   :  { %6923 = vmatpush3.bf16.msra.mxu0 %v8092_v7  ;;  %7272 = vmatprep.subr.bf16.mxu1 %v8093_v9  ;;  %v8110_v7 = vld [vmem:[%s9412_s3 + $0x140] sm:$0xff]  }
 0x196   :  { %6940 = vmatprep.subr.bf16.mxu0 %v8094_v10 }
 0x197   :  { %7257 = vmatmul.mubr.bf16.gmra.mrb[12].mxu1 %v3224_v11  ;;  %v3606_v11 = vld [vmem:[#allocation2 + $0x30] sm:$0xff] }
 0x198   :  { %6925 = vmatmul.mubr.bf16.vlgmr.msra.gmra.mrb[48].mxu0 %v8686_v28  ;;  %7273 = vmatpush3.bf16.msra.mxu1 %v8093_v9  ;;  %v1187_v28 = vld [vmem:[#allocation2 + $0xc3] sm:$0xff]  ;;  %v8830_v15 = vpack.c.bf16 %v3607_v12, %v3606_v11  ;;  %v8128_v12 = vld [vmem:[%s9412_s3 + $0x188] sm:$0xff]   ;;  %v8129_v11 = vld [vmem:[%s9412_s3 + $0x440] sm:$0xff]  }
 0x199   :  { %6928 = vmatprep.mubr.bf16.mxu0 %v8696_v50  ;;  %6941 = vmatpush3.bf16.msra.mxu0 %v8094_v10  ;;  %v8099_v50 = vld [vmem:[%s9412_s3 + $0x3c8] sm:$0xff]   ;;  %v1199_v37 = vpack.c.bf16 %v1188_v32, %v1187_v28  ;;  %v3417_v9 = vld [vmem:[#allocation2 + $0x144] sm:$0xff] }
 0x19a   :  { %7276 = vmatprep.mubr.bf16.mxu1 %v8758_v22  ;;  %7274 = vmatprep.subr.bf16.mxu1 %v8095_v16  ;;  %v3418_v10 = vld [vmem:[#allocation2 + $0x154] sm:$0xff]  ;;  %v3611_v28 = vld [vmem:[#allocation2 + $0x80] sm:$0xff] }
 0x19b   :  { %6942 = vmatprep.subr.bf16.mxu0 %v8096_v17  ;;  %v8115_v32 = vld [vmem:[%s9412_s3 + $0x408] sm:$0xff]  }
 0x19c   :  { %7275 = vmatpush3.bf16.msra.mxu1 %v8095_v16  ;;  %v8113_v16 = vld [vmem:[%s9412_s3 + $0x400] sm:$0xff]  }
 0x19d   :  { %6943 = vmatpush3.bf16.msra.mxu0 %v8096_v17  ;;  %7292 = vmatprep.subr.bf16.mxu1 %v8097_v23  ;;  %v8114_v17 = vld [vmem:[%s9412_s3 + $0x150] sm:$0xff]  }
 0x19e   :  { %6944 = vmatprep.subr.bf16.mxu0 %v8098_v27 }
 0x19f   :  { %7277 = vmatmul.mubr.bf16.vlgmr.msra.gmra.mrb[0].mxu1 %v8768_v33 }
 0x1a0   :  { %6929 = vmatmul.mubr.bf16.gmra.mrb[52].mxu0 %v8706_v46  ;;  %7293 = vmatpush3.bf16.msra.mxu1 %v8097_v23  ;;  %v3422_v46 = vpack.c.bf16 %v3410_v45, %v3409_v43  ;;  %v3609_v23 = vld [vmem:[#allocation2 + $0x60] sm:$0xff]  ;;  %v8119_v45 = vld [vmem:[%s9412_s3 + $0x418] sm:$0xff]  }
 0x1a1   :  { %6932 = vmatprep.mubr.bf16.mxu0 %v1199_v37  ;;  %6945 = vmatpush3.bf16.msra.mxu0 %v8098_v27  ;;  %v1389_v27 = vld [vmem:[#allocation2 + $0xc4] sm:$0xff] }
 0x1a2   :  { %7280 = vmatprep.mubr.bf16.mxu1 %v8778_v39  ;;  %7294 = vmatprep.subr.bf16.mxu1 %v8099_v50  ;;  %v8117_v37 = vld [vmem:[%s9412_s3 + $0x410] sm:$0xff]  }
 0x1a3   :  { %6946 = vmatprep.subr.bf16.mxu0 %v8100_v38  ;;  %v3615_v43 = vld [vmem:[#allocation2 + $0x100] sm:$0xff] }
 0x1a4   :  { %7295 = vmatpush3.bf16.msra.mxu1 %v8099_v50  ;;  %v8850_v50 = vpack.c.bf16 %v3611_v28, %v3610_v63  ;;  %v3812_v28 = vld [vmem:[#allocation2 + $0x71] sm:$0xff]  ;;  %v8133_v63 = vld [vmem:[%s9412_s3 + $0x450] sm:$0xff]  }
 0x1a5   :  { %6947 = vmatpush3.bf16.msra.mxu0 %v8100_v38  ;;  %7296 = vmatprep.subr.bf16.mxu1 %v8101_v29  ;;  %v8118_v38 = vld [vmem:[%s9412_s3 + $0x160] sm:$0xff]  }
 0x1a6   :  { %6948 = vmatprep.subr.bf16.mxu0 %v8102_v40 }
 0x1a7   :  { %7281 = vmatmul.mubr.bf16.gmra.mrb[4].mxu1 %v3422_v46  ;;  %v3614_v46 = vld [vmem:[#allocation2 + $0xf0] sm:$0xff] }
 0x1a8   :  { %6933 = vmatmul.mubr.bf16.gmra.mrb[56].mxu0 %v8722_v53  ;;  %7297 = vmatpush3.bf16.msra.mxu1 %v8101_v29  ;;  %v1381_v53 = vld [vmem:[#allocation2 + $0x4] sm:$0xff]  ;;  %v8866_v47 = vpack.c.bf16 %v3615_v43, %v3614_v46  ;;  %v8136_v43 = vld [vmem:[%s9412_s3 + $0x1a8] sm:$0xff]   ;;  %v8137_v46 = vld [vmem:[%s9412_s3 + $0x460] sm:$0xff]  }
 0x1a9   :  { %6936 = vmatprep.mubr.bf16.mxu0 %v8732_v1  ;;  %6949 = vmatpush3.bf16.msra.mxu0 %v8102_v40  ;;  %v8107_v1 = vld [vmem:[%s9412_s3 + $0x3e8] sm:$0xff]   ;;  %v1397_v4 = vpack.c.bf16 %v1382_v60, %v1381_v53  ;;  %v3613_v29 = vld [vmem:[#allocation2 + $0xa0] sm:$0xff]  ;;  %v1584_v53 = vld [vmem:[#allocation2 + $0x10] sm:$0xff] }
 0x1aa   :  { %7284 = vmatprep.mubr.bf16.mxu1 %v8794_v55  ;;  %7298 = vmatprep.subr.bf16.mxu1 %v8103_v48  ;;  %v8123_v60 = vld [vmem:[%s9412_s3 + $0x428] sm:$0xff]  }
 0x1ab   :  { %6950 = vmatprep.subr.bf16.mxu0 %v8104_v54 }
 0x1ac   :  { %7299 = vmatpush3.bf16.msra.mxu1 %v8103_v48  ;;  %v8121_v48 = vld [vmem:[%s9412_s3 + $0x420] sm:$0xff]  }
 0x1ad   :  { %6951 = vmatpush3.bf16.msra.mxu0 %v8104_v54  ;;  %7300 = vmatprep.subr.bf16.mxu1 %v8105_v56  ;;  %v8122_v54 = vld [vmem:[%s9412_s3 + $0x170] sm:$0xff]  }
 0x1ae   :  { %6952 = vmatprep.subr.bf16.mxu0 %v8106_v2 }
 0x1af   :  { %7285 = vmatmul.mubr.bf16.gmra.mrb[8].mxu1 %v8804_v0 }
 0x1b0   :  { %6937 = vmatmul.mubr.bf16.gmra.mrb[60].mxu0 %v8742_v8  ;;  %7301 = vmatpush3.bf16.msra.mxu1 %v8105_v56  ;;  %v3426_v8 = vpack.c.bf16 %v3418_v10, %v3417_v9  ;;  %v3617_v56 = vld [vmem:[#allocation2 + $0x120] sm:$0xff]  ;;  %v8127_v10 = vld [vmem:[%s9412_s3 + $0x438] sm:$0xff]  }
 0x1b1   :  { %6953 = vmatpush3.bf16.msra.mxu0 %v8106_v2  ;;  %6956 = vmatprep.mubr.bf16.mxu0 %v1397_v4  ;;  %v1585_v2 = vld [vmem:[#allocation2 + $0x20] sm:$0xff] }
 0x1b2   :  { %7288 = vmatprep.mubr.bf16.mxu1 %v8814_v6  ;;  %7302 = vmatprep.subr.bf16.mxu1 %v8107_v1  ;;  %v8125_v4 = vld [vmem:[%s9412_s3 + $0x430] sm:$0xff]  }
 0x1b3   :  { %6954 = vmatprep.subr.bf16.mxu0 %v8108_v5  ;;  %v3809_v9 = vld [vmem:[#allocation2 + $0x41] sm:$0xff] }
 0x1b4   :  { %7303 = vmatpush3.bf16.msra.mxu1 %v8107_v1  ;;  %v8886_v1 = vpack.c.bf16 %v3619_v58, %v3618_v59  ;;  %v8141_v59 = vld [vmem:[%s9412_s3 + $0x470] sm:$0xff]  }
 0x1b5   :  { %6955 = vmatpush3.bf16.msra.mxu0 %v8108_v5  ;;  %7304 = vmatprep.subr.bf16.mxu1 %v8109_v25  ;;  %v8126_v5 = vld [vmem:[%s9412_s3 + $0x180] sm:$0xff]  }
 0x1b6   :  { %6972 = vmatprep.subr.bf16.mxu0 %v8110_v7 }
 0x1b7   :  { %7289 = vmatmul.mubr.bf16.gmra.mrb[12].mxu1 %v3426_v8  ;;  %v3808_v8 = vld [vmem:[#allocation2 + $0x31] sm:$0xff] }
 0x1b8   :  { %6957 = vmatmul.mubr.bf16.vlgmr.msra.gmra.mrb[48].mxu0 %v8758_v22  ;;  %7305 = vmatpush3.bf16.msra.mxu1 %v8109_v25  ;;  %v3608_v22 = vld [vmem:[#allocation2 + $0x50] sm:$0xff]  ;;  %v3621_v25 = vld [vmem:[#allocation2 + $0x160] sm:$0xff] }
 0x1b9   :  { %6960 = vmatprep.mubr.bf16.mxu0 %v8768_v33  ;;  %6973 = vmatpush3.bf16.msra.mxu0 %v8110_v7  ;;  %v8840_v31 = vpack.c.bf16 %v3609_v23, %v3608_v22  ;;  %v1401_v33 = vpack.c.bf16 %v1390_v30, %v1389_v27  ;;  %v3813_v22 = vld [vmem:[#allocation2 + $0x81] sm:$0xff]  ;;  %v1592_v27 = vld [vmem:[#allocation2 + $0xd0] sm:$0xff]  ;;  %v8131_v30 = vld [vmem:[%s9412_s3 + $0x448] sm:$0xff]  }
 0x1ba   :  { %7308 = vmatprep.mubr.bf16.mxu1 %v8830_v15  ;;  %7306 = vmatprep.subr.bf16.mxu1 %v8111_v14 }
 0x1bb   :  { %6974 = vmatprep.subr.bf16.mxu0 %v8112_v44 }
 0x1bc   :  { %7307 = vmatpush3.bf16.msra.mxu1 %v8111_v14  ;;  %v8902_v14 = vpack.c.bf16 %v3809_v9, %v3808_v8  ;;  %v8144_v9 = vld [vmem:[%s9412_s3 + $0x1c8] sm:$0xff]   ;;  %v8145_v8 = vld [vmem:[%s9412_s3 + $0x480] sm:$0xff]  }
 0x1bd   :  { %6975 = vmatpush3.bf16.msra.mxu0 %v8112_v44  ;;  %7324 = vmatprep.subr.bf16.mxu1 %v8113_v16  ;;  %v8130_v44 = vld [vmem:[%s9412_s3 + $0x190] sm:$0xff]  }
 0x1be   :  { %6976 = vmatprep.subr.bf16.mxu0 %v8114_v17 }
 0x1bf   :  { %7309 = vmatmul.mubr.bf16.vlgmr.msra.gmra.mrb[0].mxu1 %v8840_v31 }
 0x1c0   :  { %6961 = vmatmul.mubr.bf16.gmra.mrb[52].mxu0 %v8778_v39  ;;  %7325 = vmatpush3.bf16.msra.mxu1 %v8113_v16  ;;  %v3612_v39 = vld [vmem:[#allocation2 + $0x90] sm:$0xff]  ;;  %v3811_v16 = vld [vmem:[#allocation2 + $0x61] sm:$0xff] }
 0x1c1   :  { %6964 = vmatprep.mubr.bf16.mxu0 %v1401_v33  ;;  %6977 = vmatpush3.bf16.msra.mxu0 %v8114_v17  ;;  %v3625_v40 = vpack.c.bf16 %v3613_v29, %v3612_v39  ;;  %v1593_v17 = vld [vmem:[#allocation2 + $0xe0] sm:$0xff]  ;;  %v8922_v33 = vpack.c.bf16 %v3813_v22, %v3812_v28  ;;  %v8135_v39 = vld [vmem:[%s9412_s3 + $0x458] sm:$0xff]  }
 0x1c2   :  { %7312 = vmatprep.mubr.bf16.mxu1 %v8850_v50  ;;  %7326 = vmatprep.subr.bf16.mxu1 %v8115_v32  ;;  %v3817_v29 = vld [vmem:[#allocation2 + $0x101] sm:$0xff] }
 0x1c3   :  { %6978 = vmatprep.subr.bf16.mxu0 %v8116_v34  ;;  %v8149_v28 = vld [vmem:[%s9412_s3 + $0x490] sm:$0xff]  }
 0x1c4   :  { %7327 = vmatpush3.bf16.msra.mxu1 %v8115_v32  ;;  %v8132_v32 = vld [vmem:[%s9412_s3 + $0x198] sm:$0xff]  }
 0x1c5   :  { %6979 = vmatpush3.bf16.msra.mxu0 %v8116_v34  ;;  %7328 = vmatprep.subr.bf16.mxu1 %v8117_v37  ;;  %v8134_v34 = vld [vmem:[%s9412_s3 + $0x1a0] sm:$0xff]  }
 0x1c6   :  { %6980 = vmatprep.subr.bf16.mxu0 %v8118_v38 }
 0x1c7   :  { %7313 = vmatmul.mubr.bf16.gmra.mrb[4].mxu1 %v3625_v40  ;;  %v3816_v40 = vld [vmem:[#allocation2 + $0xf1] sm:$0xff] }
 0x1c8   :  { %6965 = vmatmul.mubr.bf16.gmra.mrb[56].mxu0 %v8794_v55  ;;  %7329 = vmatpush3.bf16.msra.mxu1 %v8117_v37  ;;  %v3616_v55 = vld [vmem:[#allocation2 + $0x110] sm:$0xff]  ;;  %v3815_v37 = vld [vmem:[#allocation2 + $0xa1] sm:$0xff] }
 0x1c9   :  { %6968 = vmatprep.mubr.bf16.mxu0 %v8804_v0  ;;  %6981 = vmatpush3.bf16.msra.mxu0 %v8118_v38  ;;  %v8876_v57 = vpack.c.bf16 %v3617_v56, %v3616_v55  ;;  %v1600_v0 = vpack.c.bf16 %v1585_v2, %v1584_v53  ;;  %v3821_v55 = vld [vmem:[#allocation2 + $0x141] sm:$0xff]  ;;  %v1786_v2 = vld [vmem:[#allocation2 + $0x11] sm:$0xff] }
 0x1ca   :  { %7316 = vmatprep.mubr.bf16.mxu1 %v8866_v47  ;;  %7330 = vmatprep.subr.bf16.mxu1 %v8119_v45  ;;  %v3820_v53 = vld [vmem:[#allocation2 + $0x131] sm:$0xff] }
 0x1cb   :  { %6982 = vmatprep.subr.bf16.mxu0 %v8120_v52 }
 0x1cc   :  { %7331 = vmatpush3.bf16.msra.mxu1 %v8119_v45  ;;  %v8938_v45 = vpack.c.bf16 %v3817_v29, %v3816_v40  ;;  %v8152_v29 = vld [vmem:[%s9412_s3 + $0x1e8] sm:$0xff]   ;;  %v8153_v40 = vld [vmem:[%s9412_s3 + $0x4a0] sm:$0xff]  }
 0x1cd   :  { %6983 = vmatpush3.bf16.msra.mxu0 %v8120_v52  ;;  %7332 = vmatprep.subr.bf16.mxu1 %v8121_v48  ;;  %v8138_v52 = vld [vmem:[%s9412_s3 + $0x1b0] sm:$0xff]  }
 0x1ce   :  { %6984 = vmatprep.subr.bf16.mxu0 %v8122_v54 }
 0x1cf   :  { %7317 = vmatmul.mubr.bf16.gmra.mrb[8].mxu1 %v8876_v57 }
 0x1d0   :  { %6969 = vmatmul.mubr.bf16.gmra.mrb[60].mxu0 %v8814_v6  ;;  %7333 = vmatpush3.bf16.msra.mxu1 %v8121_v48  ;;  %v3620_v6 = vld [vmem:[#allocation2 + $0x150] sm:$0xff]  ;;  %v3819_v48 = vld [vmem:[#allocation2 + $0x121] sm:$0xff] }
 0x1d1   :  { %6985 = vmatpush3.bf16.msra.mxu0 %v8122_v54  ;;  %6988 = vmatprep.mubr.bf16.mxu0 %v1600_v0  ;;  %v3629_v7 = vpack.c.bf16 %v3621_v25, %v3620_v6  ;;  %v1787_v54 = vld [vmem:[#allocation2 + $0x21] sm:$0xff]  ;;  %v8958_v0 = vpack.c.bf16 %v3821_v55, %v3820_v53 }
 0x1d2   :  { %7320 = vmatprep.mubr.bf16.mxu1 %v8886_v1  ;;  %7334 = vmatprep.subr.bf16.mxu1 %v8123_v60  ;;  %v1802_v58 = vpack.c.bf16 %v1787_v54, %v1786_v2  ;;  %v4011_v25 = vld [vmem:[#allocation2 + $0x42] sm:$0xff]  ;;  %v1988_v54 = vld [vmem:[#allocation2 + $0x12] sm:$0xff] }
 0x1d3   :  { %6986 = vmatprep.subr.bf16.mxu0 %v8124_v49  ;;  %v8143_v6 = vld [vmem:[%s9412_s3 + $0x478] sm:$0xff]   ;;  %v4022_v2 = vld [vmem:[#allocation2 + $0x132] sm:$0xff]  ;;  %v8157_v53 = vld [vmem:[%s9412_s3 + $0x4b0] sm:$0xff]  }
 0x1d4   :  { %7335 = vmatpush3.bf16.msra.mxu1 %v8123_v60  ;;  %v8140_v60 = vld [vmem:[%s9412_s3 + $0x1b8] sm:$0xff]  }
 0x1d5   :  { %6987 = vmatpush3.bf16.msra.mxu0 %v8124_v49  ;;  %7336 = vmatprep.subr.bf16.mxu1 %v8125_v4  ;;  %v8142_v49 = vld [vmem:[%s9412_s3 + $0x1c0] sm:$0xff]  }
 0x1d6   :  { %7004 = vmatprep.subr.bf16.mxu0 %v8126_v5 }
 0x1d7   :  { %7321 = vmatmul.mubr.bf16.gmra.mrb[12].mxu1 %v3629_v7  ;;  %v4010_v7 = vld [vmem:[#allocation2 + $0x32] sm:$0xff] }
 0x1d8   :  { %6989 = vmatmul.mubr.bf16.vlgmr.msra.gmra.mrb[48].mxu0 %v8830_v15  ;;  %7337 = vmatpush3.bf16.msra.mxu1 %v8125_v4  ;;  %v3810_v15 = vld [vmem:[#allocation2 + $0x51] sm:$0xff]  ;;  %v3823_v4 = vld [vmem:[#allocation2 + $0x161] sm:$0xff] }
 0x1d9   :  { %6992 = vmatprep.mubr.bf16.mxu0 %v8840_v31  ;;  %7005 = vmatpush3.bf16.msra.mxu0 %v8126_v5  ;;  %v8912_v23 = vpack.c.bf16 %v3811_v16, %v3810_v15  ;;  %v1604_v31 = vpack.c.bf16 %v1593_v17, %v1592_v27  ;;  %v4015_v15 = vld [vmem:[#allocation2 + $0x82] sm:$0xff]  ;;  %v1794_v17 = vld [vmem:[#allocation2 + $0xd1] sm:$0xff] }
 0x1da   :  { %7340 = vmatprep.mubr.bf16.mxu1 %v8902_v14  ;;  %7338 = vmatprep.subr.bf16.mxu1 %v8127_v10  ;;  %v4014_v27 = vld [vmem:[#allocation2 + $0x72] sm:$0xff] }
 0x1db   :  { %7006 = vmatprep.subr.bf16.mxu0 %v8128_v12 }
 0x1dc   :  { %7339 = vmatpush3.bf16.msra.mxu1 %v8127_v10  ;;  %v8974_v10 = vpack.c.bf16 %v4011_v25, %v4010_v7  ;;  %v8160_v25 = vld [vmem:[%s9412_s3 + $0x208] sm:$0xff]   ;;  %v8161_v7 = vld [vmem:[%s9412_s3 + $0x4c0] sm:$0xff]  }
 0x1dd   :  { %7007 = vmatpush3.bf16.msra.mxu0 %v8128_v12  ;;  %7356 = vmatprep.subr.bf16.mxu1 %v8129_v11  ;;  %v8146_v12 = vld [vmem:[%s9412_s3 + $0x1d0] sm:$0xff]  }
 0x1de   :  { %7008 = vmatprep.subr.bf16.mxu0 %v8130_v44 }
 0x1df   :  { %7341 = vmatmul.mubr.bf16.vlgmr.msra.gmra.mrb[0].mxu1 %v8912_v23 }
 0x1e0   :  { %6993 = vmatmul.mubr.bf16.gmra.mrb[52].mxu0 %v8850_v50  ;;  %7357 = vmatpush3.bf16.msra.mxu1 %v8129_v11  ;;  %v3814_v50 = vld [vmem:[#allocation2 + $0x91] sm:$0xff]  ;;  %v4013_v11 = vld [vmem:[#allocation2 + $0x62] sm:$0xff] }
 0x1e1   :  { %6996 = vmatprep.mubr.bf16.mxu0 %v1604_v31  ;;  %7009 = vmatpush3.bf16.msra.mxu0 %v8130_v44  ;;  %v3827_v38 = vpack.c.bf16 %v3815_v37, %v3814_v50  ;;  %v1795_v44 = vld [vmem:[#allocation2 + $0xe1] sm:$0xff]  ;;  %v8994_v31 = vpack.c.bf16 %v4015_v15, %v4014_v27 }
 0x1e2   :  { %7344 = vmatprep.mubr.bf16.mxu1 %v8922_v33  ;;  %7358 = vmatprep.subr.bf16.mxu1 %v8131_v30  ;;  %v1806_v22 = vpack.c.bf16 %v1795_v44, %v1794_v17  ;;  %v4019_v37 = vld [vmem:[#allocation2 + $0x102] sm:$0xff]  ;;  %v1996_v44 = vld [vmem:[#allocation2 + $0xd2] sm:$0xff] }
 0x1e3   :  { %7010 = vmatprep.subr.bf16.mxu0 %v8132_v32  ;;  %v8151_v50 = vld [vmem:[%s9412_s3 + $0x498] sm:$0xff]   ;;  %v4216_v17 = vld [vmem:[#allocation2 + $0x73] sm:$0xff]  ;;  %v8165_v27 = vld [vmem:[%s9412_s3 + $0x4d0] sm:$0xff]  }
 0x1e4   :  { %7359 = vmatpush3.bf16.msra.mxu1 %v8131_v30  ;;  %v8148_v30 = vld [vmem:[%s9412_s3 + $0x1d8] sm:$0xff]  }
 0x1e5   :  { %7011 = vmatpush3.bf16.msra.mxu0 %v8132_v32  ;;  %7360 = vmatprep.subr.bf16.mxu1 %v8133_v63  ;;  %v8150_v32 = vld [vmem:[%s9412_s3 + $0x1e0] sm:$0xff]  }
 0x1e6   :  { %7012 = vmatprep.subr.bf16.mxu0 %v8134_v34 }
 0x1e7   :  { %7345 = vmatmul.mubr.bf16.gmra.mrb[4].mxu1 %v3827_v38  ;;  %v4018_v38 = vld [vmem:[#allocation2 + $0xf2] sm:$0xff] }
 0x1e8   :  { %6997 = vmatmul.mubr.bf16.gmra.mrb[56].mxu0 %v8866_v47  ;;  %7361 = vmatpush3.bf16.msra.mxu1 %v8133_v63  ;;  %v3818_v47 = vld [vmem:[#allocation2 + $0x111] sm:$0xff]  ;;  %v4017_v63 = vld [vmem:[#allocation2 + $0xa2] sm:$0xff] }
 0x1e9   :  { %7000 = vmatprep.mubr.bf16.mxu0 %v8876_v57  ;;  %7013 = vmatpush3.bf16.msra.mxu0 %v8134_v34  ;;  %v8948_v56 = vpack.c.bf16 %v3819_v48, %v3818_v47  ;;  %v8139_v57 = vld [vmem:[%s9412_s3 + $0x468] sm:$0xff]   ;;  %v4023_v47 = vld [vmem:[#allocation2 + $0x142] sm:$0xff] }
 0x1ea   :  { %7348 = vmatprep.mubr.bf16.mxu1 %v8938_v45  ;;  %7362 = vmatprep.subr.bf16.mxu1 %v8135_v39 }
 0x1eb   :  { %7014 = vmatprep.subr.bf16.mxu0 %v8136_v43 }
 0x1ec   :  { %7363 = vmatpush3.bf16.msra.mxu1 %v8135_v39  ;;  %v9010_v39 = vpack.c.bf16 %v4019_v37, %v4018_v38  ;;  %v8168_v37 = vld [vmem:[%s9412_s3 + $0x228] sm:$0xff]   ;;  %v8169_v38 = vld [vmem:[%s9412_s3 + $0x4e0] sm:$0xff]  }
 0x1ed   :  { %7015 = vmatpush3.bf16.msra.mxu0 %v8136_v43  ;;  %7364 = vmatprep.subr.bf16.mxu1 %v8137_v46  ;;  %v8154_v43 = vld [vmem:[%s9412_s3 + $0x1f0] sm:$0xff]  }
 0x1ee   :  { %7016 = vmatprep.subr.bf16.mxu0 %v8138_v52 }
 0x1ef   :  { %7349 = vmatmul.mubr.bf16.gmra.mrb[8].mxu1 %v8948_v56 }
 0x1f0   :  { %7001 = vmatmul.mubr.bf16.gmra.mrb[60].mxu0 %v8886_v1  ;;  %7365 = vmatpush3.bf16.msra.mxu1 %v8137_v46  ;;  %v3822_v1 = vld [vmem:[#allocation2 + $0x151] sm:$0xff]  ;;  %v4021_v46 = vld [vmem:[#allocation2 + $0x122] sm:$0xff] }
 0x1f1   :  { %7017 = vmatpush3.bf16.msra.mxu0 %v8138_v52  ;;  %7020 = vmatprep.mubr.bf16.mxu0 %v1802_v58  ;;  %v3831_v5 = vpack.c.bf16 %v3823_v4, %v3822_v1  ;;  %v1989_v52 = vld [vmem:[#allocation2 + $0x22] sm:$0xff]  ;;  %v9030_v58 = vpack.c.bf16 %v4023_v47, %v4022_v2 }
 0x1f2   :  { %7352 = vmatprep.mubr.bf16.mxu1 %v8958_v0  ;;  %7366 = vmatprep.subr.bf16.mxu1 %v8139_v57  ;;  %v2004_v55 = vpack.c.bf16 %v1989_v52, %v1988_v54  ;;  %v4213_v4 = vld [vmem:[#allocation2 + $0x43] sm:$0xff]  ;;  %v2190_v52 = vld [vmem:[#allocation2 + $0x13] sm:$0xff] }
 0x1f3   :  { %7018 = vmatprep.subr.bf16.mxu0 %v8140_v60  ;;  %v8159_v1 = vld [vmem:[%s9412_s3 + $0x4b8] sm:$0xff]   ;;  %v4224_v54 = vld [vmem:[#allocation2 + $0x133] sm:$0xff]  ;;  %v8173_v2 = vld [vmem:[%s9412_s3 + $0x4f0] sm:$0xff]  }
 0x1f4   :  { %7367 = vmatpush3.bf16.msra.mxu1 %v8139_v57  ;;  %v8156_v57 = vld [vmem:[%s9412_s3 + $0x1f8] sm:$0xff]  }
 0x1f5   :  { %7019 = vmatpush3.bf16.msra.mxu0 %v8140_v60  ;;  %7368 = vmatprep.subr.bf16.mxu1 %v8141_v59  ;;  %v8158_v60 = vld [vmem:[%s9412_s3 + $0x200] sm:$0xff]  }
 0x1f6   :  { %7036 = vmatprep.subr.bf16.mxu0 %v8142_v49 }
 0x1f7   :  { %7353 = vmatmul.mubr.bf16.gmra.mrb[12].mxu1 %v3831_v5  ;;  %v4212_v5 = vld [vmem:[#allocation2 + $0x33] sm:$0xff] }
 0x1f8   :  { %7021 = vmatmul.mubr.bf16.vlgmr.msra.gmra.mrb[48].mxu0 %v8902_v14  ;;  %7369 = vmatpush3.bf16.msra.mxu1 %v8141_v59  ;;  %v4012_v14 = vld [vmem:[#allocation2 + $0x52] sm:$0xff]  ;;  %v4025_v59 = vld [vmem:[#allocation2 + $0x162] sm:$0xff] }
 0x1f9   :  { %7024 = vmatprep.mubr.bf16.mxu0 %v8912_v23  ;;  %7037 = vmatpush3.bf16.msra.mxu0 %v8142_v49  ;;  %v8984_v16 = vpack.c.bf16 %v4013_v11, %v4012_v14  ;;  %v8147_v23 = vld [vmem:[%s9412_s3 + $0x488] sm:$0xff]   ;;  %v4217_v14 = vld [vmem:[#allocation2 + $0x83] sm:$0xff] }
 0x1fa   :  { %7372 = vmatprep.mubr.bf16.mxu1 %v8974_v10  ;;  %7370 = vmatprep.subr.bf16.mxu1 %v8143_v6 }
 0x1fb   :  { %7038 = vmatprep.subr.bf16.mxu0 %v8144_v9 }
 0x1fc   :  { %7371 = vmatpush3.bf16.msra.mxu1 %v8143_v6  ;;  %v9046_v6 = vpack.c.bf16 %v4213_v4, %v4212_v5  ;;  %v8176_v4 = vld [vmem:[%s9412_s3 + $0x248] sm:$0xff]   ;;  %v8177_v5 = vld [vmem:[%s9412_s3 + $0x500] sm:$0xff]  }
 0x1fd   :  { %7039 = vmatpush3.bf16.msra.mxu0 %v8144_v9  ;;  %7388 = vmatprep.subr.bf16.mxu1 %v8145_v8  ;;  %v8162_v9 = vld [vmem:[%s9412_s3 + $0x210] sm:$0xff]  }
 0x1fe   :  { %7040 = vmatprep.subr.bf16.mxu0 %v8146_v12 }
 0x1ff   :  { %7373 = vmatmul.mubr.bf16.vlgmr.msra.gmra.mrb[0].mxu1 %v8984_v16 }
 0x200   :  { %7025 = vmatmul.mubr.bf16.gmra.mrb[52].mxu0 %v8922_v33  ;;  %7389 = vmatpush3.bf16.msra.mxu1 %v8145_v8  ;;  %v4016_v33 = vld [vmem:[#allocation2 + $0x92] sm:$0xff]  ;;  %v4215_v8 = vld [vmem:[#allocation2 + $0x63] sm:$0xff] }
 0x201   :  { %7028 = vmatprep.mubr.bf16.mxu0 %v1806_v22  ;;  %7041 = vmatpush3.bf16.msra.mxu0 %v8146_v12  ;;  %v4029_v34 = vpack.c.bf16 %v4017_v63, %v4016_v33  ;;  %v1997_v12 = vld [vmem:[#allocation2 + $0xe2] sm:$0xff]  ;;  %v9066_v22 = vpack.c.bf16 %v4217_v14, %v4216_v17 }
 0x202   :  { %7376 = vmatprep.mubr.bf16.mxu1 %v8994_v31  ;;  %7390 = vmatprep.subr.bf16.mxu1 %v8147_v23  ;;  %v2008_v15 = vpack.c.bf16 %v1997_v12, %v1996_v44  ;;  %v4221_v63 = vld [vmem:[#allocation2 + $0x103] sm:$0xff]  ;;  %v8179_v12 = vld [vmem:[%s9412_s3 + $0x508] sm:$0xff]  }
 0x203   :  { %7042 = vmatprep.subr.bf16.mxu0 %v8148_v30  ;;  %v8167_v33 = vld [vmem:[%s9412_s3 + $0x4d8] sm:$0xff]   ;;  %v8232_v44 = vld [vmem:[#allocation2 + $0x74] sm:$0xff]  ;;  %v8181_v17 = vld [vmem:[%s9412_s3 + $0x510] sm:$0xff]  }
 0x204   :  { %7391 = vmatpush3.bf16.msra.mxu1 %v8147_v23  ;;  %v8164_v23 = vld [vmem:[%s9412_s3 + $0x218] sm:$0xff]  }
 0x205   :  { %7043 = vmatpush3.bf16.msra.mxu0 %v8148_v30  ;;  %7392 = vmatprep.subr.bf16.mxu1 %v8149_v28  ;;  %v8166_v30 = vld [vmem:[%s9412_s3 + $0x220] sm:$0xff]   ;;  %v8180_v14 = vld [vmem:[%s9412_s3 + $0x258] sm:$0xff]  }
 0x206   :  { %7044 = vmatprep.subr.bf16.mxu0 %v8150_v32 }
 0x207   :  { %7377 = vmatmul.mubr.bf16.gmra.mrb[4].mxu1 %v4029_v34  ;;  %v4220_v34 = vld [vmem:[#allocation2 + $0xf3] sm:$0xff] }
 0x208   :  { %7029 = vmatmul.mubr.bf16.gmra.mrb[56].mxu0 %v8938_v45  ;;  %7393 = vmatpush3.bf16.msra.mxu1 %v8149_v28  ;;  %v4020_v45 = vld [vmem:[#allocation2 + $0x112] sm:$0xff]  ;;  %v4219_v28 = vld [vmem:[#allocation2 + $0xa3] sm:$0xff] }
 0x209   :  { %7032 = vmatprep.mubr.bf16.mxu0 %v8948_v56  ;;  %7045 = vmatpush3.bf16.msra.mxu0 %v8150_v32  ;;  %v9020_v48 = vpack.c.bf16 %v4021_v46, %v4020_v45  ;;  %v8155_v56 = vld [vmem:[%s9412_s3 + $0x4a8] sm:$0xff]   ;;  %v4225_v45 = vld [vmem:[#allocation2 + $0x143] sm:$0xff] }
 0x20a   :  { %7380 = vmatprep.mubr.bf16.mxu1 %v9010_v39  ;;  %7394 = vmatprep.subr.bf16.mxu1 %v8151_v50 }
 0x20b   :  { %7046 = vmatprep.subr.bf16.mxu0 %v8152_v29 }
 0x20c   :  { %7395 = vmatpush3.bf16.msra.mxu1 %v8151_v50  ;;  %v9082_v50 = vpack.c.bf16 %v4221_v63, %v4220_v34  ;;  %v8235_v63 = vld [vmem:[#allocation2 + $0x104] sm:$0xff]  ;;  %v8185_v34 = vld [vmem:[%s9412_s3 + $0x520] sm:$0xff]  }
 0x20d   :  { %7047 = vmatpush3.bf16.msra.mxu0 %v8152_v29  ;;  %7396 = vmatprep.subr.bf16.mxu1 %v8153_v40  ;;  %v8170_v29 = vld [vmem:[%s9412_s3 + $0x230] sm:$0xff]  }
 0x20e   :  { %7048 = vmatprep.subr.bf16.mxu0 %v8154_v43 }
 0x20f   :  { %7381 = vmatmul.mubr.bf16.gmra.mrb[8].mxu1 %v9020_v48 }
 0x210   :  { %7033 = vmatmul.mubr.bf16.gmra.mrb[60].mxu0 %v8958_v0  ;;  %7397 = vmatpush3.bf16.msra.mxu1 %v8153_v40  ;;  %v4024_v0 = vld [vmem:[#allocation2 + $0x152] sm:$0xff]  ;;  %v4223_v40 = vld [vmem:[#allocation2 + $0x123] sm:$0xff] }
 0x211   :  { %7049 = vmatpush3.bf16.msra.mxu0 %v8154_v43  ;;  %7052 = vmatprep.mubr.bf16.mxu0 %v2004_v55  ;;  %v4033_v49 = vpack.c.bf16 %v4025_v59, %v4024_v0  ;;  %v2191_v43 = vld [vmem:[#allocation2 + $0x23] sm:$0xff]  ;;  %v9102_v55 = vpack.c.bf16 %v4225_v45, %v4224_v54 }
 0x212   :  { %7384 = vmatprep.mubr.bf16.mxu1 %v9030_v58  ;;  %7398 = vmatprep.subr.bf16.mxu1 %v8155_v56  ;;  %v2206_v47 = vpack.c.bf16 %v2191_v43, %v2190_v52  ;;  %v4415_v59 = vld [vmem:[#allocation2 + $0x44] sm:$0xff]  ;;  %v8187_v43 = vld [vmem:[%s9412_s3 + $0x528] sm:$0xff]  }
 0x213   :  { %7050 = vmatprep.subr.bf16.mxu0 %v8156_v57  ;;  %v8175_v0 = vld [vmem:[%s9412_s3 + $0x4f8] sm:$0xff]   ;;  %v8238_v52 = vld [vmem:[#allocation2 + $0x134] sm:$0xff]  ;;  %v8189_v54 = vld [vmem:[%s9412_s3 + $0x530] sm:$0xff]  }
 0x214   :  { %7399 = vmatpush3.bf16.msra.mxu1 %v8155_v56  ;;  %v8172_v56 = vld [vmem:[%s9412_s3 + $0x238] sm:$0xff]  }
 0x215   :  { %7051 = vmatpush3.bf16.msra.mxu0 %v8156_v57  ;;  %7400 = vmatprep.subr.bf16.mxu1 %v8157_v53  ;;  %v8174_v57 = vld [vmem:[%s9412_s3 + $0x240] sm:$0xff]   ;;  %v8188_v45 = vld [vmem:[%s9412_s3 + $0x278] sm:$0xff]  }
 0x216   :  { %7068 = vmatprep.subr.bf16.mxu0 %v8158_v60 }
 0x217   :  { %7385 = vmatmul.mubr.bf16.gmra.mrb[12].mxu1 %v4033_v49  ;;  %v4414_v49 = vld [vmem:[#allocation2 + $0x34] sm:$0xff] }
 0x218   :  { %7053 = vmatmul.mubr.bf16.vlgmr.msra.gmra.mrb[48].mxu0 %v8974_v10  ;;  %7401 = vmatpush3.bf16.msra.mxu1 %v8157_v53  ;;  %v4214_v10 = vld [vmem:[#allocation2 + $0x53] sm:$0xff]  ;;  %v4227_v53 = vld [vmem:[#allocation2 + $0x163] sm:$0xff] }
 0x219   :  { %7056 = vmatprep.mubr.bf16.mxu0 %v8984_v16  ;;  %7069 = vmatpush3.bf16.msra.mxu0 %v8158_v60  ;;  %v9056_v11 = vpack.c.bf16 %v4215_v8, %v4214_v10  ;;  %v8163_v16 = vld [vmem:[%s9412_s3 + $0x4c8] sm:$0xff]  }
 0x21a   :  { %7404 = vmatprep.mubr.bf16.mxu1 %v9046_v6  ;;  %7402 = vmatprep.subr.bf16.mxu1 %v8159_v1  ;;  %v2198_v10 = vld [vmem:[#allocation2 + $0xd3] sm:$0xff] }
 0x21b   :  { %7070 = vmatprep.subr.bf16.mxu0 %v8160_v25 }
 0x21c   :  { %7403 = vmatpush3.bf16.msra.mxu1 %v8159_v1  ;;  %v9121_v1 = vpack.c.bf16 %v4415_v59, %v4414_v49  ;;  %v8191_v59 = vld [vmem:[%s9412_s3 + $0x538] sm:$0xff]  }
 0x21d   :  { %7071 = vmatpush3.bf16.msra.mxu0 %v8160_v25  ;;  %7420 = vmatprep.subr.bf16.mxu1 %v8161_v7  ;;  %v8178_v25 = vld [vmem:[%s9412_s3 + $0x250] sm:$0xff]  }
 0x21e   :  { %7072 = vmatprep.subr.bf16.mxu0 %v8162_v9 }
 0x21f   :  { %7405 = vmatmul.mubr.bf16.vlgmr.msra.gmra.mrb[0].mxu1 %v9056_v11 }
 0x220   :  { %7057 = vmatmul.mubr.bf16.gmra.mrb[52].mxu0 %v8994_v31  ;;  %7421 = vmatpush3.bf16.msra.mxu1 %v8161_v7  ;;  %v4218_v31 = vld [vmem:[#allocation2 + $0x93] sm:$0xff]  ;;  %v2199_v7 = vld [vmem:[#allocation2 + $0xe3] sm:$0xff] }
 0x221   :  { %7060 = vmatprep.mubr.bf16.mxu0 %v2008_v15  ;;  %7073 = vmatpush3.bf16.msra.mxu0 %v8162_v9  ;;  %v4231_v32 = vpack.c.bf16 %v4219_v28, %v4218_v31  ;;  %v8231_v9 = vld [vmem:[#allocation2 + $0x64] sm:$0xff]  ;;  %v4422_v31 = vld [vmem:[#allocation2 + $0xf4] sm:$0xff] }
 0x222   :  { %7408 = vmatprep.mubr.bf16.mxu1 %v9066_v22  ;;  %7422 = vmatprep.subr.bf16.mxu1 %v8163_v16  ;;  %v8183_v28 = vld [vmem:[%s9412_s3 + $0x518] sm:$0xff]  }
 0x223   :  { %7074 = vmatprep.subr.bf16.mxu0 %v8164_v23 }
 0x224   :  { %7423 = vmatpush3.bf16.msra.mxu1 %v8163_v16  ;;  %v8233_v16 = vld [vmem:[#allocation2 + $0x84] sm:$0xff] }
 0x225   :  { %7075 = vmatpush3.bf16.msra.mxu0 %v8164_v23  ;;  %7424 = vmatprep.subr.bf16.mxu1 %v8165_v27  ;;  %v9144_v15 = vpack.c.bf16 %v8233_v16, %v8232_v44  ;;  %v8182_v23 = vld [vmem:[%s9412_s3 + $0x260] sm:$0xff]   ;;  %v8196_v44 = vld [vmem:[%s9412_s3 + $0x298] sm:$0xff]  }
 0x226   :  { %7076 = vmatprep.subr.bf16.mxu0 %v8166_v30 }
 0x227   :  { %7409 = vmatmul.mubr.bf16.gmra.mrb[4].mxu1 %v4231_v32  ;;  %v8184_v32 = vld [vmem:[%s9412_s3 + $0x268] sm:$0xff]  }
 0x228   :  { %7061 = vmatmul.mubr.bf16.gmra.mrb[56].mxu0 %v9010_v39  ;;  %7425 = vmatpush3.bf16.msra.mxu1 %v8165_v27  ;;  %v4222_v39 = vld [vmem:[#allocation2 + $0x113] sm:$0xff]  ;;  %v9153_v27 = vld [vmem:[#allocation2 + $0xa4] sm:$0xff] }
 0x229   :  { %7064 = vmatprep.mubr.bf16.mxu0 %v9020_v48  ;;  %7077 = vmatpush3.bf16.msra.mxu0 %v8166_v30  ;;  %v9092_v46 = vpack.c.bf16 %v4223_v40, %v4222_v39  ;;  %v8171_v48 = vld [vmem:[%s9412_s3 + $0x4e8] sm:$0xff]  }
 0x22a   :  { %7412 = vmatprep.mubr.bf16.mxu1 %v9082_v50  ;;  %7426 = vmatprep.subr.bf16.mxu1 %v8167_v33  ;;  %v2392_v39 = vld [vmem:[#allocation2 + $0x14] sm:$0xff] }
 0x22b   :  { %7078 = vmatprep.subr.bf16.mxu0 %v8168_v37 }
 0x22c   :  { %7427 = vmatpush3.bf16.msra.mxu1 %v8167_v33  ;;  %v9163_v33 = vpack.c.bf16 %v8235_v63, %v4422_v31  ;;  %v4626_v31 = vld [vmem:[#allocation2 + $0x110] sm:$0xff]  ;;  %v8200_v63 = vld [vmem:[%s9412_s3 + $0x2a8] sm:$0xff]  }
 0x22d   :  { %7079 = vmatpush3.bf16.msra.mxu0 %v8168_v37  ;;  %7428 = vmatprep.subr.bf16.mxu1 %v8169_v38  ;;  %v8186_v37 = vld [vmem:[%s9412_s3 + $0x270] sm:$0xff]  }
 0x22e   :  { %7080 = vmatprep.subr.bf16.mxu0 %v8170_v29 }
 0x22f   :  { %7413 = vmatmul.mubr.bf16.gmra.mrb[8].mxu1 %v9092_v46 }
 0x230   :  { %7065 = vmatmul.mubr.bf16.gmra.mrb[60].mxu0 %v9030_v58  ;;  %7429 = vmatpush3.bf16.msra.mxu1 %v8169_v38  ;;  %v9111_v58 = vld [vmem:[#allocation2 + $0x153] sm:$0xff] }
 0x231   :  { %7081 = vmatpush3.bf16.msra.mxu0 %v8170_v29  ;;  %7084 = vmatprep.mubr.bf16.mxu0 %v2206_v47  ;;  %v4235_v60 = vpack.c.bf16 %v4227_v53, %v9111_v58  ;;  %v8236_v38 = vld [vmem:[#allocation2 + $0x114] sm:$0xff]  ;;  %v8237_v29 = vld [vmem:[#allocation2 + $0x124] sm:$0xff] }
 0x232   :  { %7416 = vmatprep.mubr.bf16.mxu1 %v9102_v55  ;;  %7430 = vmatprep.subr.bf16.mxu1 %v8171_v48  ;;  %v9173_v40 = vpack.c.bf16 %v8237_v29, %v8236_v38  ;;  %v4617_v53 = vld [vmem:[#allocation2 + $0x40] sm:$0xff]  ;;  %v4628_v29 = vld [vmem:[#allocation2 + $0x130] sm:$0xff] }
 0x233   :  { %7082 = vmatprep.subr.bf16.mxu0 %v8172_v56  ;;  %v4627_v38 = vld [vmem:[#allocation2 + $0x120] sm:$0xff] }
 0x234   :  { %7431 = vmatpush3.bf16.msra.mxu1 %v8171_v48  ;;  %v8239_v48 = vld [vmem:[#allocation2 + $0x144] sm:$0xff] }
 0x235   :  { %7083 = vmatpush3.bf16.msra.mxu0 %v8172_v56  ;;  %7432 = vmatprep.subr.bf16.mxu1 %v8173_v2  ;;  %v9183_v47 = vpack.c.bf16 %v8239_v48, %v8238_v52  ;;  %v8190_v56 = vld [vmem:[%s9412_s3 + $0x280] sm:$0xff]   ;;  %v8204_v48 = vld [vmem:[%s9412_s3 + $0x2b8] sm:$0xff]  }
 0x236   :  { %7100 = vmatprep.subr.bf16.mxu0 %v8174_v57 }
 0x237   :  { %7417 = vmatmul.mubr.bf16.gmra.mrb[12].mxu1 %v4235_v60  ;;  %v4618_v60 = vld [vmem:[#allocation2 + $0x50] sm:$0xff] }
 0x238   :  { %7085 = vmatmul.mubr.bf16.vlgmr.msra.gmra.mrb[48].mxu0 %v9046_v6  ;;  %7433 = vmatpush3.bf16.msra.mxu1 %v8173_v2  ;;  %v9131_v6 = vld [vmem:[#allocation2 + $0x54] sm:$0xff]  ;;  %v9192_v2 = vld [vmem:[#allocation2 + $0x164] sm:$0xff]  ;;  %v9202_v49 = vpack.c.bf16 %v4618_v60, %v4617_v53 }
 0x239   :  { %7088 = vmatprep.mubr.bf16.mxu0 %v9056_v11  ;;  %7101 = vmatpush3.bf16.msra.mxu0 %v8174_v57  ;;  %v9134_v8 = vpack.c.bf16 %v8231_v9, %v9131_v6  ;;  %v2210_v11 = vpack.c.bf16 %v2199_v7, %v2198_v10  ;;  %v4620_v7 = vld [vmem:[#allocation2 + $0x70] sm:$0xff]  ;;  %v4819_v53 = vld [vmem:[#allocation2 + $0x41] sm:$0xff]  ;;  %v5448_v19 = vpack.c.bf16 %v5440_v18, %v9192_v2 }
 0x23a   :  { %7436 = vmatprep.mubr.bf16.mxu1 %v9121_v1  ;;  %7434 = vmatprep.subr.bf16.mxu1 %v8175_v0  ;;  %v4622_v10 = vld [vmem:[#allocation2 + $0x90] sm:$0xff] }
 0x23b   :  { %7102 = vmatprep.subr.bf16.mxu0 %v8176_v4  ;;  %v4820_v60 = vld [vmem:[#allocation2 + $0x51] sm:$0xff] }
 0x23c   :  { %7435 = vmatpush3.bf16.msra.mxu1 %v8175_v0  ;;  %v8192_v0 = vld [vmem:[%s9412_s3 + $0x288] sm:$0xff]  }
 0x23d   :  { %7103 = vmatpush3.bf16.msra.mxu0 %v8176_v4  ;;  %7452 = vmatprep.subr.bf16.mxu1 %v8177_v5  ;;  %v8193_v4 = vld [vmem:[%s9412_s3 + $0x540] sm:$0xff]  }
 0x23e   :  { %7104 = vmatprep.subr.bf16.mxu0 %v8178_v25 }
 0x23f   :  { %7437 = vmatmul.mubr.bf16.vlgmr.msra.gmra.mrb[0].mxu1 %v9134_v8 }
 0x240   :  { %7089 = vmatmul.mubr.bf16.gmra.mrb[52].mxu0 %v9066_v22  ;;  %7453 = vmatpush3.bf16.msra.mxu1 %v8177_v5  ;;  %v8234_v22 = vld [vmem:[#allocation2 + $0x94] sm:$0xff]  ;;  %v8194_v5 = vld [vmem:[%s9412_s3 + $0x290] sm:$0xff]  }
 0x241   :  { %7092 = vmatprep.mubr.bf16.mxu0 %v2210_v11  ;;  %7105 = vmatpush3.bf16.msra.mxu0 %v8178_v25  ;;  %v4433_v30 = vpack.c.bf16 %v9153_v27, %v8234_v22  ;;  %v4619_v25 = vld [vmem:[#allocation2 + $0x60] sm:$0xff]  ;;  %v8195_v11 = vld [vmem:[%s9412_s3 + $0x548] sm:$0xff]  }
 0x242   :  { %7440 = vmatprep.mubr.bf16.mxu1 %v9144_v15  ;;  %7454 = vmatprep.subr.bf16.mxu1 %v8179_v12  ;;  %v9212_v9 = vpack.c.bf16 %v4620_v7, %v4619_v25  ;;  %v4623_v22 = vld [vmem:[#allocation2 + $0xa0] sm:$0xff]  ;;  %v4822_v25 = vld [vmem:[#allocation2 + $0x71] sm:$0xff] }
 0x243   :  { %7106 = vmatprep.subr.bf16.mxu0 %v8180_v14  ;;  %v4823_v7 = vld [vmem:[#allocation2 + $0x81] sm:$0xff] }
 0x244   :  { %7455 = vmatpush3.bf16.msra.mxu1 %v8179_v12  ;;  %v2400_v12 = vld [vmem:[#allocation2 + $0xd4] sm:$0xff] }
 0x245   :  { %7107 = vmatpush3.bf16.msra.mxu0 %v8180_v14  ;;  %7456 = vmatprep.subr.bf16.mxu1 %v8181_v17 }
 0x246   :  { %7108 = vmatprep.subr.bf16.mxu0 %v8182_v23 }
 0x247   :  { %7441 = vmatmul.mubr.bf16.gmra.mrb[4].mxu1 %v4433_v30  ;;  %v4624_v30 = vld [vmem:[#allocation2 + $0xb0] sm:$0xff] }
 0x248   :  { %7093 = vmatmul.mubr.bf16.gmra.mrb[56].mxu0 %v9082_v50  ;;  %7457 = vmatpush3.bf16.msra.mxu1 %v8181_v17  ;;  %v2393_v50 = vld [vmem:[#allocation2 + $0x24] sm:$0xff] }
 0x249   :  { %7096 = vmatprep.mubr.bf16.mxu0 %v9092_v46  ;;  %7109 = vmatpush3.bf16.msra.mxu0 %v8182_v23  ;;  %v2408_v46 = vpack.c.bf16 %v2393_v50, %v2392_v39  ;;  %v8197_v17 = vld [vmem:[%s9412_s3 + $0x550] sm:$0xff]   ;;  %v8198_v23 = vld [vmem:[%s9412_s3 + $0x2a0] sm:$0xff]  }
 0x24a   :  { %7444 = vmatprep.mubr.bf16.mxu1 %v9163_v33  ;;  %7458 = vmatprep.subr.bf16.mxu1 %v8183_v28  ;;  %v8202_v50 = vld [vmem:[%s9412_s3 + $0x2b0] sm:$0xff]   ;;  %v2596_v39 = vld [vmem:[#allocation2 + $0x30] sm:$0xff] }
 0x24b   :  { %7110 = vmatprep.subr.bf16.mxu0 %v8184_v32 }
 0x24c   :  { %7459 = vmatpush3.bf16.msra.mxu1 %v8183_v28  ;;  %v4625_v28 = vld [vmem:[#allocation2 + $0x100] sm:$0xff] }
 0x24d   :  { %7111 = vmatpush3.bf16.msra.mxu0 %v8184_v32  ;;  %7460 = vmatprep.subr.bf16.mxu1 %v8185_v34  ;;  %v8199_v32 = vld [vmem:[%s9412_s3 + $0x558] sm:$0xff]  }
 0x24e   :  { %7112 = vmatprep.subr.bf16.mxu0 %v8186_v37 }
 0x24f   :  { %7445 = vmatmul.mubr.bf16.gmra.mrb[8].mxu1 %v9173_v40 }
 0x250   :  { %7097 = vmatmul.mubr.bf16.gmra.mrb[60].mxu0 %v9102_v55  ;;  %7461 = vmatpush3.bf16.msra.mxu1 %v8185_v34  ;;  %v8240_v55 = vld [vmem:[#allocation2 + $0x154] sm:$0xff]  ;;  %v9238_v34 = vpack.c.bf16 %v4626_v31, %v4625_v28  ;;  %v4829_v31 = vld [vmem:[#allocation2 + $0x121] sm:$0xff] }
 0x251   :  { %7113 = vmatpush3.bf16.msra.mxu0 %v8186_v37  ;;  %7116 = vmatprep.mubr.bf16.mxu0 %v2408_v46  ;;  %v4437_v57 = vpack.c.bf16 %v9192_v2, %v8240_v55  ;;  %v8201_v37 = vld [vmem:[%s9412_s3 + $0x560] sm:$0xff]   ;;  %v4631_v55 = vld [vmem:[#allocation2 + $0x160] sm:$0xff] }
 0x252   :  { %7448 = vmatprep.mubr.bf16.mxu1 %v9183_v47  ;;  %7462 = vmatprep.subr.bf16.mxu1 %v8187_v43  ;;  %v4630_v46 = vld [vmem:[#allocation2 + $0x150] sm:$0xff] }
 0x253   :  { %7114 = vmatprep.subr.bf16.mxu0 %v8188_v45  ;;  %v8211_v28 = vld [vmem:[%s9412_s3 + $0x5a0] sm:$0xff]  }
 0x254   :  { %7463 = vmatpush3.bf16.msra.mxu1 %v8187_v43  ;;  %v4629_v43 = vld [vmem:[#allocation2 + $0x140] sm:$0xff] }
 0x255   :  { %7115 = vmatpush3.bf16.msra.mxu0 %v8188_v45  ;;  %7464 = vmatprep.subr.bf16.mxu1 %v8189_v54  ;;  %v8203_v45 = vld [vmem:[%s9412_s3 + $0x568] sm:$0xff]  }
 0x256   :  { %7132 = vmatprep.subr.bf16.mxu0 %v8190_v56 }
 0x257   :  { %7449 = vmatmul.mubr.bf16.gmra.mrb[12].mxu1 %v4437_v57  ;;  %v4632_v57 = vld [vmem:[#allocation2 + $0x170] sm:$0xff] }
 0x258   :  { %7117 = vmatmul.mubr.bf16.vlgmr.msra.gmra.mrb[48].mxu0 %v9121_v1  ;;  %7465 = vmatpush3.bf16.msra.mxu1 %v8189_v54  ;;  %v2401_v1 = vld [vmem:[#allocation2 + $0xe4] sm:$0xff]  ;;  %v9258_v54 = vpack.c.bf16 %v4630_v46, %v4629_v43  ;;  %v5022_v43 = vld [vmem:[#allocation2 + $0x52] sm:$0xff] }
 0x259   :  { %7120 = vmatprep.mubr.bf16.mxu0 %v9134_v8  ;;  %7133 = vmatpush3.bf16.msra.mxu0 %v8190_v56  ;;  %v4621_v8 = vld [vmem:[#allocation2 + $0x80] sm:$0xff]  ;;  %v2412_v14 = vpack.c.bf16 %v2401_v1, %v2400_v12 }
 0x25a   :  { %7468 = vmatprep.mubr.bf16.mxu1 %v9202_v49  ;;  %7466 = vmatprep.subr.bf16.mxu1 %v8191_v59  ;;  %v9222_v16 = vpack.c.bf16 %v4622_v10, %v4621_v8  ;;  %v8205_v56 = vld [vmem:[%s9412_s3 + $0x570] sm:$0xff]   ;;  %v2604_v8 = vld [vmem:[#allocation2 + $0xf0] sm:$0xff] }
 0x25b   :  { %7134 = vmatprep.subr.bf16.mxu0 %v8192_v0  ;;  %v2603_v1 = vld [vmem:[#allocation2 + $0xe0] sm:$0xff]  ;;  %v4824_v10 = vld [vmem:[#allocation2 + $0x91] sm:$0xff] }
 0x25c   :  { %7467 = vmatpush3.bf16.msra.mxu1 %v8191_v59  ;;  %v8206_v59 = vld [vmem:[%s9412_s3 + $0x578] sm:$0xff]  }
 0x25d   :  { %7135 = vmatpush3.bf16.msra.mxu0 %v8192_v0  ;;  %7484 = vmatprep.subr.bf16.mxu1 %v8193_v4  ;;  %v4835_v0 = vpack.c.bf16 %v4820_v60, %v4819_v53  ;;  %v8216_v60 = vld [vmem:[%s9412_s3 + $0x5c8] sm:$0xff]  }
 0x25e   :  { %7136 = vmatprep.subr.bf16.mxu0 %v8194_v5 }
 0x25f   :  { %7469 = vmatmul.mubr.bf16.vlgmr.msra.gmra.mrb[0].mxu1 %v9212_v9 }
 0x260   :  { %7121 = vmatmul.mubr.bf16.gmra.mrb[52].mxu0 %v9144_v15  ;;  %7485 = vmatpush3.bf16.msra.mxu1 %v8193_v4  ;;  %v4636_v15 = vpack.c.bf16 %v4624_v30, %v4623_v22  ;;  %v8207_v4 = vld [vmem:[%s9412_s3 + $0x580] sm:$0xff]  }
 0x261   :  { %7124 = vmatprep.mubr.bf16.mxu0 %v2412_v14  ;;  %7137 = vmatpush3.bf16.msra.mxu0 %v8194_v5  ;;  %v4821_v5 = vld [vmem:[#allocation2 + $0x61] sm:$0xff]  ;;  %v4828_v22 = vld [vmem:[#allocation2 + $0x111] sm:$0xff] }
 0x262   :  { %7472 = vmatprep.mubr.bf16.mxu1 %v9222_v16  ;;  %7486 = vmatprep.subr.bf16.mxu1 %v8195_v11  ;;  %v4836_v12 = vpack.c.bf16 %v4822_v25, %v4821_v5  ;;  %v8209_v14 = vld [vmem:[%s9412_s3 + $0x590] sm:$0xff]   ;;  %v5030_v25 = vld [vmem:[#allocation2 + $0x112] sm:$0xff] }
 0x263   :  { %7138 = vmatprep.subr.bf16.mxu0 %v8196_v44  ;;  %v5029_v5 = vld [vmem:[#allocation2 + $0x102] sm:$0xff] }
 0x264   :  { %7487 = vmatpush3.bf16.msra.mxu1 %v8195_v11  ;;  %v4837_v11 = vpack.c.bf16 %v4824_v10, %v4823_v7  ;;  %v8219_v10 = vld [vmem:[%s9412_s3 + $0x5e0] sm:$0xff]  }
 0x265   :  { %7139 = vmatpush3.bf16.msra.mxu0 %v8196_v44  ;;  %7488 = vmatprep.subr.bf16.mxu1 %v8197_v17  ;;  %v4825_v44 = vld [vmem:[#allocation2 + $0xa1] sm:$0xff] }
 0x266   :  { %7140 = vmatprep.subr.bf16.mxu0 %v8198_v23 }
 0x267   :  { %7473 = vmatmul.mubr.bf16.gmra.mrb[4].mxu1 %v4636_v15  ;;  %v8210_v15 = vld [vmem:[%s9412_s3 + $0x598] sm:$0xff]  }
 0x268   :  { %7125 = vmatmul.mubr.bf16.gmra.mrb[56].mxu0 %v9163_v33  ;;  %7489 = vmatpush3.bf16.msra.mxu1 %v8197_v17  ;;  %v2595_v33 = vld [vmem:[#allocation2 + $0x20] sm:$0xff]  ;;  %v4826_v17 = vld [vmem:[#allocation2 + $0xb1] sm:$0xff] }
 0x269   :  { %7128 = vmatprep.mubr.bf16.mxu0 %v9173_v40  ;;  %7141 = vmatpush3.bf16.msra.mxu0 %v8198_v23  ;;  %v9248_v40 = vpack.c.bf16 %v4628_v29, %v4627_v38  ;;  %v2611_v52 = vpack.c.bf16 %v2596_v39, %v2595_v33  ;;  %v4827_v23 = vld [vmem:[#allocation2 + $0x101] sm:$0xff]  ;;  %v4838_v30 = vpack.c.bf16 %v4826_v17, %v4825_v44  ;;  %v4834_v39 = vld [vmem:[#allocation2 + $0x171] sm:$0xff] }
 0x26a   :  { %7476 = vmatprep.mubr.bf16.mxu1 %v9238_v34  ;;  %7490 = vmatprep.subr.bf16.mxu1 %v8199_v32  ;;  %v8213_v29 = vld [vmem:[%s9412_s3 + $0x5b0] sm:$0xff]   ;;  %v8220_v44 = vld [vmem:[%s9412_s3 + $0x5e8] sm:$0xff]  }
 0x26b   :  { %7142 = vmatprep.subr.bf16.mxu0 %v8200_v63  ;;  %v4833_v33 = vld [vmem:[#allocation2 + $0x161] sm:$0xff] }
 0x26c   :  { %7491 = vmatpush3.bf16.msra.mxu1 %v8199_v32  ;;  %v4830_v32 = vld [vmem:[#allocation2 + $0x131] sm:$0xff]  ;;  %v4842_v46 = vpack.c.bf16 %v4834_v39, %v4833_v33 }
 0x26d   :  { %7143 = vmatpush3.bf16.msra.mxu0 %v8200_v63  ;;  %7492 = vmatprep.subr.bf16.mxu1 %v8201_v37  ;;  %v4831_v63 = vld [vmem:[#allocation2 + $0x141] sm:$0xff]  ;;  %v8224_v33 = vld [vmem:[%s9412_s3 + $0x608] sm:$0xff]  }
 0x26e   :  { %7144 = vmatprep.subr.bf16.mxu0 %v8202_v50 }
 0x26f   :  { %7477 = vmatmul.mubr.bf16.gmra.mrb[8].mxu1 %v9248_v40 }
 0x270   :  { %7129 = vmatmul.mubr.bf16.gmra.mrb[60].mxu0 %v9183_v47  ;;  %7493 = vmatpush3.bf16.msra.mxu1 %v8201_v37  ;;  %v4640_v47 = vpack.c.bf16 %v4632_v57, %v4631_v55  ;;  %v4832_v37 = vld [vmem:[#allocation2 + $0x151] sm:$0xff]  ;;  %v5025_v55 = vld [vmem:[#allocation2 + $0x82] sm:$0xff] }
 0x271   :  { %7145 = vmatpush3.bf16.msra.mxu0 %v8202_v50  ;;  %7148 = vmatprep.mubr.bf16.mxu0 %v2611_v52  ;;  %v4840_v50 = vpack.c.bf16 %v4830_v32, %v4829_v31  ;;  %v4841_v38 = vpack.c.bf16 %v4832_v37, %v4831_v63  ;;  %v5026_v57 = vld [vmem:[#allocation2 + $0x92] sm:$0xff]  ;;  %v8222_v31 = vld [vmem:[%s9412_s3 + $0x5f8] sm:$0xff]  }
 0x272   :  { %7480 = vmatprep.mubr.bf16.mxu1 %v9258_v54  ;;  %7494 = vmatprep.subr.bf16.mxu1 %v8203_v45  ;;  %v8223_v63 = vld [vmem:[%s9412_s3 + $0x600] sm:$0xff]   ;;  %v5225_v37 = vld [vmem:[#allocation2 + $0x63] sm:$0xff] }
 0x273   :  { %7146 = vmatprep.subr.bf16.mxu0 %v8204_v48 }
 0x274   :  { %7495 = vmatpush3.bf16.msra.mxu1 %v8203_v45  ;;  %v8214_v45 = vld [vmem:[%s9412_s3 + $0x5b8] sm:$0xff]  }
 0x275   :  { %7147 = vmatpush3.bf16.msra.mxu0 %v8204_v48  ;;  %7496 = vmatprep.subr.bf16.mxu1 %v8205_v56  ;;  %v8215_v48 = vld [vmem:[%s9412_s3 + $0x5c0] sm:$0xff]  }
 0x277   :  { %7481 = vmatmul.mubr.bf16.gmra.mrb[12].mxu1 %v4640_v47  ;;  %v5039_v47 = vpack.c.bf16 %v5026_v57, %v5025_v55  ;;  %v8227_v55 = vld [vmem:[%s9412_s3 + $0x620] sm:$0xff]   ;;  %v5233_v57 = vld [vmem:[#allocation2 + $0x123] sm:$0xff] }
 0x278   :  { %7149 = vmatmul.mubr.bf16.vlgmr.msra.gmra.mrb[48].mxu0 %v9202_v49  ;;  %7497 = vmatpush3.bf16.msra.mxu1 %v8205_v56  ;;  %v8208_v49 = vld [vmem:[%s9412_s3 + $0x588] sm:$0xff]  }
 0x279   :  { %7152 = vmatprep.mubr.bf16.mxu0 %v9212_v9  ;;  %7500 = vmatprep.mubr.bf16.mxu1 %v4835_v0  ;;  %v2615_v9 = vpack.c.bf16 %v2604_v8, %v2603_v1  ;;  %v5024_v56 = vld [vmem:[#allocation2 + $0x72] sm:$0xff]  ;;  %v5027_v0 = vld [vmem:[#allocation2 + $0xa2] sm:$0xff]  ;;  %v5041_v8 = vpack.c.bf16 %v5030_v25, %v5029_v5 }
 0x27a   :  { %7498 = vmatprep.subr.bf16.mxu1 %v8206_v59  ;;  %v8218_v1 = vld [vmem:[%s9412_s3 + $0x5d8] sm:$0xff]   ;;  %v5238_v25 = vld [vmem:[#allocation2 + $0x173] sm:$0xff] }
 0x27b   :  { %v5237_v5 = vld [vmem:[#allocation2 + $0x163] sm:$0xff] }
 0x27c   :  { %7499 = vmatpush3.bf16.msra.mxu1 %v8206_v59  ;;  %v8217_v59 = vld [vmem:[%s9412_s3 + $0x5d0] sm:$0xff]  }
 0x27d   :  { %7516 = vmatprep.subr.bf16.mxu1 %v8207_v4 }
 0x27f   :  { %7501 = vmatmul.mubr.bf16.vlgmr.msra.gmra.mrb[0].mxu1 %v4836_v12  ;;  %v5031_v12 = vld [vmem:[#allocation2 + $0x122] sm:$0xff] }
 0x280   :  { %7153 = vmatmul.mubr.bf16.gmra.mrb[52].mxu0 %v9222_v16  ;;  %7517 = vmatpush3.bf16.msra.mxu1 %v8207_v4  ;;  %v4839_v16 = vpack.c.bf16 %v4828_v22, %v4827_v23  ;;  %v5028_v4 = vld [vmem:[#allocation2 + $0xb2] sm:$0xff]  ;;  %v8221_v23 = vld [vmem:[%s9412_s3 + $0x5f0] sm:$0xff]  }
 0x281   :  { %7156 = vmatprep.mubr.bf16.mxu0 %v2615_v9  ;;  %7504 = vmatprep.mubr.bf16.mxu1 %v4837_v11  ;;  %v5040_v7 = vpack.c.bf16 %v5028_v4, %v5027_v0  ;;  %v5033_v9 = vld [vmem:[#allocation2 + $0x142] sm:$0xff]  ;;  %v5034_v11 = vld [vmem:[#allocation2 + $0x152] sm:$0xff] }
 0x282   :  { %7518 = vmatprep.subr.bf16.mxu1 %v8208_v49  ;;  %v5043_v17 = vpack.c.bf16 %v5034_v11, %v5033_v9  ;;  %v5035_v22 = vld [vmem:[#allocation2 + $0x162] sm:$0xff]  ;;  %v9375_v9 = vld [vmem:[%s9413_s4] ss:$0 sm:$0xff]  ;;  %s8265_s4 = smov [#allocation3]  }
 0x283   :  { %v8229_v4 = vld [vmem:[%s9412_s3 + $0x630] sm:$0xff]   ;;  %s5687_s16 = sshll.u32 %s8265_s4, 4  ;;  %s5688_s16 = int_to_ptr.vmem [resolvable:$true] %s5687_s16 }
 0x284   :  { %7519 = vmatpush3.bf16.msra.mxu1 %v8208_v49  ;;  %v5032_v49 = vld [vmem:[#allocation2 + $0x132] sm:$0xff]  ;;  %s8241_s0 = scalar_lea.vmem %s5688_s16, 2048  ;;  %p8246_p1 = scmp.lt.s32.totalorder %s5688_s16, %s5688_s16 }
 0x285   :  { %7520 = vmatprep.subr.bf16.mxu1 %v8209_v14  ;;  %p8242_p0 = scmp.ne.s32.totalorder %s5688_s16, %s8241_s0  ;;  %p8247_p2 = scmp.lt.s32.totalorder %s8241_s0, %s8241_s0 }
 0x287   :  { %7505 = vmatmul.mubr.bf16.gmra.mrb[4].mxu1 %v4838_v30  ;;  %v5036_v30 = vld [vmem:[#allocation2 + $0x172] sm:$0xff]  ;;  %p8248_p3 = por %p8247_p2, %p8246_p1 }
 0x288   :  { %7157 = vmatmul.mubr.bf16.gmra.mrb[56].mxu0 %v9238_v34  ;;  %7521 = vmatpush3.bf16.msra.mxu1 %v8209_v14  ;;  %v8212_v34 = vld [vmem:[%s9412_s3 + $0x5a8] sm:$0xff]   ;;  %v5042_v14 = vpack.c.bf16 %v5032_v49, %v5031_v12 }
 0x289   :  { %7160 = vmatprep.mubr.bf16.mxu0 %v9248_v40  ;;  %7508 = vmatprep.mubr.bf16.mxu1 %v4839_v16  ;;  %v5021_v40 = vld [vmem:[#allocation2 + $0x42] sm:$0xff]  ;;  %v5224_v16 = vld [vmem:[#allocation2 + $0x53] sm:$0xff]  ;;  %p8249_p4 = pnand %p8248_p3, %p8242_p0 }
 0x28a   :  { %7522 = vmatprep.subr.bf16.mxu1 %v8210_v15  ;;  %v5037_v52 = vpack.c.bf16 %v5022_v43, %v5021_v40  ;;  %v8225_v40 = vld [vmem:[%s9412_s3 + $0x610] sm:$0xff]  }
 0x28b   :  { %v5229_v43 = vld [vmem:[#allocation2 + $0xa3] sm:$0xff] }
 0x28c   :  { %7523 = vmatpush3.bf16.msra.mxu1 %v8210_v15  ;;  %v5223_v15 = vld [vmem:[#allocation2 + $0x43] sm:$0xff] }
 0x28d   :  { %7524 = vmatprep.subr.bf16.mxu1 %v8211_v28  ;;  %v5239_v32 = vpack.c.bf16 %v5224_v16, %v5223_v15 }
 0x28f   :  { %7509 = vmatmul.mubr.bf16.gmra.mrb[8].mxu1 %v4840_v50  ;;  %v5226_v50 = vld [vmem:[#allocation2 + $0x73] sm:$0xff] }
 0x290   :  { %7161 = vmatmul.mubr.bf16.gmra.mrb[60].mxu0 %v9258_v54  ;;  %7525 = vmatpush3.bf16.msra.mxu1 %v8211_v28  ;;  %v5023_v54 = vld [vmem:[#allocation2 + $0x62] sm:$0xff]  ;;  %v5044_v28 = vpack.c.bf16 %v5036_v30, %v5035_v22 }
 0x291   :  { %7512 = vmatprep.mubr.bf16.mxu1 %v4841_v38  ;;  %7526 = vmatprep.subr.bf16.mxu1 %v8212_v34  ;;  %v5038_v53 = vpack.c.bf16 %v5024_v56, %v5023_v54  ;;  %v5228_v38 = vld [vmem:[#allocation2 + $0x93] sm:$0xff]  ;;  %v8226_v54 = vld [vmem:[%s9412_s3 + $0x618] sm:$0xff]  }
 0x294   :  { %7527 = vmatpush3.bf16.msra.mxu1 %v8212_v34  ;;  %v5227_v34 = vld [vmem:[#allocation2 + $0x83] sm:$0xff] }
 0x295   :  { %7528 = vmatprep.subr.bf16.mxu1 %v8213_v29  ;;  %v5241_v39 = vpack.c.bf16 %v5228_v38, %v5227_v34 }
 0x297   :  { %7513 = vmatmul.mubr.bf16.gmra.mrb[12].mxu1 %v4842_v46  ;;  %v5230_v46 = vld [vmem:[#allocation2 + $0xb3] sm:$0xff] }
 0x298   :  { %7529 = vmatpush3.bf16.msra.mxu1 %v8213_v29  ;;  %7532 = vmatprep.mubr.bf16.mxu1 %v5037_v52  ;;  %v5240_v29 = vpack.c.bf16 %v5226_v50, %v5225_v37  ;;  %v5232_v52 = vld [vmem:[#allocation2 + $0x113] sm:$0xff] }
 0x299   :  { %7530 = vmatprep.subr.bf16.mxu1 %v8214_v45 }
 0x29c   :  { %7531 = vmatpush3.bf16.msra.mxu1 %v8214_v45  ;;  %v5231_v45 = vld [vmem:[#allocation2 + $0x103] sm:$0xff] }
 0x29d   :  { %7548 = vmatprep.subr.bf16.mxu1 %v8215_v48  ;;  %v5243_v56 = vpack.c.bf16 %v5232_v52, %v5231_v45 }
 0x29f   :  { %7533 = vmatmul.mubr.bf16.vlgmr.msra.gmra.mrb[0].mxu1 %v5038_v53  ;;  %v5234_v53 = vld [vmem:[#allocation2 + $0x133] sm:$0xff] }
 0x2a0   :  { %7549 = vmatpush3.bf16.msra.mxu1 %v8215_v48  ;;  %7536 = vmatprep.mubr.bf16.mxu1 %v5039_v47  ;;  %v5242_v48 = vpack.c.bf16 %v5230_v46, %v5229_v43  ;;  %v5244_v47 = vpack.c.bf16 %v5234_v53, %v5233_v57 }
 0x2a1   :  { %7550 = vmatprep.subr.bf16.mxu1 %v8216_v60 }
 0x2a4   :  { %7551 = vmatpush3.bf16.msra.mxu1 %v8216_v60  ;;  %v5235_v60 = vld [vmem:[#allocation2 + $0x143] sm:$0xff] }
 0x2a5   :  { %7552 = vmatprep.subr.bf16.mxu1 %v8217_v59  ;;  %v5245_v0 = vpack.c.bf16 %v9111_v58, %v5235_v60 }
 0x2a7   :  { %7537 = vmatmul.mubr.bf16.gmra.mrb[4].mxu1 %v5040_v7  ;;  %v5425_v7 = vld [vmem:[#allocation2 + $0x44] sm:$0xff] }
 0x2a8   :  { %7553 = vmatpush3.bf16.msra.mxu1 %v8217_v59  ;;  %7540 = vmatprep.mubr.bf16.mxu1 %v5041_v8  ;;  %v8228_v59 = vld [vmem:[%s9412_s3 + $0x628] sm:$0xff]   ;;  %v8230_v8 = vld [vmem:[%s9412_s3 + $0x638] sm:$0xff]   ;;  %v5441_v58 = vpack.c.bf16 %v9131_v6, %v5425_v7 }
 0x2a9   :  { %7554 = vmatprep.subr.bf16.mxu1 %v8218_v1 }
 0x2ac   :  { %7555 = vmatpush3.bf16.msra.mxu1 %v8218_v1  ;;  %v5246_v1 = vpack.c.bf16 %v5238_v25, %v5237_v5 }
 0x2ad   :  { %7556 = vmatprep.subr.bf16.mxu1 %v8219_v10 }
 0x2af   :  { %7541 = vmatmul.mubr.bf16.gmra.mrb[8].mxu1 %v5042_v14 }
 0x2b0   :  { %7557 = vmatpush3.bf16.msra.mxu1 %v8219_v10  ;;  %7544 = vmatprep.mubr.bf16.mxu1 %v5043_v17  ;;  %v5432_v10 = vld [vmem:[#allocation2 + $0xb4] sm:$0xff] }
 0x2b1   :  { %7558 = vmatprep.subr.bf16.mxu1 %v8220_v44  ;;  %v5444_v12 = vpack.c.bf16 %v5432_v10, %v9153_v27 }
 0x2b4   :  { %7559 = vmatpush3.bf16.msra.mxu1 %v8220_v44 }
 0x2b5   :  { %7560 = vmatprep.subr.bf16.mxu1 %v8221_v23 }
 0x2b7   :  { %7545 = vmatmul.mubr.bf16.gmra.mrb[12].mxu1 %v5044_v28 }
 0x2b8   :  { %7561 = vmatpush3.bf16.msra.mxu1 %v8221_v23  ;;  %7564 = vmatprep.mubr.bf16.mxu1 %v5239_v32 }
 0x2b9   :  { %7562 = vmatprep.subr.bf16.mxu1 %v8222_v31 }
 0x2bc   :  { %7563 = vmatpush3.bf16.msra.mxu1 %v8222_v31 }
 0x2bd   :  { %7580 = vmatprep.subr.bf16.mxu1 %v8223_v63 }
 0x2bf   :  { %7565 = vmatmul.mubr.bf16.vlgmr.msra.gmra.mrb[0].mxu1 %v5240_v29 }
 0x2c0   :  { %7581 = vmatpush3.bf16.msra.mxu1 %v8223_v63  ;;  %7568 = vmatprep.mubr.bf16.mxu1 %v5241_v39 }
 0x2c1   :  { %7582 = vmatprep.subr.bf16.mxu1 %v8224_v33 }
 0x2c4   :  { %7583 = vmatpush3.bf16.msra.mxu1 %v8224_v33 }
 0x2c5   :  { %7584 = vmatprep.subr.bf16.mxu1 %v8225_v40 }
 0x2c7   :  { %7569 = vmatmul.mubr.bf16.gmra.mrb[4].mxu1 %v5242_v48 }
 0x2c8   :  { %7585 = vmatpush3.bf16.msra.mxu1 %v8225_v40  ;;  %7572 = vmatprep.mubr.bf16.mxu1 %v5243_v56 }
 0x2c9   :  { %7586 = vmatprep.subr.bf16.mxu1 %v8226_v54 }
 0x2cc   :  { %7587 = vmatpush3.bf16.msra.mxu1 %v8226_v54 }
 0x2cd   :  { %7588 = vmatprep.subr.bf16.mxu1 %v8227_v55 }
 0x2cf   :  { %7573 = vmatmul.mubr.bf16.gmra.mrb[8].mxu1 %v5244_v47 }
 0x2d0   :  { %7589 = vmatpush3.bf16.msra.mxu1 %v8227_v55  ;;  %7576 = vmatprep.mubr.bf16.mxu1 %v5245_v0 }
 0x2d1   :  { %7590 = vmatprep.subr.bf16.mxu1 %v8228_v59 }
 0x2d4   :  { %7591 = vmatpush3.bf16.msra.mxu1 %v8228_v59 }
 0x2d5   :  { %7592 = vmatprep.subr.bf16.mxu1 %v8229_v4 }
 0x2d7   :  { %7577 = vmatmul.mubr.bf16.gmra.mrb[12].mxu1 %v5246_v1 }
 0x2d8   :  { %7593 = vmatpush3.bf16.msra.mxu1 %v8229_v4  ;;  %7596 = vmatprep.mubr.bf16.mxu1 %v5441_v58 }
 0x2d9   :  { %7594 = vmatprep.subr.bf16.mxu1 %v8230_v8 }
 0x2dc   :  { %7595 = vmatpush3.bf16.msra.mxu1 %v8230_v8 }
 0x2df   :  { %7597 = vmatmul.mubr.bf16.vlgmr.msra.gmra.mrb[0].mxu1 %v5442_v24 }
 0x2e0   :  { %7600 = vmatprep.mubr.bf16.mxu1 %v5443_v51 }
 0x2e7   :  { %7601 = vmatmul.mubr.bf16.gmra.mrb[4].mxu1 %v5444_v12 }
 0x2e8   :  { %7604 = vmatprep.mubr.bf16.mxu1 %v5445_v3 }
 0x2ef   :  { %7605 = vmatmul.mubr.bf16.gmra.mrb[8].mxu1 %v5446_v26 }
 0x2f0   :  { %7608 = vmatprep.mubr.bf16.mxu1 %v5447_v13 }
 0x2f7   :  { %7609 = vmatmul.mubr.bf16.gmra.mrb[12].mxu1 %v5448_v19 }
 0x34b   :  { %v7150_v24 = vpop.f32.mrb[48].mxu0 }
 0x34c   :  { %v2718_v41 = vpop.f32.mrb[49].mxu0 }
 0x34d   :  { %v7151_v42 = vpop.f32.mrb[50].mxu0 }
 0x34e   :  { %v2721_v51 = vpop.f32.mrb[51].mxu0 }
 0x353   :  { %v7154_v6 = vpop.f32.mrb[52].mxu0 }
 0x354   :  { %v2734_v27 = vpop.f32.mrb[53].mxu0 }
 0x355   :  { %v7155_v61 = vpop.f32.mrb[54].mxu0 }
 0x356   :  { %v2737_v62 = vpop.f32.mrb[55].mxu0 }
 0x35b   :  { %v7158_v3 = vpop.f32.mrb[56].mxu0 }
 0x35c   :  { %v2750_v49 = vpop.f32.mrb[57].mxu0 }
 0x35d   :  { %v7159_v20 = vpop.f32.mrb[58].mxu0 }
 0x35e   :  { %v2753_v21 = vpop.f32.mrb[59].mxu0 }
 0x363   :  { %v9364_v26 = vpop.f32.mrb[60].mxu0 }
 0x364   :  { %v9366_v35 = vpop.f32.mrb[61].mxu0 }
 0x365   :  { %v9368_v36 = vpop.f32.mrb[62].mxu0 }
 0x366   :  { %v9370_v13 = vpop.f32.mrb[63].mxu0 }
 0x3b2   :  { %v7598_v2 = vpop.f32.mrb[0].mxu1 }
 0x3b3   :  { %v7612_v11 = vadd.f32 %v7598_v2, %v7150_v24  ;;  %v5548_v14 = vpop.f32.mrb[1].mxu1 }
 0x3b4   :  { %v7613_v44 = vadd.f32 %v5548_v14, %v2718_v41  ;;  %v7599_v17 = vpop.f32.mrb[2].mxu1 }
 0x3b5   :  { %v5636_v23 = vadd.f32 %v7612_v11, %v9375_v9  ;;  %v7614_v22 = vadd.f32 %v7599_v17, %v7151_v42  ;;  %v5551_v30 = vpop.f32.mrb[3].mxu1 }
 0x3b6   :  { %v5634_v15 = vadd.f32 %v7613_v44, %v9375_v9  ;;  %v7615_v16 = vadd.f32 %v5551_v30, %v2721_v51 }
 0x3b7   :  { %v5652_v28 = vmax.f32 %v5636_v23, 0.0  ;;  %v5637_v31 = vadd.f32 %v7614_v22, %v9375_v9 }
 0x3b8   :  { %v5650_v32 = vmax.f32 %v5634_v15, 0.0  ;;  %v5635_v63 = vadd.f32 %v7615_v16, %v9375_v9 }
 0x3b9   :  { %5668 = vst [vmem:[#allocation3 + $0x10] sm:$0xff] %v5652_v28  ;;  %v5653_v37 = vmax.f32 %v5637_v31, 0.0 }
 0x3ba   :  { %5666 = vst [vmem:[#allocation3] sm:$0xff] %v5650_v32  ;;  %v5651_v50 = vmax.f32 %v5635_v63, 0.0  ;;  %v7602_v34 = vpop.f32.mrb[4].mxu1 }
 0x3bb   :  { %5669 = vst [vmem:[#allocation3 + $0x18] sm:$0xff] %v5653_v37  ;;  %v7616_v38 = vadd.f32 %v7602_v34, %v7154_v6  ;;  %v5564_v29 = vpop.f32.mrb[5].mxu1 }
 0x3bc   :  { %5667 = vst [vmem:[#allocation3 + $0x8] sm:$0xff] %v5651_v50  ;;  %v7617_v33 = vadd.f32 %v5564_v29, %v2734_v27  ;;  %v7603_v39 = vpop.f32.mrb[6].mxu1 }
 0x3bd   :  { %v5640_v40 = vadd.f32 %v7616_v38, %v9375_v9  ;;  %v7618_v43 = vadd.f32 %v7603_v39, %v7155_v61  ;;  %v5567_v46 = vpop.f32.mrb[7].mxu1 }
 0x3be   :  { %v5638_v45 = vadd.f32 %v7617_v33, %v9375_v9  ;;  %v7619_v52 = vadd.f32 %v5567_v46, %v2737_v62 }
 0x3bf   :  { %v5656_v48 = vmax.f32 %v5640_v40, 0.0  ;;  %v5641_v54 = vadd.f32 %v7618_v43, %v9375_v9 }
 0x3c0   :  { %v5654_v56 = vmax.f32 %v5638_v45, 0.0  ;;  %v5639_v55 = vadd.f32 %v7619_v52, %v9375_v9 }
 0x3c1   :  { %5672 = vst [vmem:[#allocation3 + $0x30] sm:$0xff] %v5656_v48  ;;  %v5657_v57 = vmax.f32 %v5641_v54, 0.0 }
 0x3c2   :  { %5670 = vst [vmem:[#allocation3 + $0x20] sm:$0xff] %v5654_v56  ;;  %v5655_v53 = vmax.f32 %v5639_v55, 0.0  ;;  %v7606_v60 = vpop.f32.mrb[8].mxu1 }
 0x3c3   :  { %5673 = vst [vmem:[#allocation3 + $0x38] sm:$0xff] %v5657_v57  ;;  %v7620_v47 = vadd.f32 %v7606_v60, %v7158_v3  ;;  %v5580_v59 = vpop.f32.mrb[9].mxu1 }
 0x3c4   :  { %5671 = vst [vmem:[#allocation3 + $0x28] sm:$0xff] %v5655_v53  ;;  %v7621_v0 = vadd.f32 %v5580_v59, %v2750_v49  ;;  %v7607_v4 = vpop.f32.mrb[10].mxu1 }
 0x3c5   :  { %v5644_v5 = vadd.f32 %v7620_v47, %v9375_v9  ;;  %v7622_v25 = vadd.f32 %v7607_v4, %v7159_v20  ;;  %v5583_v7 = vpop.f32.mrb[11].mxu1 }
 0x3c6   :  { %v5642_v1 = vadd.f32 %v7621_v0, %v9375_v9  ;;  %v7623_v8 = vadd.f32 %v5583_v7, %v2753_v21 }
 0x3c7   :  { %v5660_v58 = vmax.f32 %v5644_v5, 0.0  ;;  %v5645_v10 = vadd.f32 %v7622_v25, %v9375_v9 }
 0x3c8   :  { %v5658_v12 = vmax.f32 %v5642_v1, 0.0  ;;  %v5643_v18 = vadd.f32 %v7623_v8, %v9375_v9 }
 0x3c9   :  { %5676 = vst [vmem:[#allocation3 + $0x50] sm:$0xff] %v5660_v58  ;;  %v5661_v19 = vmax.f32 %v5645_v10, 0.0 }
 0x3ca   :  { %5674 = vst [vmem:[#allocation3 + $0x40] sm:$0xff] %v5658_v12  ;;  %v5659_v24 = vmax.f32 %v5643_v18, 0.0  ;;  %v7610_v41 = vpop.f32.mrb[12].mxu1 }
 0x3cb   :  { %5677 = vst [vmem:[#allocation3 + $0x58] sm:$0xff] %v5661_v19  ;;  %v7624_v42 = vadd.f32 %v7610_v41, %v9364_v26  ;;  %v5596_v51 = vpop.f32.mrb[13].mxu1 }
 0x3cc   :  { %5675 = vst [vmem:[#allocation3 + $0x48] sm:$0xff] %v5659_v24  ;;  %v7625_v6 = vadd.f32 %v5596_v51, %v9366_v35  ;;  %v7611_v27 = vpop.f32.mrb[14].mxu1 }
 0x3cd   :  { %v5648_v61 = vadd.f32 %v7624_v42, %v9375_v9  ;;  %v7626_v62 = vadd.f32 %v7611_v27, %v9368_v36  ;;  %v5599_v3 = vpop.f32.mrb[15].mxu1 }
 0x3ce   :  { %v5646_v49 = vadd.f32 %v7625_v6, %v9375_v9  ;;  %v7627_v20 = vadd.f32 %v5599_v3, %v9370_v13 }
 0x3cf   :  { %v5664_v21 = vmax.f32 %v5648_v61, 0.0  ;;  %v5649_v2 = vadd.f32 %v7626_v62, %v9375_v9 }
 0x3d0   :  { %v5662_v26 = vmax.f32 %v5646_v49, 0.0  ;;  %v5647_v11 = vadd.f32 %v7627_v20, %v9375_v9 }
 0x3d1   :  { %5680 = vst [vmem:[#allocation3 + $0x70] sm:$0xff] %v5664_v21  ;;  %v5665_v35 = vmax.f32 %v5649_v2, 0.0 }
 0x3d2   :  { %5678 = vst [vmem:[#allocation3 + $0x60] sm:$0xff] %v5662_v26  ;;  %v5663_v14 = vmax.f32 %v5647_v11, 0.0 }
 0x3d3   :  { %5681 = vst [vmem:[#allocation3 + $0x78] sm:$0xff] %v5665_v35 }
 0x3d4   :  { %5679 = vst [vmem:[#allocation3 + $0x68] sm:$0xff] %v5663_v14 }
 0x3d5   :  { %8252 = shalt.err (!%p8249_p4)
}
 0x3d6   :  { %s8253_s1 = scalar_lea.hbm %s9414_s5, 2048 }
 0x3d7   :  { %p8254_p5 = scmp.ne.s32.totalorder %s9414_s5, %s8253_s1  ;;  %p8257_p6 = scmp.lt.u32.totalorder %s8253_s1, %s9414_s5 }
 0x3d9   :  { %p8259_p7 = pnand %p8257_p6, %p8254_p5 }
 0x3db   :  { %8262 = shalt.err (!%p8259_p7)
}
 0x3dc   :  { %s8266_s23 = smov 128   ;;  %s8267_s24 = smov 8  }
 0x3dd   :  { %5693 = dma.vmem_to_hbm [thread:$0]  %s5688_s16, 2048, %s9414_s5, [#allocation4], %s8266_s23, %s8266_s23, %s8267_s24  }
 0x3de   :  { %8263 = dma.done.wait [#allocation4], 2048  }
 0x3df   :  { %8264 = vsyncadd [#allocation4], 4294965248 }
 0x3e0   :  { %5697 = vsyncpa [#allocation4], 1 }

</bundles_post_ra>
